<compile_context>
chip_gen: v7x
topology: tpu7x:2x2x1
jax: 0.10.0
libtpu: 0.0.40
codegen_flags: <defaults>
</compile_context>

<pallas_src>
import jax
import jax.numpy as jnp
from jax.experimental import pallas as pl
from jax.experimental.pallas import tpu as pltpu


# ----------------------------------------------------------------------------
# small in-kernel helpers
# ----------------------------------------------------------------------------
def _sigmoid(y):
    # exp on the EUP + approx reciprocal on the EUP (no VPU divide)
    return pl.reciprocal(1.0 + jnp.exp(-y), approx=True)


def _silu(y):
    return y * _sigmoid(y)


# ----------------------------------------------------------------------------
# Pallas kernels (one image per grid step; batch is the parallel grid axis)
# ----------------------------------------------------------------------------
def _stem_kernel(xph_ref, w_ref, b_ref, o_ref):
    """Stem conv 3x3 stride 2 (+ folded BN + SiLU).

    xph_ref: [1, 4, Hh, Wh, Cin]  phase-split (space-to-batch by 2) padded image
    w_ref:   [9, Cin, Cout]       bf16, BN scale pre-folded
    b_ref:   [1, Cout]            f32 folded BN shift
    o_ref:   [1, Ho, Wo, Cout]
    """
    _, ho, wo, cout = o_ref.shape
    cin = w_ref.shape[1]
    acc = jnp.zeros((ho * wo, cout), jnp.float32)
    t = 0
    for di in range(3):
        for dj in range(3):
            ph = (di % 2) * 2 + (dj % 2)
            oi, oj = di // 2, dj // 2
            xt = xph_ref[0, ph, oi:oi + ho, oj:oj + wo, :].reshape(ho * wo, cin)
            acc = acc + jnp.dot(xt.astype(jnp.bfloat16), w_ref[t],
                                preferred_element_type=jnp.float32)
            t += 1
    y = _silu(acc + b_ref[...])
    o_ref[...] = y.reshape(1, ho, wo, cout)


def _fusedmb_expand_kernel(xp_ref, wf_ref, bf_ref, we_ref, be_ref, o_ref):
    """FusedMBConv 3x3 s1 (+BN+SiLU) + residual, fused with the 1x1 expand conv.

    xp_ref: [1, Ho+2, Wo+2, C]   zero-padded stem activation
    wf_ref: [9, C, C] bf16 ; bf_ref: [1, C]
    we_ref: [C, E]    bf16 ; be_ref: [1, E]
    o_ref:  [1, Ho, Wo, E]
    """
    _, ho, wo, e = o_ref.shape
    c = wf_ref.shape[1]
    acc = jnp.zeros((ho * wo, c), jnp.float32)
    t = 0
    for di in range(3):
        for dj in range(3):
            xt = xp_ref[0, di:di + ho, dj:dj + wo, :].reshape(ho * wo, c)
            acc = acc + jnp.dot(xt.astype(jnp.bfloat16), wf_ref[t],
                                preferred_element_type=jnp.float32)
            t += 1
    y = _silu(acc + bf_ref[...])
    res = xp_ref[0, 1:1 + ho, 1:1 + wo, :].reshape(ho * wo, c)   # residual (interior)
    x = y + res
    ex = _silu(jnp.dot(x.astype(jnp.bfloat16), we_ref[...],
                       preferred_element_type=jnp.float32) + be_ref[...])
    o_ref[...] = ex.reshape(1, ho, wo, e)


def _tail_kernel(xph_ref, wdw_ref, bdw_ref, w1_ref, b1_ref, w2_ref, b2_ref,
                 wp_ref, bp_ref, wh_ref, bh_ref, wc_ref, bc_ref,
                 who_ref, bho_ref, o_ref):
    """dw3x3 s2 + BN + SiLU + SE + 1x1 project(+BN) + 1x1 head(+BN+SiLU)
    + global average pool + classifier + fused attribute heads.

    xph_ref: [1, 4, Hh, Wh, E]  phase-split zero-padded expanded activation
    o_ref:   [1, 1, NPAD]       fused, lane-padded attribute-head logits
    """
    _, _, hh, wh, e = xph_ref.shape
    ho, wo = hh - 1, wh - 1          # pad=1, stride=2  =>  Hh = Ho + 1
    m = ho * wo

    # depthwise 3x3 stride-2: unrolled 9-tap VPU FMA chain (f32, lane-dense C)
    acc = jnp.zeros((m, e), jnp.float32)
    t = 0
    for di in range(3):
        for dj in range(3):
            ph = (di % 2) * 2 + (dj % 2)
            oi, oj = di // 2, dj // 2
            xt = xph_ref[0, ph, oi:oi + ho, oj:oj + wo, :].reshape(m, e)
            acc = acc + xt * wdw_ref[t:t + 1, :]
            t += 1
    y = _silu(acc + bdw_ref[...])                                 # [m, E]

    # squeeze-and-excitation (this block holds exactly one image)
    s = jnp.mean(y, axis=0, keepdims=True)                        # [1, E]
    hse = _silu(jnp.dot(s.astype(jnp.bfloat16), w1_ref[...],
                        preferred_element_type=jnp.float32) + b1_ref[...])
    g = _sigmoid(jnp.dot(hse.astype(jnp.bfloat16), w2_ref[...],
                         preferred_element_type=jnp.float32) + b2_ref[...])
    y = y * g

    # 1x1 project (+ folded BN, no activation)
    pj = jnp.dot(y.astype(jnp.bfloat16), wp_ref[...],
                 preferred_element_type=jnp.float32) + bp_ref[...]
    # 1x1 head conv (+ folded BN + SiLU)
    hd = _silu(jnp.dot(pj.astype(jnp.bfloat16), wh_ref[...],
                       preferred_element_type=jnp.float32) + bh_ref[...])
    # global average pool + backbone classifier
    f = jnp.mean(hd, axis=0, keepdims=True)                       # [1, HEAD_C]
    cls = jnp.dot(f.astype(jnp.bfloat16), wc_ref[...],
                  preferred_element_type=jnp.float32) + bc_ref[...]
    # fused, lane-padded attribute heads
    out = jnp.dot(cls.astype(jnp.bfloat16), who_ref[...],
                  preferred_element_type=jnp.float32) + bho_ref[...]
    o_ref[...] = out.reshape(1, 1, out.shape[-1])


# ----------------------------------------------------------------------------
# pallas_call wrappers
# ----------------------------------------------------------------------------
_CPARAMS = pltpu.CompilerParams(dimension_semantics=("parallel",),
                                vmem_limit_bytes=32 * 1024 * 1024)


def _full_spec(a):
    nd = a.ndim
    return pl.BlockSpec(a.shape, lambda i, _nd=nd: (0,) * _nd)


def _stem_call(xph, w, b):
    B, _, hh, wh, _ = xph.shape
    ho, wo = hh - 1, wh - 1
    cout = w.shape[-1]
    return pl.pallas_call(
        _stem_kernel,
        out_shape=jax.ShapeDtypeStruct((B, ho, wo, cout), jnp.float32),
        grid=(B,),
        in_specs=[pl.BlockSpec((1,) + xph.shape[1:], lambda i: (i, 0, 0, 0, 0)),
                  _full_spec(w), _full_spec(b)],
        out_specs=pl.BlockSpec((1, ho, wo, cout), lambda i: (i, 0, 0, 0)),
        compiler_params=_CPARAMS,
    )(xph, w, b)


def _fusedmb_expand_call(xpad, wf, bf, we, be):
    B, hp, wp, c = xpad.shape
    ho, wo = hp - 2, wp - 2
    e = we.shape[-1]
    return pl.pallas_call(
        _fusedmb_expand_kernel,
        out_shape=jax.ShapeDtypeStruct((B, ho, wo, e), jnp.float32),
        grid=(B,),
        in_specs=[pl.BlockSpec((1, hp, wp, c), lambda i: (i, 0, 0, 0)),
                  _full_spec(wf), _full_spec(bf), _full_spec(we), _full_spec(be)],
        out_specs=pl.BlockSpec((1, ho, wo, e), lambda i: (i, 0, 0, 0)),
        compiler_params=_CPARAMS,
    )(xpad, wf, bf, we, be)


def _tail_call(eph, *weights):
    B = eph.shape[0]
    npad = weights[-2].shape[-1]     # heads_w: [CLS_C, NPAD]
    return pl.pallas_call(
        _tail_kernel,
        out_shape=jax.ShapeDtypeStruct((B, 1, npad), jnp.float32),
        grid=(B,),
        in_specs=[pl.BlockSpec((1,) + eph.shape[1:], lambda i: (i, 0, 0, 0, 0))]
                 + [_full_spec(a) for a in weights],
        out_specs=pl.BlockSpec((1, 1, npad), lambda i: (i, 0, 0)),
        compiler_params=_CPARAMS,
    )(eph, *weights)


# ----------------------------------------------------------------------------
# JAX glue (pure 1x data movement between kernels)
# ----------------------------------------------------------------------------
def _pad_hw1(x):
    return jnp.pad(x, ((0, 0), (1, 1), (1, 1), (0, 0)))


def _phase_split(xp):
    """[B, Hp, Wp, C] (Hp, Wp even) -> [B, 4, Hp//2, Wp//2, C]; phase = 2*(r%2)+(c%2)."""
    B, hp, wp, c = xp.shape
    x6 = xp.reshape(B, hp // 2, 2, wp // 2, 2, c)
    x6 = jnp.transpose(x6, (0, 2, 4, 1, 3, 5))
    return x6.reshape(B, 4, hp // 2, wp // 2, c)


# ----------------------------------------------------------------------------
# deterministic synthetic parameters (BN folded, MXU weights pre-cast to bf16)
# ----------------------------------------------------------------------------
def _bn_fold(gamma, beta, mean, var, eps=1e-3):
    scale = gamma * jax.lax.rsqrt(var + eps)
    shift = beta - mean * scale
    return scale, shift


def _make_bn(key, c):
    k1, k2, k3, k4 = jax.random.split(key, 4)
    gamma = 1.0 + 0.05 * jax.random.normal(k1, (c,), jnp.float32)
    beta = 0.05 * jax.random.normal(k2, (c,), jnp.float32)
    mean = 0.05 * jax.random.normal(k3, (c,), jnp.float32)
    var = 1.0 + jnp.abs(0.05 * jax.random.normal(k4, (c,), jnp.float32))
    return _bn_fold(gamma, beta, mean, var)


def _winit(key, shape, fan_in):
    return jax.random.normal(key, shape, jnp.float32) / jnp.sqrt(jnp.float32(fan_in))


class ModifiedEffNetPallas:
    """Pallas re-implementation of ModifiedEffNet's forward pass."""

    STEM_C = 16
    EXP_C = 64
    SE_C = 8
    PROJ_C = 24
    HEAD_C = 128
    CLS_C = 32          # backbone classifier output width (stand-in for 1000)
    IN_C_PAD = 8        # RGB channels zero-padded to 8 lanes for the stem matmul
    LANE = 128

    def __init__(self, num_classes, batch_size, seed=42, img_hw=32):
        assert img_hw % 32 == 0, "spatial dims kept multiples of 8 through both stride-2 stages"
        self.batch_size = batch_size
        self.num_classes = list(num_classes)
        self.img_hw = img_hw

        key = jax.random.PRNGKey(seed)
        ks = list(jax.random.split(key, 24))
        p = {}

        # stem conv 3x3 s2 (+ folded BN); input channels zero-padded 3 -> 8
        w = _winit(ks[0], (3, 3, 3, self.STEM_C), 27)
        sc, sh = _make_bn(ks[1], self.STEM_C)
        wst = (w * sc).reshape(9, 3, self.STEM_C)
        wst = jnp.pad(wst, ((0, 0), (0, self.IN_C_PAD - 3), (0, 0)))
        p["stem_w"] = wst.astype(jnp.bfloat16)
        p["stem_b"] = sh.reshape(1, self.STEM_C)

        # FusedMBConv 3x3 s1 (+ folded BN)
        w = _winit(ks[2], (3, 3, self.STEM_C, self.STEM_C), 9 * self.STEM_C)
        sc, sh = _make_bn(ks[3], self.STEM_C)
        p["fused_w"] = (w * sc).reshape(9, self.STEM_C, self.STEM_C).astype(jnp.bfloat16)
        p["fused_b"] = sh.reshape(1, self.STEM_C)

        # MBConv 1x1 expand (+ folded BN)
        w = _winit(ks[4], (self.STEM_C, self.EXP_C), self.STEM_C)
        sc, sh = _make_bn(ks[5], self.EXP_C)
        p["exp_w"] = (w * sc).astype(jnp.bfloat16)
        p["exp_b"] = sh.reshape(1, self.EXP_C)

        # depthwise 3x3 s2 (+ folded BN) -- stays f32 (VPU path)
        w = _winit(ks[6], (3, 3, self.EXP_C), 9)
        sc, sh = _make_bn(ks[7], self.EXP_C)
        p["dw_w"] = (w * sc).reshape(9, self.EXP_C)
        p["dw_b"] = sh.reshape(1, self.EXP_C)

        # squeeze-and-excitation
        p["se_w1"] = _winit(ks[8], (self.EXP_C, self.SE_C), self.EXP_C).astype(jnp.bfloat16)
        p["se_b1"] = jnp.zeros((1, self.SE_C), jnp.float32)
        p["se_w2"] = _winit(ks[9], (self.SE_C, self.EXP_C), self.SE_C).astype(jnp.bfloat16)
        p["se_b2"] = jnp.zeros((1, self.EXP_C), jnp.float32)

        # 1x1 project (+ folded BN, no act)
        w = _winit(ks[10], (self.EXP_C, self.PROJ_C), self.EXP_C)
        sc, sh = _make_bn(ks[11], self.PROJ_C)
        p["proj_w"] = (w * sc).astype(jnp.bfloat16)
        p["proj_b"] = sh.reshape(1, self.PROJ_C)

        # 1x1 head conv (+ folded BN + SiLU)
        w = _winit(ks[12], (self.PROJ_C, self.HEAD_C), self.PROJ_C)
        sc, sh = _make_bn(ks[13], self.HEAD_C)
        p["headc_w"] = (w * sc).astype(jnp.bfloat16)
        p["headc_b"] = sh.reshape(1, self.HEAD_C)

        # backbone classifier
        p["cls_w"] = _winit(ks[14], (self.HEAD_C, self.CLS_C), self.HEAD_C).astype(jnp.bfloat16)
        p["cls_b"] = (0.01 * jax.random.normal(ks[15], (self.CLS_C,), jnp.float32)
                      ).reshape(1, self.CLS_C)

        # global average pool + classifier => backbone feature width is constant
        # w.r.t. input size (mirrors _get_conv_output_size() without a dummy run)
        self.base_output_size = self.CLS_C

        # attribute heads, fused into one lane-dense (padded to 128) matmul
        total = sum(self.num_classes)
        npad = max(self.LANE, ((total + self.LANE - 1) // self.LANE) * self.LANE)
        hk = jax.random.split(ks[16], 2 * len(self.num_classes))
        hws, hbs = [], []
        for idx, nc in enumerate(self.num_classes):
            hws.append(_winit(hk[2 * idx], (self.base_output_size, nc),
                              self.base_output_size))
            hbs.append(0.01 * jax.random.normal(hk[2 * idx + 1], (nc,), jnp.float32))
        w_all = jnp.concatenate(hws, axis=1)
        b_all = jnp.concatenate(hbs, axis=0)
        p["heads_w"] = jnp.pad(w_all, ((0, 0), (0, npad - total))).astype(jnp.bfloat16)
        p["heads_b"] = jnp.pad(b_all, (0, npad - total)).reshape(1, npad)
        self.npad = npad

        self.params = p
        self._fwd = jax.jit(self._forward)

    # --- forward: x = backbone(x); outputs = [head(x) for head in heads] ---
    def _forward(self, x_nchw):
        p = self.params
        x = jnp.transpose(x_nchw, (0, 2, 3, 1)).astype(jnp.float32)          # NHWC
        x = jnp.pad(x, ((0, 0), (0, 0), (0, 0), (0, self.IN_C_PAD - x.shape[-1])))

        # stage 1: stem conv 3x3 s2 + BN + SiLU (phase-split -> stride-1 taps)
        s = _stem_call(_phase_split(_pad_hw1(x)), p["stem_w"], p["stem_b"])
        # stage 2: FusedMBConv 3x3 s1 + BN + SiLU + residual, fused w/ 1x1 expand
        e = _fusedmb_expand_call(_pad_hw1(s), p["fused_w"], p["fused_b"],
                                 p["exp_w"], p["exp_b"])
        # stage 3: dw3x3 s2 + SE + project + head conv + pool + classifier + heads
        out = _tail_call(_phase_split(_pad_hw1(e)),
                         p["dw_w"], p["dw_b"], p["se_w1"], p["se_b1"],
                         p["se_w2"], p["se_b2"], p["proj_w"], p["proj_b"],
                         p["headc_w"], p["headc_b"], p["cls_w"], p["cls_b"],
                         p["heads_w"], p["heads_b"])[:, 0, :]
        outs, off = [], 0
        for nc in self.num_classes:
            outs.append(out[:, off:off + nc])
            off += nc
        return outs

    def __call__(self, x_nchw):
        assert x_nchw.shape[2] % 32 == 0 and x_nchw.shape[3] % 32 == 0
        return self._fwd(x_nchw)


# ----------------------------------------------------------------------------
if __name__ == "__main__":
    key = jax.random.PRNGKey(0)
    batch_size = 2
    x = jax.random.normal(key, (batch_size, 3, 32, 32), jnp.float32)  # NCHW like PyTorch

    model = ModifiedEffNetPallas(num_classes=[5, 7, 3], batch_size=batch_size,
                                 seed=42, img_hw=32)
    outputs = model(x)

    for out, nc in zip(outputs, model.num_classes):
        jax.block_until_ready(out)
        assert out.shape == (batch_size, nc), out.shape

    print("KERNEL_OK")
</pallas_src>

<mosaic_0001>
module attributes {stable_mosaic.version = 11 : i64} {
  func.func @_stem_kernel(%arg0: i32, %arg1: memref<1x4x17x17x8xf32, #tpu.memory_space<vmem>>, %arg2: memref<9x8x16xbf16, #tpu.memory_space<vmem>>, %arg3: memref<1x16xf32, #tpu.memory_space<vmem>>, %arg4: memref<1x16x16x16xf32, #tpu.memory_space<vmem>>) attributes {dimension_semantics = [#tpu.dimension_semantics<parallel>], iteration_bounds = array<i64: 2>, scalar_prefetch = 0 : i64, scratch_operands = 0 : i64, tpu.core_type = #tpu.core_type<tc>, window_params = [{transform_indices = @transform_0, window_bounds = array<i64: 1, 4, 17, 17, 8>}, {pipeline_mode = #tpu.pipeline_mode<synchronous>, transform_indices = @transform_1, window_bounds = array<i64: 9, 8, 16>}, {pipeline_mode = #tpu.pipeline_mode<synchronous>, transform_indices = @transform_2, window_bounds = array<i64: 1, 16>}, {transform_indices = @transform_3, window_bounds = array<i64: 1, 16, 16, 16>}]} {
    %cst = arith.constant 0.000000e+00 : f32
    %0 = vector.broadcast %cst : f32 to vector<256x16xf32>
    %c0 = arith.constant 0 : index
    %c0_0 = arith.constant 0 : index
    %c0_1 = arith.constant 0 : index
    %c0_2 = arith.constant 0 : index
    %c0_3 = arith.constant 0 : index
    %1 = vector.load %arg1[%c0, %c0_0, %c0_1, %c0_2, %c0_3] : memref<1x4x17x17x8xf32, #tpu.memory_space<vmem>>, vector<1x1x16x16x8xf32>
    %2 = vector.shape_cast %1 : vector<1x1x16x16x8xf32> to vector<16x16x8xf32>
    %3 = vector.shape_cast %2 : vector<16x16x8xf32> to vector<256x8xf32>
    %4 = arith.truncf %3 : vector<256x8xf32> to vector<256x8xbf16>
    %c0_4 = arith.constant 0 : index
    %c0_5 = arith.constant 0 : index
    %c0_6 = arith.constant 0 : index
    %5 = vector.load %arg2[%c0_4, %c0_5, %c0_6] : memref<9x8x16xbf16, #tpu.memory_space<vmem>>, vector<1x8x16xbf16>
    %6 = vector.shape_cast %5 : vector<1x8x16xbf16> to vector<8x16xbf16>
    %cst_7 = arith.constant dense<0.000000e+00> : vector<256x16xf32>
    %7 = tpu.matmul %4, %6, %cst_7 {dimension_numbers = #tpu.dot_dimension_numbers<[1], [0], [0], [1], [0, 0, 1, 1], [], []>} : vector<256x8xbf16>, vector<8x16xbf16>, vector<256x16xf32> -> vector<256x16xf32>
    %8 = arith.addf %0, %7 : vector<256x16xf32>
    %c0_8 = arith.constant 0 : index
    %c1 = arith.constant 1 : index
    %c0_9 = arith.constant 0 : index
    %c0_10 = arith.constant 0 : index
    %c0_11 = arith.constant 0 : index
    %9 = vector.load %arg1[%c0_8, %c1, %c0_9, %c0_10, %c0_11] : memref<1x4x17x17x8xf32, #tpu.memory_space<vmem>>, vector<1x1x16x16x8xf32>
    %10 = vector.shape_cast %9 : vector<1x1x16x16x8xf32> to vector<16x16x8xf32>
    %11 = vector.shape_cast %10 : vector<16x16x8xf32> to vector<256x8xf32>
    %12 = arith.truncf %11 : vector<256x8xf32> to vector<256x8xbf16>
    %c1_12 = arith.constant 1 : index
    %c0_13 = arith.constant 0 : index
    %c0_14 = arith.constant 0 : index
    %13 = vector.load %arg2[%c1_12, %c0_13, %c0_14] : memref<9x8x16xbf16, #tpu.memory_space<vmem>>, vector<1x8x16xbf16>
    %14 = vector.shape_cast %13 : vector<1x8x16xbf16> to vector<8x16xbf16>
    %cst_15 = arith.constant dense<0.000000e+00> : vector<256x16xf32>
    %15 = tpu.matmul %12, %14, %cst_15 {dimension_numbers = #tpu.dot_dimension_numbers<[1], [0], [0], [1], [0, 0, 1, 1], [], []>} : vector<256x8xbf16>, vector<8x16xbf16>, vector<256x16xf32> -> vector<256x16xf32>
    %16 = arith.addf %8, %15 : vector<256x16xf32>
    %c0_16 = arith.constant 0 : index
    %c0_17 = arith.constant 0 : index
    %c0_18 = arith.constant 0 : index
    %c1_19 = arith.constant 1 : index
    %c0_20 = arith.constant 0 : index
    %17 = vector.load %arg1[%c0_16, %c0_17, %c0_18, %c1_19, %c0_20] : memref<1x4x17x17x8xf32, #tpu.memory_space<vmem>>, vector<1x1x16x16x8xf32>
    %18 = vector.shape_cast %17 : vector<1x1x16x16x8xf32> to vector<16x16x8xf32>
    %19 = vector.shape_cast %18 : vector<16x16x8xf32> to vector<256x8xf32>
    %20 = arith.truncf %19 : vector<256x8xf32> to vector<256x8xbf16>
    %c2 = arith.constant 2 : index
    %c0_21 = arith.constant 0 : index
    %c0_22 = arith.constant 0 : index
    %21 = vector.load %arg2[%c2, %c0_21, %c0_22] : memref<9x8x16xbf16, #tpu.memory_space<vmem>>, vector<1x8x16xbf16>
    %22 = vector.shape_cast %21 : vector<1x8x16xbf16> to vector<8x16xbf16>
    %cst_23 = arith.constant dense<0.000000e+00> : vector<256x16xf32>
    %23 = tpu.matmul %20, %22, %cst_23 {dimension_numbers = #tpu.dot_dimension_numbers<[1], [0], [0], [1], [0, 0, 1, 1], [], []>} : vector<256x8xbf16>, vector<8x16xbf16>, vector<256x16xf32> -> vector<256x16xf32>
    %24 = arith.addf %16, %23 : vector<256x16xf32>
    %c0_24 = arith.constant 0 : index
    %c2_25 = arith.constant 2 : index
    %c0_26 = arith.constant 0 : index
    %c0_27 = arith.constant 0 : index
    %c0_28 = arith.constant 0 : index
    %25 = vector.load %arg1[%c0_24, %c2_25, %c0_26, %c0_27, %c0_28] : memref<1x4x17x17x8xf32, #tpu.memory_space<vmem>>, vector<1x1x16x16x8xf32>
    %26 = vector.shape_cast %25 : vector<1x1x16x16x8xf32> to vector<16x16x8xf32>
    %27 = vector.shape_cast %26 : vector<16x16x8xf32> to vector<256x8xf32>
    %28 = arith.truncf %27 : vector<256x8xf32> to vector<256x8xbf16>
    %c3 = arith.constant 3 : index
    %c0_29 = arith.constant 0 : index
    %c0_30 = arith.constant 0 : index
    %29 = vector.load %arg2[%c3, %c0_29, %c0_30] : memref<9x8x16xbf16, #tpu.memory_space<vmem>>, vector<1x8x16xbf16>
    %30 = vector.shape_cast %29 : vector<1x8x16xbf16> to vector<8x16xbf16>
    %cst_31 = arith.constant dense<0.000000e+00> : vector<256x16xf32>
    %31 = tpu.matmul %28, %30, %cst_31 {dimension_numbers = #tpu.dot_dimension_numbers<[1], [0], [0], [1], [0, 0, 1, 1], [], []>} : vector<256x8xbf16>, vector<8x16xbf16>, vector<256x16xf32> -> vector<256x16xf32>
    %32 = arith.addf %24, %31 : vector<256x16xf32>
    %c0_32 = arith.constant 0 : index
    %c3_33 = arith.constant 3 : index
    %c0_34 = arith.constant 0 : index
    %c0_35 = arith.constant 0 : index
    %c0_36 = arith.constant 0 : index
    %33 = vector.load %arg1[%c0_32, %c3_33, %c0_34, %c0_35, %c0_36] : memref<1x4x17x17x8xf32, #tpu.memory_space<vmem>>, vector<1x1x16x16x8xf32>
    %34 = vector.shape_cast %33 : vector<1x1x16x16x8xf32> to vector<16x16x8xf32>
    %35 = vector.shape_cast %34 : vector<16x16x8xf32> to vector<256x8xf32>
    %36 = arith.truncf %35 : vector<256x8xf32> to vector<256x8xbf16>
    %c4 = arith.constant 4 : index
    %c0_37 = arith.constant 0 : index
    %c0_38 = arith.constant 0 : index
    %37 = vector.load %arg2[%c4, %c0_37, %c0_38] : memref<9x8x16xbf16, #tpu.memory_space<vmem>>, vector<1x8x16xbf16>
    %38 = vector.shape_cast %37 : vector<1x8x16xbf16> to vector<8x16xbf16>
    %cst_39 = arith.constant dense<0.000000e+00> : vector<256x16xf32>
    %39 = tpu.matmul %36, %38, %cst_39 {dimension_numbers = #tpu.dot_dimension_numbers<[1], [0], [0], [1], [0, 0, 1, 1], [], []>} : vector<256x8xbf16>, vector<8x16xbf16>, vector<256x16xf32> -> vector<256x16xf32>
    %40 = arith.addf %32, %39 : vector<256x16xf32>
    %c0_40 = arith.constant 0 : index
    %c2_41 = arith.constant 2 : index
    %c0_42 = arith.constant 0 : index
    %c1_43 = arith.constant 1 : index
    %c0_44 = arith.constant 0 : index
    %41 = vector.load %arg1[%c0_40, %c2_41, %c0_42, %c1_43, %c0_44] : memref<1x4x17x17x8xf32, #tpu.memory_space<vmem>>, vector<1x1x16x16x8xf32>
    %42 = vector.shape_cast %41 : vector<1x1x16x16x8xf32> to vector<16x16x8xf32>
    %43 = vector.shape_cast %42 : vector<16x16x8xf32> to vector<256x8xf32>
    %44 = arith.truncf %43 : vector<256x8xf32> to vector<256x8xbf16>
    %c5 = arith.constant 5 : index
    %c0_45 = arith.constant 0 : index
    %c0_46 = arith.constant 0 : index
    %45 = vector.load %arg2[%c5, %c0_45, %c0_46] : memref<9x8x16xbf16, #tpu.memory_space<vmem>>, vector<1x8x16xbf16>
    %46 = vector.shape_cast %45 : vector<1x8x16xbf16> to vector<8x16xbf16>
    %cst_47 = arith.constant dense<0.000000e+00> : vector<256x16xf32>
    %47 = tpu.matmul %44, %46, %cst_47 {dimension_numbers = #tpu.dot_dimension_numbers<[1], [0], [0], [1], [0, 0, 1, 1], [], []>} : vector<256x8xbf16>, vector<8x16xbf16>, vector<256x16xf32> -> vector<256x16xf32>
    %48 = arith.addf %40, %47 : vector<256x16xf32>
    %c0_48 = arith.constant 0 : index
    %c0_49 = arith.constant 0 : index
    %c1_50 = arith.constant 1 : index
    %c0_51 = arith.constant 0 : index
    %c0_52 = arith.constant 0 : index
    %49 = vector.load %arg1[%c0_48, %c0_49, %c1_50, %c0_51, %c0_52] : memref<1x4x17x17x8xf32, #tpu.memory_space<vmem>>, vector<1x1x16x16x8xf32>
    %50 = vector.shape_cast %49 : vector<1x1x16x16x8xf32> to vector<16x16x8xf32>
    %51 = vector.shape_cast %50 : vector<16x16x8xf32> to vector<256x8xf32>
    %52 = arith.truncf %51 : vector<256x8xf32> to vector<256x8xbf16>
    %c6 = arith.constant 6 : index
    %c0_53 = arith.constant 0 : index
    %c0_54 = arith.constant 0 : index
    %53 = vector.load %arg2[%c6, %c0_53, %c0_54] : memref<9x8x16xbf16, #tpu.memory_space<vmem>>, vector<1x8x16xbf16>
    %54 = vector.shape_cast %53 : vector<1x8x16xbf16> to vector<8x16xbf16>
    %cst_55 = arith.constant dense<0.000000e+00> : vector<256x16xf32>
    %55 = tpu.matmul %52, %54, %cst_55 {dimension_numbers = #tpu.dot_dimension_numbers<[1], [0], [0], [1], [0, 0, 1, 1], [], []>} : vector<256x8xbf16>, vector<8x16xbf16>, vector<256x16xf32> -> vector<256x16xf32>
    %56 = arith.addf %48, %55 : vector<256x16xf32>
    %c0_56 = arith.constant 0 : index
    %c1_57 = arith.constant 1 : index
    %c1_58 = arith.constant 1 : index
    %c0_59 = arith.constant 0 : index
    %c0_60 = arith.constant 0 : index
    %57 = vector.load %arg1[%c0_56, %c1_57, %c1_58, %c0_59, %c0_60] : memref<1x4x17x17x8xf32, #tpu.memory_space<vmem>>, vector<1x1x16x16x8xf32>
    %58 = vector.shape_cast %57 : vector<1x1x16x16x8xf32> to vector<16x16x8xf32>
    %59 = vector.shape_cast %58 : vector<16x16x8xf32> to vector<256x8xf32>
    %60 = arith.truncf %59 : vector<256x8xf32> to vector<256x8xbf16>
    %c7 = arith.constant 7 : index
    %c0_61 = arith.constant 0 : index
    %c0_62 = arith.constant 0 : index
    %61 = vector.load %arg2[%c7, %c0_61, %c0_62] : memref<9x8x16xbf16, #tpu.memory_space<vmem>>, vector<1x8x16xbf16>
    %62 = vector.shape_cast %61 : vector<1x8x16xbf16> to vector<8x16xbf16>
    %cst_63 = arith.constant dense<0.000000e+00> : vector<256x16xf32>
    %63 = tpu.matmul %60, %62, %cst_63 {dimension_numbers = #tpu.dot_dimension_numbers<[1], [0], [0], [1], [0, 0, 1, 1], [], []>} : vector<256x8xbf16>, vector<8x16xbf16>, vector<256x16xf32> -> vector<256x16xf32>
    %64 = arith.addf %56, %63 : vector<256x16xf32>
    %c0_64 = arith.constant 0 : index
    %c0_65 = arith.constant 0 : index
    %c1_66 = arith.constant 1 : index
    %c1_67 = arith.constant 1 : index
    %c0_68 = arith.constant 0 : index
    %65 = vector.load %arg1[%c0_64, %c0_65, %c1_66, %c1_67, %c0_68] : memref<1x4x17x17x8xf32, #tpu.memory_space<vmem>>, vector<1x1x16x16x8xf32>
    %66 = vector.shape_cast %65 : vector<1x1x16x16x8xf32> to vector<16x16x8xf32>
    %67 = vector.shape_cast %66 : vector<16x16x8xf32> to vector<256x8xf32>
    %68 = arith.truncf %67 : vector<256x8xf32> to vector<256x8xbf16>
    %c8 = arith.constant 8 : index
    %c0_69 = arith.constant 0 : index
    %c0_70 = arith.constant 0 : index
    %69 = vector.load %arg2[%c8, %c0_69, %c0_70] : memref<9x8x16xbf16, #tpu.memory_space<vmem>>, vector<1x8x16xbf16>
    %70 = vector.shape_cast %69 : vector<1x8x16xbf16> to vector<8x16xbf16>
    %cst_71 = arith.constant dense<0.000000e+00> : vector<256x16xf32>
    %71 = tpu.matmul %68, %70, %cst_71 {dimension_numbers = #tpu.dot_dimension_numbers<[1], [0], [0], [1], [0, 0, 1, 1], [], []>} : vector<256x8xbf16>, vector<8x16xbf16>, vector<256x16xf32> -> vector<256x16xf32>
    %72 = arith.addf %64, %71 : vector<256x16xf32>
    %c0_72 = arith.constant 0 : index
    %c0_73 = arith.constant 0 : index
    %73 = vector.load %arg3[%c0_72, %c0_73] : memref<1x16xf32, #tpu.memory_space<vmem>>, vector<1x16xf32>
    %74 = vector.broadcast %73 : vector<1x16xf32> to vector<256x16xf32>
    %75 = arith.addf %72, %74 : vector<256x16xf32>
    %cst_74 = arith.constant 0.000000e+00 : f32
    %76 = vector.broadcast %cst_74 : f32 to vector<256x16xf32>
    %77 = arith.subf %76, %75 : vector<256x16xf32>
    %78 = math.exp %77 : vector<256x16xf32>
    %cst_75 = arith.constant 1.000000e+00 : f32
    %79 = vector.broadcast %cst_75 : f32 to vector<256x16xf32>
    %80 = arith.addf %79, %78 : vector<256x16xf32>
    %81 = tpu.reciprocal %80 {approx = true} : vector<256x16xf32> -> vector<256x16xf32>
    %82 = arith.mulf %75, %81 : vector<256x16xf32>
    %83 = vector.shape_cast %82 : vector<256x16xf32> to vector<1x16x16x16xf32>
    %c0_76 = arith.constant 0 : index
    %c0_77 = arith.constant 0 : index
    %c0_78 = arith.constant 0 : index
    %c0_79 = arith.constant 0 : index
    %84 = vector.load %arg4[%c0_76, %c0_77, %c0_78, %c0_79] : memref<1x16x16x16xf32, #tpu.memory_space<vmem>>, vector<1x16x16x16xf32>
    tpu.vector_store %arg4[%c0_76, %c0_77, %c0_78, %c0_79], %83 {strides = array<i32>} : memref<1x16x16x16xf32, #tpu.memory_space<vmem>>, vector<1x16x16x16xf32>,
    return
  }
  func.func @transform_0(%arg0: i32) -> (i32, i32, i32, i32, i32) {
    %c0_i32 = arith.constant 0 : i32
    %c0_i32_0 = arith.constant 0 : i32
    %c0_i32_1 = arith.constant 0 : i32
    %c0_i32_2 = arith.constant 0 : i32
    %c0_i32_3 = arith.constant 0 : i32
    return %arg0, %c0_i32, %c0_i32_0, %c0_i32_1, %c0_i32_2 : i32, i32, i32, i32, i32
  }
  func.func @transform_1(%arg0: i32) -> (i32, i32, i32) {
    %c0_i32 = arith.constant 0 : i32
    %c0_i32_0 = arith.constant 0 : i32
    %c0_i32_1 = arith.constant 0 : i32
    %c0_i32_2 = arith.constant 0 : i32
    return %c0_i32, %c0_i32_0, %c0_i32_1 : i32, i32, i32
  }
  func.func @transform_2(%arg0: i32) -> (i32, i32) {
    %c0_i32 = arith.constant 0 : i32
    %c0_i32_0 = arith.constant 0 : i32
    %c0_i32_1 = arith.constant 0 : i32
    return %c0_i32, %c0_i32_0 : i32, i32
  }
  func.func @transform_3(%arg0: i32) -> (i32, i32, i32, i32) {
    %c0_i32 = arith.constant 0 : i32
    %c0_i32_0 = arith.constant 0 : i32
    %c0_i32_1 = arith.constant 0 : i32
    %c0_i32_2 = arith.constant 0 : i32
    return %arg0, %c0_i32, %c0_i32_0, %c0_i32_1 : i32, i32, i32, i32
  }
}

module attributes {stable_mosaic.version = 11 : i64} {
  func.func @_fusedmb_expand_kernel(%arg0: i32, %arg1: memref<1x18x18x16xf32, #tpu.memory_space<vmem>>, %arg2: memref<9x16x16xbf16, #tpu.memory_space<vmem>>, %arg3: memref<1x16xf32, #tpu.memory_space<vmem>>, %arg4: memref<16x64xbf16, #tpu.memory_space<vmem>>, %arg5: memref<1x64xf32, #tpu.memory_space<vmem>>, %arg6: memref<1x16x16x64xf32, #tpu.memory_space<vmem>>) attributes {dimension_semantics = [#tpu.dimension_semantics<parallel>], iteration_bounds = array<i64: 2>, scalar_prefetch = 0 : i64, scratch_operands = 0 : i64, tpu.core_type = #tpu.core_type<tc>, window_params = [{transform_indices = @transform_0, window_bounds = array<i64: 1, 18, 18, 16>}, {pipeline_mode = #tpu.pipeline_mode<synchronous>, transform_indices = @transform_1, window_bounds = array<i64: 9, 16, 16>}, {pipeline_mode = #tpu.pipeline_mode<synchronous>, transform_indices = @transform_2, window_bounds = array<i64: 1, 16>}, {pipeline_mode = #tpu.pipeline_mode<synchronous>, transform_indices = @transform_3, window_bounds = array<i64: 16, 64>}, {pipeline_mode = #tpu.pipeline_mode<synchronous>, transform_indices = @transform_4, window_bounds = array<i64: 1, 64>}, {transform_indices = @transform_5, window_bounds = array<i64: 1, 16, 16, 64>}]} {
    %cst = arith.constant 0.000000e+00 : f32
    %0 = vector.broadcast %cst : f32 to vector<256x16xf32>
    %c0 = arith.constant 0 : index
    %c0_0 = arith.constant 0 : index
    %c0_1 = arith.constant 0 : index
    %c0_2 = arith.constant 0 : index
    %1 = vector.load %arg1[%c0, %c0_0, %c0_1, %c0_2] : memref<1x18x18x16xf32, #tpu.memory_space<vmem>>, vector<1x16x16x16xf32>
    %2 = vector.shape_cast %1 : vector<1x16x16x16xf32> to vector<16x16x16xf32>
    %3 = vector.shape_cast %2 : vector<16x16x16xf32> to vector<256x16xf32>
    %4 = arith.truncf %3 : vector<256x16xf32> to vector<256x16xbf16>
    %c0_3 = arith.constant 0 : index
    %c0_4 = arith.constant 0 : index
    %c0_5 = arith.constant 0 : index
    %5 = vector.load %arg2[%c0_3, %c0_4, %c0_5] : memref<9x16x16xbf16, #tpu.memory_space<vmem>>, vector<1x16x16xbf16>
    %6 = vector.shape_cast %5 : vector<1x16x16xbf16> to vector<16x16xbf16>
    %cst_6 = arith.constant dense<0.000000e+00> : vector<256x16xf32>
    %7 = tpu.matmul %4, %6, %cst_6 {dimension_numbers = #tpu.dot_dimension_numbers<[1], [0], [0], [1], [0, 0, 1, 1], [], []>} : vector<256x16xbf16>, vector<16x16xbf16>, vector<256x16xf32> -> vector<256x16xf32>
    %8 = arith.addf %0, %7 : vector<256x16xf32>
    %c0_7 = arith.constant 0 : index
    %c0_8 = arith.constant 0 : index
    %c1 = arith.constant 1 : index
    %c0_9 = arith.constant 0 : index
    %9 = vector.load %arg1[%c0_7, %c0_8, %c1, %c0_9] : memref<1x18x18x16xf32, #tpu.memory_space<vmem>>, vector<1x16x16x16xf32>
    %10 = vector.shape_cast %9 : vector<1x16x16x16xf32> to vector<16x16x16xf32>
    %11 = vector.shape_cast %10 : vector<16x16x16xf32> to vector<256x16xf32>
    %12 = arith.truncf %11 : vector<256x16xf32> to vector<256x16xbf16>
    %c1_10 = arith.constant 1 : index
    %c0_11 = arith.constant 0 : index
    %c0_12 = arith.constant 0 : index
    %13 = vector.load %arg2[%c1_10, %c0_11, %c0_12] : memref<9x16x16xbf16, #tpu.memory_space<vmem>>, vector<1x16x16xbf16>
    %14 = vector.shape_cast %13 : vector<1x16x16xbf16> to vector<16x16xbf16>
    %cst_13 = arith.constant dense<0.000000e+00> : vector<256x16xf32>
    %15 = tpu.matmul %12, %14, %cst_13 {dimension_numbers = #tpu.dot_dimension_numbers<[1], [0], [0], [1], [0, 0, 1, 1], [], []>} : vector<256x16xbf16>, vector<16x16xbf16>, vector<256x16xf32> -> vector<256x16xf32>
    %16 = arith.addf %8, %15 : vector<256x16xf32>
    %c0_14 = arith.constant 0 : index
    %c0_15 = arith.constant 0 : index
    %c2 = arith.constant 2 : index
    %c0_16 = arith.constant 0 : index
    %17 = vector.load %arg1[%c0_14, %c0_15, %c2, %c0_16] : memref<1x18x18x16xf32, #tpu.memory_space<vmem>>, vector<1x16x16x16xf32>
    %18 = vector.shape_cast %17 : vector<1x16x16x16xf32> to vector<16x16x16xf32>
    %19 = vector.shape_cast %18 : vector<16x16x16xf32> to vector<256x16xf32>
    %20 = arith.truncf %19 : vector<256x16xf32> to vector<256x16xbf16>
    %c2_17 = arith.constant 2 : index
    %c0_18 = arith.constant 0 : index
    %c0_19 = arith.constant 0 : index
    %21 = vector.load %arg2[%c2_17, %c0_18, %c0_19] : memref<9x16x16xbf16, #tpu.memory_space<vmem>>, vector<1x16x16xbf16>
    %22 = vector.shape_cast %21 : vector<1x16x16xbf16> to vector<16x16xbf16>
    %cst_20 = arith.constant dense<0.000000e+00> : vector<256x16xf32>
    %23 = tpu.matmul %20, %22, %cst_20 {dimension_numbers = #tpu.dot_dimension_numbers<[1], [0], [0], [1], [0, 0, 1, 1], [], []>} : vector<256x16xbf16>, vector<16x16xbf16>, vector<256x16xf32> -> vector<256x16xf32>
    %24 = arith.addf %16, %23 : vector<256x16xf32>
    %c0_21 = arith.constant 0 : index
    %c1_22 = arith.constant 1 : index
    %c0_23 = arith.constant 0 : index
    %c0_24 = arith.constant 0 : index
    %25 = vector.load %arg1[%c0_21, %c1_22, %c0_23, %c0_24] : memref<1x18x18x16xf32, #tpu.memory_space<vmem>>, vector<1x16x16x16xf32>
    %26 = vector.shape_cast %25 : vector<1x16x16x16xf32> to vector<16x16x16xf32>
    %27 = vector.shape_cast %26 : vector<16x16x16xf32> to vector<256x16xf32>
    %28 = arith.truncf %27 : vector<256x16xf32> to vector<256x16xbf16>
    %c3 = arith.constant 3 : index
    %c0_25 = arith.constant 0 : index
    %c0_26 = arith.constant 0 : index
    %29 = vector.load %arg2[%c3, %c0_25, %c0_26] : memref<9x16x16xbf16, #tpu.memory_space<vmem>>, vector<1x16x16xbf16>
    %30 = vector.shape_cast %29 : vector<1x16x16xbf16> to vector<16x16xbf16>
    %cst_27 = arith.constant dense<0.000000e+00> : vector<256x16xf32>
    %31 = tpu.matmul %28, %30, %cst_27 {dimension_numbers = #tpu.dot_dimension_numbers<[1], [0], [0], [1], [0, 0, 1, 1], [], []>} : vector<256x16xbf16>, vector<16x16xbf16>, vector<256x16xf32> -> vector<256x16xf32>
    %32 = arith.addf %24, %31 : vector<256x16xf32>
    %c0_28 = arith.constant 0 : index
    %c1_29 = arith.constant 1 : index
    %c1_30 = arith.constant 1 : index
    %c0_31 = arith.constant 0 : index
    %33 = vector.load %arg1[%c0_28, %c1_29, %c1_30, %c0_31] : memref<1x18x18x16xf32, #tpu.memory_space<vmem>>, vector<1x16x16x16xf32>
    %34 = vector.shape_cast %33 : vector<1x16x16x16xf32> to vector<16x16x16xf32>
    %35 = vector.shape_cast %34 : vector<16x16x16xf32> to vector<256x16xf32>
    %36 = arith.truncf %35 : vector<256x16xf32> to vector<256x16xbf16>
    %c4 = arith.constant 4 : index
    %c0_32 = arith.constant 0 : index
    %c0_33 = arith.constant 0 : index
    %37 = vector.load %arg2[%c4, %c0_32, %c0_33] : memref<9x16x16xbf16, #tpu.memory_space<vmem>>, vector<1x16x16xbf16>
    %38 = vector.shape_cast %37 : vector<1x16x16xbf16> to vector<16x16xbf16>
    %cst_34 = arith.constant dense<0.000000e+00> : vector<256x16xf32>
    %39 = tpu.matmul %36, %38, %cst_34 {dimension_numbers = #tpu.dot_dimension_numbers<[1], [0], [0], [1], [0, 0, 1, 1], [], []>} : vector<256x16xbf16>, vector<16x16xbf16>, vector<256x16xf32> -> vector<256x16xf32>
    %40 = arith.addf %32, %39 : vector<256x16xf32>
    %c0_35 = arith.constant 0 : index
    %c1_36 = arith.constant 1 : index
    %c2_37 = arith.constant 2 : index
    %c0_38 = arith.constant 0 : index
    %41 = vector.load %arg1[%c0_35, %c1_36, %c2_37, %c0_38] : memref<1x18x18x16xf32, #tpu.memory_space<vmem>>, vector<1x16x16x16xf32>
    %42 = vector.shape_cast %41 : vector<1x16x16x16xf32> to vector<16x16x16xf32>
    %43 = vector.shape_cast %42 : vector<16x16x16xf32> to vector<256x16xf32>
    %44 = arith.truncf %43 : vector<256x16xf32> to vector<256x16xbf16>
    %c5 = arith.constant 5 : index
    %c0_39 = arith.constant 0 : index
    %c0_40 = arith.constant 0 : index
    %45 = vector.load %arg2[%c5, %c0_39, %c0_40] : memref<9x16x16xbf16, #tpu.memory_space<vmem>>, vector<1x16x16xbf16>
    %46 = vector.shape_cast %45 : vector<1x16x16xbf16> to vector<16x16xbf16>
    %cst_41 = arith.constant dense<0.000000e+00> : vector<256x16xf32>
    %47 = tpu.matmul %44, %46, %cst_41 {dimension_numbers = #tpu.dot_dimension_numbers<[1], [0], [0], [1], [0, 0, 1, 1], [], []>} : vector<256x16xbf16>, vector<16x16xbf16>, vector<256x16xf32> -> vector<256x16xf32>
    %48 = arith.addf %40, %47 : vector<256x16xf32>
    %c0_42 = arith.constant 0 : index
    %c2_43 = arith.constant 2 : index
    %c0_44 = arith.constant 0 : index
    %c0_45 = arith.constant 0 : index
    %49 = vector.load %arg1[%c0_42, %c2_43, %c0_44, %c0_45] : memref<1x18x18x16xf32, #tpu.memory_space<vmem>>, vector<1x16x16x16xf32>
    %50 = vector.shape_cast %49 : vector<1x16x16x16xf32> to vector<16x16x16xf32>
    %51 = vector.shape_cast %50 : vector<16x16x16xf32> to vector<256x16xf32>
    %52 = arith.truncf %51 : vector<256x16xf32> to vector<256x16xbf16>
    %c6 = arith.constant 6 : index
    %c0_46 = arith.constant 0 : index
    %c0_47 = arith.constant 0 : index
    %53 = vector.load %arg2[%c6, %c0_46, %c0_47] : memref<9x16x16xbf16, #tpu.memory_space<vmem>>, vector<1x16x16xbf16>
    %54 = vector.shape_cast %53 : vector<1x16x16xbf16> to vector<16x16xbf16>
    %cst_48 = arith.constant dense<0.000000e+00> : vector<256x16xf32>
    %55 = tpu.matmul %52, %54, %cst_48 {dimension_numbers = #tpu.dot_dimension_numbers<[1], [0], [0], [1], [0, 0, 1, 1], [], []>} : vector<256x16xbf16>, vector<16x16xbf16>, vector<256x16xf32> -> vector<256x16xf32>
    %56 = arith.addf %48, %55 : vector<256x16xf32>
    %c0_49 = arith.constant 0 : index
    %c2_50 = arith.constant 2 : index
    %c1_51 = arith.constant 1 : index
    %c0_52 = arith.constant 0 : index
    %57 = vector.load %arg1[%c0_49, %c2_50, %c1_51, %c0_52] : memref<1x18x18x16xf32, #tpu.memory_space<vmem>>, vector<1x16x16x16xf32>
    %58 = vector.shape_cast %57 : vector<1x16x16x16xf32> to vector<16x16x16xf32>
    %59 = vector.shape_cast %58 : vector<16x16x16xf32> to vector<256x16xf32>
    %60 = arith.truncf %59 : vector<256x16xf32> to vector<256x16xbf16>
    %c7 = arith.constant 7 : index
    %c0_53 = arith.constant 0 : index
    %c0_54 = arith.constant 0 : index
    %61 = vector.load %arg2[%c7, %c0_53, %c0_54] : memref<9x16x16xbf16, #tpu.memory_space<vmem>>, vector<1x16x16xbf16>
    %62 = vector.shape_cast %61 : vector<1x16x16xbf16> to vector<16x16xbf16>
    %cst_55 = arith.constant dense<0.000000e+00> : vector<256x16xf32>
    %63 = tpu.matmul %60, %62, %cst_55 {dimension_numbers = #tpu.dot_dimension_numbers<[1], [0], [0], [1], [0, 0, 1, 1], [], []>} : vector<256x16xbf16>, vector<16x16xbf16>, vector<256x16xf32> -> vector<256x16xf32>
    %64 = arith.addf %56, %63 : vector<256x16xf32>
    %c0_56 = arith.constant 0 : index
    %c2_57 = arith.constant 2 : index
    %c2_58 = arith.constant 2 : index
    %c0_59 = arith.constant 0 : index
    %65 = vector.load %arg1[%c0_56, %c2_57, %c2_58, %c0_59] : memref<1x18x18x16xf32, #tpu.memory_space<vmem>>, vector<1x16x16x16xf32>
    %66 = vector.shape_cast %65 : vector<1x16x16x16xf32> to vector<16x16x16xf32>
    %67 = vector.shape_cast %66 : vector<16x16x16xf32> to vector<256x16xf32>
    %68 = arith.truncf %67 : vector<256x16xf32> to vector<256x16xbf16>
    %c8 = arith.constant 8 : index
    %c0_60 = arith.constant 0 : index
    %c0_61 = arith.constant 0 : index
    %69 = vector.load %arg2[%c8, %c0_60, %c0_61] : memref<9x16x16xbf16, #tpu.memory_space<vmem>>, vector<1x16x16xbf16>
    %70 = vector.shape_cast %69 : vector<1x16x16xbf16> to vector<16x16xbf16>
    %cst_62 = arith.constant dense<0.000000e+00> : vector<256x16xf32>
    %71 = tpu.matmul %68, %70, %cst_62 {dimension_numbers = #tpu.dot_dimension_numbers<[1], [0], [0], [1], [0, 0, 1, 1], [], []>} : vector<256x16xbf16>, vector<16x16xbf16>, vector<256x16xf32> -> vector<256x16xf32>
    %72 = arith.addf %64, %71 : vector<256x16xf32>
    %c0_63 = arith.constant 0 : index
    %c0_64 = arith.constant 0 : index
    %73 = vector.load %arg3[%c0_63, %c0_64] : memref<1x16xf32, #tpu.memory_space<vmem>>, vector<1x16xf32>
    %74 = vector.broadcast %73 : vector<1x16xf32> to vector<256x16xf32>
    %75 = arith.addf %72, %74 : vector<256x16xf32>
    %cst_65 = arith.constant 0.000000e+00 : f32
    %76 = vector.broadcast %cst_65 : f32 to vector<256x16xf32>
    %77 = arith.subf %76, %75 : vector<256x16xf32>
    %78 = math.exp %77 : vector<256x16xf32>
    %cst_66 = arith.constant 1.000000e+00 : f32
    %79 = vector.broadcast %cst_66 : f32 to vector<256x16xf32>
    %80 = arith.addf %79, %78 : vector<256x16xf32>
    %81 = tpu.reciprocal %80 {approx = true} : vector<256x16xf32> -> vector<256x16xf32>
    %82 = arith.mulf %75, %81 : vector<256x16xf32>
    %c0_67 = arith.constant 0 : index
    %c1_68 = arith.constant 1 : index
    %c1_69 = arith.constant 1 : index
    %c0_70 = arith.constant 0 : index
    %83 = vector.load %arg1[%c0_67, %c1_68, %c1_69, %c0_70] : memref<1x18x18x16xf32, #tpu.memory_space<vmem>>, vector<1x16x16x16xf32>
    %84 = vector.shape_cast %83 : vector<1x16x16x16xf32> to vector<16x16x16xf32>
    %85 = vector.shape_cast %84 : vector<16x16x16xf32> to vector<256x16xf32>
    %86 = arith.addf %82, %85 : vector<256x16xf32>
    %87 = arith.truncf %86 : vector<256x16xf32> to vector<256x16xbf16>
    %c0_71 = arith.constant 0 : index
    %c0_72 = arith.constant 0 : index
    %88 = vector.load %arg4[%c0_71, %c0_72] : memref<16x64xbf16, #tpu.memory_space<vmem>>, vector<16x64xbf16>
    %cst_73 = arith.constant dense<0.000000e+00> : vector<256x64xf32>
    %89 = tpu.matmul %87, %88, %cst_73 {dimension_numbers = #tpu.dot_dimension_numbers<[1], [0], [0], [1], [0, 0, 1, 1], [], []>} : vector<256x16xbf16>, vector<16x64xbf16>, vector<256x64xf32> -> vector<256x64xf32>
    %c0_74 = arith.constant 0 : index
    %c0_75 = arith.constant 0 : index
    %90 = vector.load %arg5[%c0_74, %c0_75] : memref<1x64xf32, #tpu.memory_space<vmem>>, vector<1x64xf32>
    %91 = vector.broadcast %90 : vector<1x64xf32> to vector<256x64xf32>
    %92 = arith.addf %89, %91 : vector<256x64xf32>
    %cst_76 = arith.constant 0.000000e+00 : f32
    %93 = vector.broadcast %cst_76 : f32 to vector<256x64xf32>
    %94 = arith.subf %93, %92 : vector<256x64xf32>
    %95 = math.exp %94 : vector<256x64xf32>
    %cst_77 = arith.constant 1.000000e+00 : f32
    %96 = vector.broadcast %cst_77 : f32 to vector<256x64xf32>
    %97 = arith.addf %96, %95 : vector<256x64xf32>
    %98 = tpu.reciprocal %97 {approx = true} : vector<256x64xf32> -> vector<256x64xf32>
    %99 = arith.mulf %92, %98 : vector<256x64xf32>
    %100 = vector.shape_cast %99 : vector<256x64xf32> to vector<1x16x16x64xf32>
    %c0_78 = arith.constant 0 : index
    %c0_79 = arith.constant 0 : index
    %c0_80 = arith.constant 0 : index
    %c0_81 = arith.constant 0 : index
    %101 = vector.load %arg6[%c0_78, %c0_79, %c0_80, %c0_81] : memref<1x16x16x64xf32, #tpu.memory_space<vmem>>, vector<1x16x16x64xf32>
    tpu.vector_store %arg6[%c0_78, %c0_79, %c0_80, %c0_81], %100 {strides = array<i32>} : memref<1x16x16x64xf32, #tpu.memory_space<vmem>>, vector<1x16x16x64xf32>,
    return
  }
  func.func @transform_0(%arg0: i32) -> (i32, i32, i32, i32) {
    %c0_i32 = arith.constant 0 : i32
    %c0_i32_0 = arith.constant 0 : i32
    %c0_i32_1 = arith.constant 0 : i32
    %c0_i32_2 = arith.constant 0 : i32
    return %arg0, %c0_i32, %c0_i32_0, %c0_i32_1 : i32, i32, i32, i32
  }
  func.func @transform_1(%arg0: i32) -> (i32, i32, i32) {
    %c0_i32 = arith.constant 0 : i32
    %c0_i32_0 = arith.constant 0 : i32
    %c0_i32_1 = arith.constant 0 : i32
    %c0_i32_2 = arith.constant 0 : i32
    return %c0_i32, %c0_i32_0, %c0_i32_1 : i32, i32, i32
  }
  func.func @transform_2(%arg0: i32) -> (i32, i32) {
    %c0_i32 = arith.constant 0 : i32
    %c0_i32_0 = arith.constant 0 : i32
    %c0_i32_1 = arith.constant 0 : i32
    return %c0_i32, %c0_i32_0 : i32, i32
  }
  func.func @transform_3(%arg0: i32) -> (i32, i32) {
    %c0_i32 = arith.constant 0 : i32
    %c0_i32_0 = arith.constant 0 : i32
    %c0_i32_1 = arith.constant 0 : i32
    return %c0_i32, %c0_i32_0 : i32, i32
  }
  func.func @transform_4(%arg0: i32) -> (i32, i32) {
    %c0_i32 = arith.constant 0 : i32
    %c0_i32_0 = arith.constant 0 : i32
    %c0_i32_1 = arith.constant 0 : i32
    return %c0_i32, %c0_i32_0 : i32, i32
  }
  func.func @transform_5(%arg0: i32) -> (i32, i32, i32, i32) {
    %c0_i32 = arith.constant 0 : i32
    %c0_i32_0 = arith.constant 0 : i32
    %c0_i32_1 = arith.constant 0 : i32
    %c0_i32_2 = arith.constant 0 : i32
    return %arg0, %c0_i32, %c0_i32_0, %c0_i32_1 : i32, i32, i32, i32
  }
}

module attributes {stable_mosaic.version = 11 : i64} {
  func.func @_tail_kernel(%arg0: i32, %arg1: memref<1x4x9x9x64xf32, #tpu.memory_space<vmem>>, %arg2: memref<9x64xf32, #tpu.memory_space<vmem>>, %arg3: memref<1x64xf32, #tpu.memory_space<vmem>>, %arg4: memref<64x8xbf16, #tpu.memory_space<vmem>>, %arg5: memref<1x8xf32, #tpu.memory_space<vmem>>, %arg6: memref<8x64xbf16, #tpu.memory_space<vmem>>, %arg7: memref<1x64xf32, #tpu.memory_space<vmem>>, %arg8: memref<64x24xbf16, #tpu.memory_space<vmem>>, %arg9: memref<1x24xf32, #tpu.memory_space<vmem>>, %arg10: memref<24x128xbf16, #tpu.memory_space<vmem>>, %arg11: memref<1x128xf32, #tpu.memory_space<vmem>>, %arg12: memref<128x32xbf16, #tpu.memory_space<vmem>>, %arg13: memref<1x32xf32, #tpu.memory_space<vmem>>, %arg14: memref<32x128xbf16, #tpu.memory_space<vmem>>, %arg15: memref<1x128xf32, #tpu.memory_space<vmem>>, %arg16: memref<1x1x128xf32, #tpu.memory_space<vmem>>) attributes {dimension_semantics = [#tpu.dimension_semantics<parallel>], iteration_bounds = array<i64: 2>, scalar_prefetch = 0 : i64, scratch_operands = 0 : i64, tpu.core_type = #tpu.core_type<tc>, window_params = [{transform_indices = @transform_0, window_bounds = array<i64: 1, 4, 9, 9, 64>}, {pipeline_mode = #tpu.pipeline_mode<synchronous>, transform_indices = @transform_1, window_bounds = array<i64: 9, 64>}, {pipeline_mode = #tpu.pipeline_mode<synchronous>, transform_indices = @transform_2, window_bounds = array<i64: 1, 64>}, {pipeline_mode = #tpu.pipeline_mode<synchronous>, transform_indices = @transform_3, window_bounds = array<i64: 64, 8>}, {pipeline_mode = #tpu.pipeline_mode<synchronous>, transform_indices = @transform_4, window_bounds = array<i64: 1, 8>}, {pipeline_mode = #tpu.pipeline_mode<synchronous>, transform_indices = @transform_5, window_bounds = array<i64: 8, 64>}, {pipeline_mode = #tpu.pipeline_mode<synchronous>, transform_indices = @transform_6, window_bounds = array<i64: 1, 64>}, {pipeline_mode = #tpu.pipeline_mode<synchronous>, transform_indices = @transform_7, window_bounds = array<i64: 64, 24>}, {pipeline_mode = #tpu.pipeline_mode<synchronous>, transform_indices = @transform_8, window_bounds = array<i64: 1, 24>}, {pipeline_mode = #tpu.pipeline_mode<synchronous>, transform_indices = @transform_9, window_bounds = array<i64: 24, 128>}, {pipeline_mode = #tpu.pipeline_mode<synchronous>, transform_indices = @transform_10, window_bounds = array<i64: 1, 128>}, {pipeline_mode = #tpu.pipeline_mode<synchronous>, transform_indices = @transform_11, window_bounds = array<i64: 128, 32>}, {pipeline_mode = #tpu.pipeline_mode<synchronous>, transform_indices = @transform_12, window_bounds = array<i64: 1, 32>}, {pipeline_mode = #tpu.pipeline_mode<synchronous>, transform_indices = @transform_13, window_bounds = array<i64: 32, 128>}, {pipeline_mode = #tpu.pipeline_mode<synchronous>, transform_indices = @transform_14, window_bounds = array<i64: 1, 128>}, {transform_indices = @transform_15, window_bounds = array<i64: 1, 1, 128>}]} {
    %cst = arith.constant 0.000000e+00 : f32
    %0 = vector.broadcast %cst : f32 to vector<64x64xf32>
    %c0 = arith.constant 0 : index
    %c0_0 = arith.constant 0 : index
    %c0_1 = arith.constant 0 : index
    %c0_2 = arith.constant 0 : index
    %c0_3 = arith.constant 0 : index
    %1 = vector.load %arg1[%c0, %c0_0, %c0_1, %c0_2, %c0_3] : memref<1x4x9x9x64xf32, #tpu.memory_space<vmem>>, vector<1x1x8x8x64xf32>
    %2 = vector.shape_cast %1 : vector<1x1x8x8x64xf32> to vector<8x8x64xf32>
    %3 = vector.shape_cast %2 : vector<8x8x64xf32> to vector<64x64xf32>
    %c0_4 = arith.constant 0 : index
    %c0_5 = arith.constant 0 : index
    %4 = vector.load %arg2[%c0_4, %c0_5] : memref<9x64xf32, #tpu.memory_space<vmem>>, vector<1x64xf32>
    %5 = vector.broadcast %4 : vector<1x64xf32> to vector<64x64xf32>
    %6 = arith.mulf %3, %5 : vector<64x64xf32>
    %7 = arith.addf %0, %6 : vector<64x64xf32>
    %c0_6 = arith.constant 0 : index
    %c1 = arith.constant 1 : index
    %c0_7 = arith.constant 0 : index
    %c0_8 = arith.constant 0 : index
    %c0_9 = arith.constant 0 : index
    %8 = vector.load %arg1[%c0_6, %c1, %c0_7, %c0_8, %c0_9] : memref<1x4x9x9x64xf32, #tpu.memory_space<vmem>>, vector<1x1x8x8x64xf32>
    %9 = vector.shape_cast %8 : vector<1x1x8x8x64xf32> to vector<8x8x64xf32>
    %10 = vector.shape_cast %9 : vector<8x8x64xf32> to vector<64x64xf32>
    %c1_10 = arith.constant 1 : index
    %c0_11 = arith.constant 0 : index
    %11 = vector.load %arg2[%c1_10, %c0_11] : memref<9x64xf32, #tpu.memory_space<vmem>>, vector<1x64xf32>
    %12 = vector.broadcast %11 : vector<1x64xf32> to vector<64x64xf32>
    %13 = arith.mulf %10, %12 : vector<64x64xf32>
    %14 = arith.addf %7, %13 : vector<64x64xf32>
    %c0_12 = arith.constant 0 : index
    %c0_13 = arith.constant 0 : index
    %c0_14 = arith.constant 0 : index
    %c1_15 = arith.constant 1 : index
    %c0_16 = arith.constant 0 : index
    %15 = vector.load %arg1[%c0_12, %c0_13, %c0_14, %c1_15, %c0_16] : memref<1x4x9x9x64xf32, #tpu.memory_space<vmem>>, vector<1x1x8x8x64xf32>
    %16 = vector.shape_cast %15 : vector<1x1x8x8x64xf32> to vector<8x8x64xf32>
    %17 = vector.shape_cast %16 : vector<8x8x64xf32> to vector<64x64xf32>
    %c2 = arith.constant 2 : index
    %c0_17 = arith.constant 0 : index
    %18 = vector.load %arg2[%c2, %c0_17] : memref<9x64xf32, #tpu.memory_space<vmem>>, vector<1x64xf32>
    %19 = vector.broadcast %18 : vector<1x64xf32> to vector<64x64xf32>
    %20 = arith.mulf %17, %19 : vector<64x64xf32>
    %21 = arith.addf %14, %20 : vector<64x64xf32>
    %c0_18 = arith.constant 0 : index
    %c2_19 = arith.constant 2 : index
    %c0_20 = arith.constant 0 : index
    %c0_21 = arith.constant 0 : index
    %c0_22 = arith.constant 0 : index
    %22 = vector.load %arg1[%c0_18, %c2_19, %c0_20, %c0_21, %c0_22] : memref<1x4x9x9x64xf32, #tpu.memory_space<vmem>>, vector<1x1x8x8x64xf32>
    %23 = vector.shape_cast %22 : vector<1x1x8x8x64xf32> to vector<8x8x64xf32>
    %24 = vector.shape_cast %23 : vector<8x8x64xf32> to vector<64x64xf32>
    %c3 = arith.constant 3 : index
    %c0_23 = arith.constant 0 : index
    %25 = vector.load %arg2[%c3, %c0_23] : memref<9x64xf32, #tpu.memory_space<vmem>>, vector<1x64xf32>
    %26 = vector.broadcast %25 : vector<1x64xf32> to vector<64x64xf32>
    %27 = arith.mulf %24, %26 : vector<64x64xf32>
    %28 = arith.addf %21, %27 : vector<64x64xf32>
    %c0_24 = arith.constant 0 : index
    %c3_25 = arith.constant 3 : index
    %c0_26 = arith.constant 0 : index
    %c0_27 = arith.constant 0 : index
    %c0_28 = arith.constant 0 : index
    %29 = vector.load %arg1[%c0_24, %c3_25, %c0_26, %c0_27, %c0_28] : memref<1x4x9x9x64xf32, #tpu.memory_space<vmem>>, vector<1x1x8x8x64xf32>
    %30 = vector.shape_cast %29 : vector<1x1x8x8x64xf32> to vector<8x8x64xf32>
    %31 = vector.shape_cast %30 : vector<8x8x64xf32> to vector<64x64xf32>
    %c4 = arith.constant 4 : index
    %c0_29 = arith.constant 0 : index
    %32 = vector.load %arg2[%c4, %c0_29] : memref<9x64xf32, #tpu.memory_space<vmem>>, vector<1x64xf32>
    %33 = vector.broadcast %32 : vector<1x64xf32> to vector<64x64xf32>
    %34 = arith.mulf %31, %33 : vector<64x64xf32>
    %35 = arith.addf %28, %34 : vector<64x64xf32>
    %c0_30 = arith.constant 0 : index
    %c2_31 = arith.constant 2 : index
    %c0_32 = arith.constant 0 : index
    %c1_33 = arith.constant 1 : index
    %c0_34 = arith.constant 0 : index
    %36 = vector.load %arg1[%c0_30, %c2_31, %c0_32, %c1_33, %c0_34] : memref<1x4x9x9x64xf32, #tpu.memory_space<vmem>>, vector<1x1x8x8x64xf32>
    %37 = vector.shape_cast %36 : vector<1x1x8x8x64xf32> to vector<8x8x64xf32>
    %38 = vector.shape_cast %37 : vector<8x8x64xf32> to vector<64x64xf32>
    %c5 = arith.constant 5 : index
    %c0_35 = arith.constant 0 : index
    %39 = vector.load %arg2[%c5, %c0_35] : memref<9x64xf32, #tpu.memory_space<vmem>>, vector<1x64xf32>
    %40 = vector.broadcast %39 : vector<1x64xf32> to vector<64x64xf32>
    %41 = arith.mulf %38, %40 : vector<64x64xf32>
    %42 = arith.addf %35, %41 : vector<64x64xf32>
    %c0_36 = arith.constant 0 : index
    %c0_37 = arith.constant 0 : index
    %c1_38 = arith.constant 1 : index
    %c0_39 = arith.constant 0 : index
    %c0_40 = arith.constant 0 : index
    %43 = vector.load %arg1[%c0_36, %c0_37, %c1_38, %c0_39, %c0_40] : memref<1x4x9x9x64xf32, #tpu.memory_space<vmem>>, vector<1x1x8x8x64xf32>
    %44 = vector.shape_cast %43 : vector<1x1x8x8x64xf32> to vector<8x8x64xf32>
    %45 = vector.shape_cast %44 : vector<8x8x64xf32> to vector<64x64xf32>
    %c6 = arith.constant 6 : index
    %c0_41 = arith.constant 0 : index
    %46 = vector.load %arg2[%c6, %c0_41] : memref<9x64xf32, #tpu.memory_space<vmem>>, vector<1x64xf32>
    %47 = vector.broadcast %46 : vector<1x64xf32> to vector<64x64xf32>
    %48 = arith.mulf %45, %47 : vector<64x64xf32>
    %49 = arith.addf %42, %48 : vector<64x64xf32>
    %c0_42 = arith.constant 0 : index
    %c1_43 = arith.constant 1 : index
    %c1_44 = arith.constant 1 : index
    %c0_45 = arith.constant 0 : index
    %c0_46 = arith.constant 0 : index
    %50 = vector.load %arg1[%c0_42, %c1_43, %c1_44, %c0_45, %c0_46] : memref<1x4x9x9x64xf32, #tpu.memory_space<vmem>>, vector<1x1x8x8x64xf32>
    %51 = vector.shape_cast %50 : vector<1x1x8x8x64xf32> to vector<8x8x64xf32>
    %52 = vector.shape_cast %51 : vector<8x8x64xf32> to vector<64x64xf32>
    %c7 = arith.constant 7 : index
    %c0_47 = arith.constant 0 : index
    %53 = vector.load %arg2[%c7, %c0_47] : memref<9x64xf32, #tpu.memory_space<vmem>>, vector<1x64xf32>
    %54 = vector.broadcast %53 : vector<1x64xf32> to vector<64x64xf32>
    %55 = arith.mulf %52, %54 : vector<64x64xf32>
    %56 = arith.addf %49, %55 : vector<64x64xf32>
    %c0_48 = arith.constant 0 : index
    %c0_49 = arith.constant 0 : index
    %c1_50 = arith.constant 1 : index
    %c1_51 = arith.constant 1 : index
    %c0_52 = arith.constant 0 : index
    %57 = vector.load %arg1[%c0_48, %c0_49, %c1_50, %c1_51, %c0_52] : memref<1x4x9x9x64xf32, #tpu.memory_space<vmem>>, vector<1x1x8x8x64xf32>
    %58 = vector.shape_cast %57 : vector<1x1x8x8x64xf32> to vector<8x8x64xf32>
    %59 = vector.shape_cast %58 : vector<8x8x64xf32> to vector<64x64xf32>
    %c8 = arith.constant 8 : index
    %c0_53 = arith.constant 0 : index
    %60 = vector.load %arg2[%c8, %c0_53] : memref<9x64xf32, #tpu.memory_space<vmem>>, vector<1x64xf32>
    %61 = vector.broadcast %60 : vector<1x64xf32> to vector<64x64xf32>
    %62 = arith.mulf %59, %61 : vector<64x64xf32>
    %63 = arith.addf %56, %62 : vector<64x64xf32>
    %c0_54 = arith.constant 0 : index
    %c0_55 = arith.constant 0 : index
    %64 = vector.load %arg3[%c0_54, %c0_55] : memref<1x64xf32, #tpu.memory_space<vmem>>, vector<1x64xf32>
    %65 = vector.broadcast %64 : vector<1x64xf32> to vector<64x64xf32>
    %66 = arith.addf %63, %65 : vector<64x64xf32>
    %cst_56 = arith.constant 0.000000e+00 : f32
    %67 = vector.broadcast %cst_56 : f32 to vector<64x64xf32>
    %68 = arith.subf %67, %66 : vector<64x64xf32>
    %69 = math.exp %68 : vector<64x64xf32>
    %cst_57 = arith.constant 1.000000e+00 : f32
    %70 = vector.broadcast %cst_57 : f32 to vector<64x64xf32>
    %71 = arith.addf %70, %69 : vector<64x64xf32>
    %72 = tpu.reciprocal %71 {approx = true} : vector<64x64xf32> -> vector<64x64xf32>
    %73 = arith.mulf %66, %72 : vector<64x64xf32>
    %cst_58 = arith.constant dense<0.000000e+00> : vector<64xf32>
    %74 = vector.multi_reduction <add>, %73, %cst_58 [0] : vector<64x64xf32> to vector<64xf32>
    %75 = vector.shape_cast %74 : vector<64xf32> to vector<1x64xf32>
    %cst_59 = arith.constant 6.400000e+01 : f32
    %76 = vector.broadcast %cst_59 : f32 to vector<1x64xf32>
    %77 = arith.divf %75, %76 : vector<1x64xf32>
    %78 = arith.truncf %77 : vector<1x64xf32> to vector<1x64xbf16>
    %c0_60 = arith.constant 0 : index
    %c0_61 = arith.constant 0 : index
    %79 = vector.load %arg4[%c0_60, %c0_61] : memref<64x8xbf16, #tpu.memory_space<vmem>>, vector<64x8xbf16>
    %cst_62 = arith.constant dense<0.000000e+00> : vector<1x8xf32>
    %80 = tpu.matmul %78, %79, %cst_62 {dimension_numbers = #tpu.dot_dimension_numbers<[1], [0], [0], [1], [0, 0, 1, 1], [], []>} : vector<1x64xbf16>, vector<64x8xbf16>, vector<1x8xf32> -> vector<1x8xf32>
    %c0_63 = arith.constant 0 : index
    %c0_64 = arith.constant 0 : index
    %81 = vector.load %arg5[%c0_63, %c0_64] : memref<1x8xf32, #tpu.memory_space<vmem>>, vector<1x8xf32>
    %82 = arith.addf %80, %81 : vector<1x8xf32>
    %cst_65 = arith.constant 0.000000e+00 : f32
    %83 = vector.broadcast %cst_65 : f32 to vector<1x8xf32>
    %84 = arith.subf %83, %82 : vector<1x8xf32>
    %85 = math.exp %84 : vector<1x8xf32>
    %cst_66 = arith.constant 1.000000e+00 : f32
    %86 = vector.broadcast %cst_66 : f32 to vector<1x8xf32>
    %87 = arith.addf %86, %85 : vector<1x8xf32>
    %88 = tpu.reciprocal %87 {approx = true} : vector<1x8xf32> -> vector<1x8xf32>
    %89 = arith.mulf %82, %88 : vector<1x8xf32>
    %90 = arith.truncf %89 : vector<1x8xf32> to vector<1x8xbf16>
    %c0_67 = arith.constant 0 : index
    %c0_68 = arith.constant 0 : index
    %91 = vector.load %arg6[%c0_67, %c0_68] : memref<8x64xbf16, #tpu.memory_space<vmem>>, vector<8x64xbf16>
    %cst_69 = arith.constant dense<0.000000e+00> : vector<1x64xf32>
    %92 = tpu.matmul %90, %91, %cst_69 {dimension_numbers = #tpu.dot_dimension_numbers<[1], [0], [0], [1], [0, 0, 1, 1], [], []>} : vector<1x8xbf16>, vector<8x64xbf16>, vector<1x64xf32> -> vector<1x64xf32>
    %c0_70 = arith.constant 0 : index
    %c0_71 = arith.constant 0 : index
    %93 = vector.load %arg7[%c0_70, %c0_71] : memref<1x64xf32, #tpu.memory_space<vmem>>, vector<1x64xf32>
    %94 = arith.addf %92, %93 : vector<1x64xf32>
    %cst_72 = arith.constant 0.000000e+00 : f32
    %95 = vector.broadcast %cst_72 : f32 to vector<1x64xf32>
    %96 = arith.subf %95, %94 : vector<1x64xf32>
    %97 = math.exp %96 : vector<1x64xf32>
    %cst_73 = arith.constant 1.000000e+00 : f32
    %98 = vector.broadcast %cst_73 : f32 to vector<1x64xf32>
    %99 = arith.addf %98, %97 : vector<1x64xf32>
    %100 = tpu.reciprocal %99 {approx = true} : vector<1x64xf32> -> vector<1x64xf32>
    %101 = vector.broadcast %100 : vector<1x64xf32> to vector<64x64xf32>
    %102 = arith.mulf %73, %101 : vector<64x64xf32>
    %103 = arith.truncf %102 : vector<64x64xf32> to vector<64x64xbf16>
    %c0_74 = arith.constant 0 : index
    %c0_75 = arith.constant 0 : index
    %104 = vector.load %arg8[%c0_74, %c0_75] : memref<64x24xbf16, #tpu.memory_space<vmem>>, vector<64x24xbf16>
    %cst_76 = arith.constant dense<0.000000e+00> : vector<64x24xf32>
    %105 = tpu.matmul %103, %104, %cst_76 {dimension_numbers = #tpu.dot_dimension_numbers<[1], [0], [0], [1], [0, 0, 1, 1], [], []>} : vector<64x64xbf16>, vector<64x24xbf16>, vector<64x24xf32> -> vector<64x24xf32>
    %c0_77 = arith.constant 0 : index
    %c0_78 = arith.constant 0 : index
    %106 = vector.load %arg9[%c0_77, %c0_78] : memref<1x24xf32, #tpu.memory_space<vmem>>, vector<1x24xf32>
    %107 = vector.broadcast %106 : vector<1x24xf32> to vector<64x24xf32>
    %108 = arith.addf %105, %107 : vector<64x24xf32>
    %109 = arith.truncf %108 : vector<64x24xf32> to vector<64x24xbf16>
    %c0_79 = arith.constant 0 : index
    %c0_80 = arith.constant 0 : index
    %110 = vector.load %arg10[%c0_79, %c0_80] : memref<24x128xbf16, #tpu.memory_space<vmem>>, vector<24x128xbf16>
    %cst_81 = arith.constant dense<0.000000e+00> : vector<64x128xf32>
    %111 = tpu.matmul %109, %110, %cst_81 {dimension_numbers = #tpu.dot_dimension_numbers<[1], [0], [0], [1], [0, 0, 1, 1], [], []>} : vector<64x24xbf16>, vector<24x128xbf16>, vector<64x128xf32> -> vector<64x128xf32>
    %c0_82 = arith.constant 0 : index
    %c0_83 = arith.constant 0 : index
    %112 = vector.load %arg11[%c0_82, %c0_83] : memref<1x128xf32, #tpu.memory_space<vmem>>, vector<1x128xf32>
    %113 = vector.broadcast %112 : vector<1x128xf32> to vector<64x128xf32>
    %114 = arith.addf %111, %113 : vector<64x128xf32>
    %cst_84 = arith.constant 0.000000e+00 : f32
    %115 = vector.broadcast %cst_84 : f32 to vector<64x128xf32>
    %116 = arith.subf %115, %114 : vector<64x128xf32>
    %117 = math.exp %116 : vector<64x128xf32>
    %cst_85 = arith.constant 1.000000e+00 : f32
    %118 = vector.broadcast %cst_85 : f32 to vector<64x128xf32>
    %119 = arith.addf %118, %117 : vector<64x128xf32>
    %120 = tpu.reciprocal %119 {approx = true} : vector<64x128xf32> -> vector<64x128xf32>
    %121 = arith.mulf %114, %120 : vector<64x128xf32>
    %cst_86 = arith.constant dense<0.000000e+00> : vector<128xf32>
    %122 = vector.multi_reduction <add>, %121, %cst_86 [0] : vector<64x128xf32> to vector<128xf32>
    %123 = vector.shape_cast %122 : vector<128xf32> to vector<1x128xf32>
    %cst_87 = arith.constant 6.400000e+01 : f32
    %124 = vector.broadcast %cst_87 : f32 to vector<1x128xf32>
    %125 = arith.divf %123, %124 : vector<1x128xf32>
    %126 = arith.truncf %125 : vector<1x128xf32> to vector<1x128xbf16>
    %c0_88 = arith.constant 0 : index
    %c0_89 = arith.constant 0 : index
    %127 = vector.load %arg12[%c0_88, %c0_89] : memref<128x32xbf16, #tpu.memory_space<vmem>>, vector<128x32xbf16>
    %cst_90 = arith.constant dense<0.000000e+00> : vector<1x32xf32>
    %128 = tpu.matmul %126, %127, %cst_90 {dimension_numbers = #tpu.dot_dimension_numbers<[1], [0], [0], [1], [0, 0, 1, 1], [], []>} : vector<1x128xbf16>, vector<128x32xbf16>, vector<1x32xf32> -> vector<1x32xf32>
    %c0_91 = arith.constant 0 : index
    %c0_92 = arith.constant 0 : index
    %129 = vector.load %arg13[%c0_91, %c0_92] : memref<1x32xf32, #tpu.memory_space<vmem>>, vector<1x32xf32>
    %130 = arith.addf %128, %129 : vector<1x32xf32>
    %131 = arith.truncf %130 : vector<1x32xf32> to vector<1x32xbf16>
    %c0_93 = arith.constant 0 : index
    %c0_94 = arith.constant 0 : index
    %132 = vector.load %arg14[%c0_93, %c0_94] : memref<32x128xbf16, #tpu.memory_space<vmem>>, vector<32x128xbf16>
    %cst_95 = arith.constant dense<0.000000e+00> : vector<1x128xf32>
    %133 = tpu.matmul %131, %132, %cst_95 {dimension_numbers = #tpu.dot_dimension_numbers<[1], [0], [0], [1], [0, 0, 1, 1], [], []>} : vector<1x32xbf16>, vector<32x128xbf16>, vector<1x128xf32> -> vector<1x128xf32>
    %c0_96 = arith.constant 0 : index
    %c0_97 = arith.constant 0 : index
    %134 = vector.load %arg15[%c0_96, %c0_97] : memref<1x128xf32, #tpu.memory_space<vmem>>, vector<1x128xf32>
    %135 = arith.addf %133, %134 : vector<1x128xf32>
    %136 = vector.shape_cast %135 : vector<1x128xf32> to vector<1x1x128xf32>
    %c0_98 = arith.constant 0 : index
    %c0_99 = arith.constant 0 : index
    %c0_100 = arith.constant 0 : index
    %137 = vector.load %arg16[%c0_98, %c0_99, %c0_100] : memref<1x1x128xf32, #tpu.memory_space<vmem>>, vector<1x1x128xf32>
    tpu.vector_store %arg16[%c0_98, %c0_99, %c0_100], %136 {strides = array<i32>} : memref<1x1x128xf32, #tpu.memory_space<vmem>>, vector<1x1x128xf32>,
    return
  }
  func.func @transform_0(%arg0: i32) -> (i32, i32, i32, i32, i32) {
    %c0_i32 = arith.constant 0 : i32
    %c0_i32_0 = arith.constant 0 : i32
    %c0_i32_1 = arith.constant 0 : i32
    %c0_i32_2 = arith.constant 0 : i32
    %c0_i32_3 = arith.constant 0 : i32
    return %arg0, %c0_i32, %c0_i32_0, %c0_i32_1, %c0_i32_2 : i32, i32, i32, i32, i32
  }
  func.func @transform_1(%arg0: i32) -> (i32, i32) {
    %c0_i32 = arith.constant 0 : i32
    %c0_i32_0 = arith.constant 0 : i32
    %c0_i32_1 = arith.constant 0 : i32
    return %c0_i32, %c0_i32_0 : i32, i32
  }
  func.func @transform_2(%arg0: i32) -> (i32, i32) {
    %c0_i32 = arith.constant 0 : i32
    %c0_i32_0 = arith.constant 0 : i32
    %c0_i32_1 = arith.constant 0 : i32
    return %c0_i32, %c0_i32_0 : i32, i32
  }
  func.func @transform_3(%arg0: i32) -> (i32, i32) {
    %c0_i32 = arith.constant 0 : i32
    %c0_i32_0 = arith.constant 0 : i32
    %c0_i32_1 = arith.constant 0 : i32
    return %c0_i32, %c0_i32_0 : i32, i32
  }
  func.func @transform_4(%arg0: i32) -> (i32, i32) {
    %c0_i32 = arith.constant 0 : i32
    %c0_i32_0 = arith.constant 0 : i32
    %c0_i32_1 = arith.constant 0 : i32
    return %c0_i32, %c0_i32_0 : i32, i32
  }
  func.func @transform_5(%arg0: i32) -> (i32, i32) {
    %c0_i32 = arith.constant 0 : i32
    %c0_i32_0 = arith.constant 0 : i32
    %c0_i32_1 = arith.constant 0 : i32
    return %c0_i32, %c0_i32_0 : i32, i32
  }
  func.func @transform_6(%arg0: i32) -> (i32, i32) {
    %c0_i32 = arith.constant 0 : i32
    %c0_i32_0 = arith.constant 0 : i32
    %c0_i32_1 = arith.constant 0 : i32
    return %c0_i32, %c0_i32_0 : i32, i32
  }
  func.func @transform_7(%arg0: i32) -> (i32, i32) {
    %c0_i32 = arith.constant 0 : i32
    %c0_i32_0 = arith.constant 0 : i32
    %c0_i32_1 = arith.constant 0 : i32
    return %c0_i32, %c0_i32_0 : i32, i32
  }
  func.func @transform_8(%arg0: i32) -> (i32, i32) {
    %c0_i32 = arith.constant 0 : i32
    %c0_i32_0 = arith.constant 0 : i32
    %c0_i32_1 = arith.constant 0 : i32
    return %c0_i32, %c0_i32_0 : i32, i32
  }
  func.func @transform_9(%arg0: i32) -> (i32, i32) {
    %c0_i32 = arith.constant 0 : i32
    %c0_i32_0 = arith.constant 0 : i32
    %c0_i32_1 = arith.constant 0 : i32
    return %c0_i32, %c0_i32_0 : i32, i32
  }
  func.func @transform_10(%arg0: i32) -> (i32, i32) {
    %c0_i32 = arith.constant 0 : i32
    %c0_i32_0 = arith.constant 0 : i32
    %c0_i32_1 = arith.constant 0 : i32
    return %c0_i32, %c0_i32_0 : i32, i32
  }
  func.func @transform_11(%arg0: i32) -> (i32, i32) {
    %c0_i32 = arith.constant 0 : i32
    %c0_i32_0 = arith.constant 0 : i32
    %c0_i32_1 = arith.constant 0 : i32
    return %c0_i32, %c0_i32_0 : i32, i32
  }
  func.func @transform_12(%arg0: i32) -> (i32, i32) {
    %c0_i32 = arith.constant 0 : i32
    %c0_i32_0 = arith.constant 0 : i32
    %c0_i32_1 = arith.constant 0 : i32
    return %c0_i32, %c0_i32_0 : i32, i32
  }
  func.func @transform_13(%arg0: i32) -> (i32, i32) {
    %c0_i32 = arith.constant 0 : i32
    %c0_i32_0 = arith.constant 0 : i32
    %c0_i32_1 = arith.constant 0 : i32
    return %c0_i32, %c0_i32_0 : i32, i32
  }
  func.func @transform_14(%arg0: i32) -> (i32, i32) {
    %c0_i32 = arith.constant 0 : i32
    %c0_i32_0 = arith.constant 0 : i32
    %c0_i32_1 = arith.constant 0 : i32
    return %c0_i32, %c0_i32_0 : i32, i32
  }
  func.func @transform_15(%arg0: i32) -> (i32, i32, i32) {
    %c0_i32 = arith.constant 0 : i32
    %c0_i32_0 = arith.constant 0 : i32
    %c0_i32_1 = arith.constant 0 : i32
    return %arg0, %c0_i32, %c0_i32_0 : i32, i32, i32
  }
}

</mosaic_0001>

<bundles_post_ra>
// kernel: _forward.3
= control target key start
LH: loop header
LB: loop body
LE: loop exit
PB: predicated region body
PF: predicated region fallthrough
CT: control target
= control target key end

     0   :  { %s4359_s12 = smov 0   ;;  %s5169_s0 = inlined_call_operand.vmem [shape: f32[2,4,17,17,8], index: 0, kind: input, shape index: {}]   ;;  %s5170_s1 = inlined_call_operand.vmem [shape: bf16[9,8,16], index: 1, kind: input, shape index: {}]   ;;  %s5171_s2 = inlined_call_operand.vmem [shape: f32[1,16], index: 2, kind: input, shape index: {}]   ;;  %s5172_s3 = inlined_call_operand.vmem [shape: f32[2,16,16,16], index: 3, kind: output, shape index: {}]  }
   0x1 LB: > { %s3079_s13 = sadd.s32 4294967295, %s4337_s12   ;;  %p3083_p0 = scmp.ge.s32.totalorder %s4337_s12, 1  ;;  %s4337_s12 = sphi %s4359_s12, %s13_s12  }
   0x2   : > { %p137_p1 = scmp.lt.s32.totalorder %s4337_s12, 3 }
   0x4   : > { %p138_p2 = pnand %p3083_p0, %p137_p1 }
   0x5   : > { %v3119_v0 = vld [vmem:[%s5170_s1 + $0x4] sm:$0xf] (!%p138_p2)  ;;  %vm321_vm0 = vcmask (!%p138_p2), 1043456   ;;  %v4373_v1 = vld [vmem:[%s5170_s1 + $0x10] sm:$0xf] (!%p138_p2)  ;;  %p161_p3 = scmp.lt.s32.totalorder (!%p138_p2), %s3079_s13, 1 }
   0x6   : > { %141 = sbr.rel (%p138_p2) target bundleno = 558 (0x22e), region = 32  ;;  %4184 = vmatprep.subr.msk.bf16.mxu1 (!%p138_p2), %vm321_vm0, %v3119_v0  ;;  %4188 = vmatprep.subr.msk.bf16.mxu0 (!%p138_p2), %vm321_vm0, %v4373_v1  ;;  %v323_v2 = vsel (!%p138_p2), %vm321_vm0, %v3119_v0, 0  ;;  %v4381_v3 = vsel (!%p138_p2), %vm321_vm0, %v4373_v1, 0  ;;  %v220_v4 = vld [vmem:[%s5170_s1] sm:$0xf] (!%p138_p2)  ;;  %vm272_vm1 = vcmask (!%p138_p2), 64512  }
   0x7   : > { %3621 = vmatpush3.bf16.msra.mxu1 (!%p138_p2), %v323_v2  ;;  %3757 = vmatpush3.bf16.msra.mxu0 (!%p138_p2), %v4381_v3  ;;  %v3299_v5 = vld [vmem:[%s5170_s1 + $0x14] sm:$0xf] (!%p138_p2)  ;;  %v535_v15 = vsel (!%p138_p2), %vm321_vm0, %v220_v4, 0  ;;  %v4425_v26 = vld [vmem:[%s5170_s1 + $0x18] sm:$0xf] (!%p138_p2)  ;;  %vm2991_vm2 = vcmask (!%p138_p2), 130048  }
   0x8   : > { %4185 = vmatprep.subr.msk.bf16.mxu1 (!%p138_p2), %vm321_vm0, %v220_v4  ;;  %4190 = vmatprep.subr.msk.bf16.mxu0 (!%p138_p2), %vm321_vm0, %v3299_v5  ;;  %v1681_v20 = vsel (!%p138_p2), %vm321_vm0, %v3299_v5, 0  ;;  %v4430_v27 = vld [vmem:[%s5170_s1 + $0x8] sm:$0xf] (!%p138_p2) }
   0xd   : > { %s5174_s13 = smov (!%p161_p3, %s3079_s13), 1 }
   0xe   : > { %s4194_s22 = smul.u32 1632, %s5174_s13  ;;  %s3466_s11 = sshll.u32 %s5174_s13, 8 }
   0xf   : > { %s5003_s15 = scalar_lea.vmem %s5172_s3, %s3466_s11 }
  0x10   : > { %s4398_s25 = scalar_lea.vmem %s5169_s0, %s4194_s22 }
  0x11   : > { %v3087_v6 = vld [vmem:[%s4398_s25 + $0x198] sm:$0xff]  ;;  %v3088_v7 = vld [vmem:[%s4398_s25 + $0x1a0] sm:$0xff]  ;;  %v3218_v8 = vld [vmem:[%s4398_s25 + $0x4c8] sm:$0xff] }
  0x12   : > { %v254_v9 = vpack.c.bf16 %v3088_v7, %v3087_v6  ;;  %v3219_v10 = vld [vmem:[%s4398_s25 + $0x4d0] sm:$0xff]  ;;  %v3090_v12 = vld [vmem:[%s4398_s25 + $0x1b8] sm:$0xff]  ;;  %v3220_v16 = vld [vmem:[%s4398_s25 + $0x4e0] sm:$0xff] }
  0x13   : > { %v3089_v11 = vld [vmem:[%s4398_s25 + $0x1b0] sm:$0xff]  ;;  %v1320_v13 = vpack.c.bf16 %v3219_v10, %v3218_v8  ;;  %v3221_v17 = vld [vmem:[%s4398_s25 + $0x4e8] sm:$0xff]  ;;  %v3222_v22 = vld [vmem:[%s4398_s25 + $0x4f8] sm:$0xff] }
  0x14   : > { %v4406_v14 = vpack.c.bf16 %v3090_v12, %v3089_v11  ;;  %v3091_v18 = vld [vmem:[%s4398_s25 + $0x1c8] sm:$0xff]  ;;  %3622 = vmatprep.mubr.msk.bf16.mxu1 %vm272_vm1, %v254_v9  ;;  %v1321_v19 = vpack.c.bf16 %v3221_v17, %v3220_v16  ;;  %v3092_v21 = vld [vmem:[%s4398_s25 + $0x1d0] sm:$0xff]  ;;  %v3223_v23 = vld [vmem:[%s4398_s25 + $0x500] sm:$0xff] }
  0x15   : > { %3758 = vmatprep.mubr.msk.bf16.mxu0 %vm272_vm1, %v1320_v13  ;;  %v4420_v24 = vpack.c.bf16 %v3092_v21, %v3091_v18  ;;  %v1322_v25 = vpack.c.bf16 %v3223_v23, %v3222_v22  ;;  %v3093_v28 = vld [vmem:[%s4398_s25 + $0x1e0] sm:$0xff]  ;;  %v3094_v29 = vld [vmem:[%s4398_s25 + $0x1e8] sm:$0xff]  ;;  %v3224_v30 = vld [vmem:[%s4398_s25 + $0x510] sm:$0xff] }
  0x16   : > { %3623 = vmatmul.mubr.msk.bf16.vlgmr.msra.gmra.mrb[0].mxu1 %vm272_vm1, %v4406_v14  ;;  %3759 = vmatmul.mubr.msk.bf16.vlgmr.msra.gmra.mrb[0].mxu0 %vm272_vm1, %v1321_v19  ;;  %v3225_v31 = vld [vmem:[%s4398_s25 + $0x518] sm:$0xff]  ;;  %v3096_v33 = vld [vmem:[%s4398_s25 + $0x200] sm:$0xff]  ;;  %v3226_v34 = vld [vmem:[%s4398_s25 + $0x528] sm:$0xff]  ;;  %v4446_v36 = vpack.c.bf16 %v3094_v29, %v3093_v28 }
  0x17   : > { %3655 = vmatpush3.bf16.msra.mxu1 %v535_v15  ;;  %3791 = vmatpush3.bf16.msra.mxu0 %v1681_v20  ;;  %v3095_v32 = vld [vmem:[%s4398_s25 + $0x1f8] sm:$0xff]  ;;  %v3227_v35 = vld [vmem:[%s4398_s25 + $0x530] sm:$0xff]  ;;  %v1323_v37 = vpack.c.bf16 %v3225_v31, %v3224_v30  ;;  %v3228_v42 = vld [vmem:[%s4398_s25 + $0x540] sm:$0xff]  ;;  %v1976_v15 = vsel %vm321_vm0, %v4425_v26, 0 }
  0x18   : > { %3626 = vmatprep.mubr.msk.bf16.mxu1 %vm272_vm1, %v4420_v24  ;;  %3762 = vmatprep.mubr.msk.bf16.mxu0 %vm272_vm1, %v1322_v25  ;;  %v4450_v38 = vpack.c.bf16 %v3096_v33, %v3095_v32  ;;  %v1324_v39 = vpack.c.bf16 %v3227_v35, %v3226_v34  ;;  %v3097_v40 = vld [vmem:[%s4398_s25 + $0x210] sm:$0xff]  ;;  %v3098_v41 = vld [vmem:[%s4398_s25 + $0x218] sm:$0xff]  ;;  %v3229_v43 = vld [vmem:[%s4398_s25 + $0x548] sm:$0xff] }
  0x19   : > { %4191 = vmatprep.subr.msk.bf16.mxu0 %vm321_vm0, %v4425_v26  ;;  %4186 = vmatprep.subr.msk.bf16.mxu1 %vm321_vm0, %v4430_v27  ;;  %v3099_v44 = vld [vmem:[%s4398_s25 + $0x228] sm:$0xff]  ;;  %v3100_v45 = vld [vmem:[%s4398_s25 + $0x230] sm:$0xff]  ;;  %v3230_v46 = vld [vmem:[%s4398_s25 + $0x558] sm:$0xff]  ;;  %v4466_v48 = vpack.c.bf16 %v3098_v41, %v3097_v40  ;;  %v1325_v49 = vpack.c.bf16 %v3229_v43, %v3228_v42 }
  0x1a   : > { %v3231_v47 = vld [vmem:[%s4398_s25 + $0x560] sm:$0xff]  ;;  %v4468_v50 = vpack.c.bf16 %v3100_v45, %v3099_v44  ;;  %v3102_v53 = vld [vmem:[%s4398_s25 + $0x248] sm:$0xff]  ;;  %v3232_v54 = vld [vmem:[%s4398_s25 + $0x570] sm:$0xff] }
  0x1b   : > { %v1326_v51 = vpack.c.bf16 %v3231_v47, %v3230_v46  ;;  %v3101_v52 = vld [vmem:[%s4398_s25 + $0x240] sm:$0xff]  ;;  %v3233_v55 = vld [vmem:[%s4398_s25 + $0x578] sm:$0xff]  ;;  %v3105_v0 = vld [vmem:[%s4398_s25 + $0x270] sm:$0xff] }
  0x1c   : > { %v3103_v56 = vld [vmem:[%s4398_s25 + $0x258] sm:$0xff]  ;;  %v3104_v57 = vld [vmem:[%s4398_s25 + $0x260] sm:$0xff]  ;;  %v4484_v60 = vpack.c.bf16 %v3102_v53, %v3101_v52  ;;  %v1327_v61 = vpack.c.bf16 %v3233_v55, %v3232_v54  ;;  %v3269_v4 = vld [vmem:[%s4398_s25 + $0x349] sm:$0xff] }
  0x1d   : > { %v3267_v58 = vld [vmem:[%s4398_s25 + $0x331] sm:$0xff]  ;;  %v3268_v59 = vld [vmem:[%s4398_s25 + $0x339] sm:$0xff]  ;;  %v4486_v62 = vpack.c.bf16 %v3104_v57, %v3103_v56  ;;  %v3107_v6 = vld [vmem:[%s4398_s25 + $0x288] sm:$0xff] }
  0x1e   : > { %3627 = vmatmul.mubr.msk.bf16.gmra.mrb[4].mxu1 %vm272_vm1, %v4446_v36  ;;  %3763 = vmatmul.mubr.msk.bf16.gmra.mrb[4].mxu0 %vm272_vm1, %v1323_v37  ;;  %v1614_v63 = vpack.c.bf16 %v3268_v59, %v3267_v58  ;;  %v3106_v2 = vld [vmem:[%s4398_s25 + $0x278] sm:$0xff]  ;;  %v3108_v7 = vld [vmem:[%s4398_s25 + $0x290] sm:$0xff]  ;;  %v3271_v8 = vld [vmem:[%s4398_s25 + $0x361] sm:$0xff] }
  0x1f   : > { %3630 = vmatprep.mubr.msk.bf16.mxu1 %vm272_vm1, %v4450_v38  ;;  %3766 = vmatprep.mubr.msk.bf16.mxu0 %vm272_vm1, %v1324_v39  ;;  %v3270_v5 = vld [vmem:[%s4398_s25 + $0x351] sm:$0xff]  ;;  %v3272_v9 = vld [vmem:[%s4398_s25 + $0x369] sm:$0xff]  ;;  %v4502_v10 = vpack.c.bf16 %v3106_v2, %v3105_v0  ;;  %v4504_v12 = vpack.c.bf16 %v3108_v7, %v3107_v6  ;;  %v4513_v16 = vld [vmem:[%s5170_s1 + $0x1c] sm:$0xf] }
  0x20   : > { %v1615_v11 = vpack.c.bf16 %v3270_v5, %v3269_v4  ;;  %v1616_v13 = vpack.c.bf16 %v3272_v9, %v3271_v8  ;;  %v3109_v17 = vld [vmem:[%s4398_s25 + $0x2a0] sm:$0xff]  ;;  %v3110_v18 = vld [vmem:[%s4398_s25 + $0x2a8] sm:$0xff]  ;;  %v3111_v21 = vld [vmem:[%s4398_s25 + $0x2b8] sm:$0xff]  ;;  %v797_v9 = vsel %vm321_vm0, %v4430_v27, 0 }
  0x21   : > { %v3273_v19 = vld [vmem:[%s4398_s25 + $0x379] sm:$0xff]  ;;  %v3274_v20 = vld [vmem:[%s4398_s25 + $0x381] sm:$0xff]  ;;  %v3275_v23 = vld [vmem:[%s4398_s25 + $0x391] sm:$0xff]  ;;  %v4529_v26 = vpack.c.bf16 %v3110_v18, %v3109_v17 }
  0x22   : > { %v3112_v22 = vld [vmem:[%s4398_s25 + $0x2c0] sm:$0xff]  ;;  %v1617_v28 = vpack.c.bf16 %v3274_v20, %v3273_v19  ;;  %v3113_v31 = vld [vmem:[%s4398_s25 + $0x2d0] sm:$0xff]  ;;  %v3114_v32 = vld [vmem:[%s4398_s25 + $0x2d8] sm:$0xff] }
  0x23   : > { %v3276_v25 = vld [vmem:[%s4398_s25 + $0x399] sm:$0xff]  ;;  %v4531_v29 = vpack.c.bf16 %v3112_v22, %v3111_v21  ;;  %v3277_v33 = vld [vmem:[%s4398_s25 + $0x3a9] sm:$0xff]  ;;  %v3278_v34 = vld [vmem:[%s4398_s25 + $0x3b1] sm:$0xff]  ;;  %v4547_v41 = vpack.c.bf16 %v3114_v32, %v3113_v31 }
  0x24   : > { %v1618_v30 = vpack.c.bf16 %v3276_v25, %v3275_v23  ;;  %v3115_v35 = vld [vmem:[%s4398_s25 + $0x2e8] sm:$0xff]  ;;  %v3116_v37 = vld [vmem:[%s4398_s25 + $0x2f0] sm:$0xff]  ;;  %v1619_v42 = vpack.c.bf16 %v3278_v34, %v3277_v33  ;;  %v3117_v45 = vld [vmem:[%s4398_s25 + $0x300] sm:$0xff] }
  0x25   : > { %v3279_v39 = vld [vmem:[%s4398_s25 + $0x3c1] sm:$0xff]  ;;  %v3280_v40 = vld [vmem:[%s4398_s25 + $0x3c9] sm:$0xff]  ;;  %v4549_v43 = vpack.c.bf16 %v3116_v37, %v3115_v35  ;;  %v3281_v47 = vld [vmem:[%s4398_s25 + $0x3d9] sm:$0xff] }
  0x26   : > { %3631 = vmatmul.mubr.msk.bf16.gmra.mrb[8].mxu1 %vm272_vm1, %v4466_v48  ;;  %3767 = vmatmul.mubr.msk.bf16.gmra.mrb[8].mxu0 %vm272_vm1, %v1325_v49  ;;  %v1620_v44 = vpack.c.bf16 %v3280_v40, %v3279_v39  ;;  %v3118_v46 = vld [vmem:[%s4398_s25 + $0x308] sm:$0xff]  ;;  %v3283_v53 = vld [vmem:[%s4398_s25 + $0x3f1] sm:$0xff]  ;;  %v3284_v54 = vld [vmem:[%s4398_s25 + $0x3f9] sm:$0xff] }
  0x27   : > { %3634 = vmatprep.mubr.msk.bf16.mxu1 %vm272_vm1, %v4468_v50  ;;  %3770 = vmatprep.mubr.msk.bf16.mxu0 %vm272_vm1, %v1326_v51  ;;  %v3282_v49 = vld [vmem:[%s4398_s25 + $0x3e1] sm:$0xff]  ;;  %v4565_v55 = vpack.c.bf16 %v3118_v46, %v3117_v45  ;;  %v1622_v58 = vpack.c.bf16 %v3284_v54, %v3283_v53  ;;  %v174_v59 = vld [vmem:[%s4398_s25 + $0x18] sm:$0xff]  ;;  %v176_v2 = vld [vmem:[%s4398_s25 + $0x30] sm:$0xff] }
  0x28   : > { %v172_v51 = vld [vmem:[%s4398_s25] sm:$0xff]  ;;  %v173_v52 = vld [vmem:[%s4398_s25 + $0x8] sm:$0xff]  ;;  %v1621_v56 = vpack.c.bf16 %v3282_v49, %v3281_v47  ;;  %v3286_v0 = vld [vmem:[%s4398_s25 + $0x411] sm:$0xff] }
  0x29   : > { %v204_v57 = vpack.c.bf16 %v173_v52, %v172_v51  ;;  %v177_v4 = vld [vmem:[%s4398_s25 + $0x38] sm:$0xff]  ;;  %v3287_v5 = vld [vmem:[%s4398_s25 + $0x421] sm:$0xff]  ;;  %v3288_v6 = vld [vmem:[%s4398_s25 + $0x429] sm:$0xff] }
  0x2a   : > { %v178_v17 = vld [vmem:[%s4398_s25 + $0x48] sm:$0xff]  ;;  %v179_v18 = vld [vmem:[%s4398_s25 + $0x50] sm:$0xff]  ;;  %v3289_v19 = vld [vmem:[%s4398_s25 + $0x439] sm:$0xff] }
  0x2b   : > { %v3290_v27 = vld [vmem:[%s4398_s25 + $0x441] sm:$0xff]  ;;  %v3291_v22 = vld [vmem:[%s4398_s25 + $0x451] sm:$0xff]  ;;  %v3292_v23 = vld [vmem:[%s4398_s25 + $0x459] sm:$0xff]  ;;  %v207_v25 = vpack.c.bf16 %v179_v18, %v178_v17 }
  0x2c   : > { %v180_v20 = vld [vmem:[%s4398_s25 + $0x60] sm:$0xff]  ;;  %v181_v21 = vld [vmem:[%s4398_s25 + $0x68] sm:$0xff]  ;;  %v1626_v31 = vpack.c.bf16 %v3292_v23, %v3291_v22  ;;  %v182_v32 = vld [vmem:[%s4398_s25 + $0x78] sm:$0xff] }
  0x2d   : > { %v183_v33 = vld [vmem:[%s4398_s25 + $0x80] sm:$0xff]  ;;  %v3293_v34 = vld [vmem:[%s4398_s25 + $0x469] sm:$0xff]  ;;  %v3294_v35 = vld [vmem:[%s4398_s25 + $0x471] sm:$0xff] }
  0x2e   : > { %3635 = vmatmul.mubr.msk.bf16.gmra.mrb[12].mxu1 %vm272_vm1, %v4484_v60  ;;  %3771 = vmatmul.mubr.msk.bf16.gmra.mrb[12].mxu0 %vm272_vm1, %v1327_v61  ;;  %v175_v61 = vld [vmem:[%s4398_s25 + $0x20] sm:$0xff]  ;;  %v184_v37 = vld [vmem:[%s4398_s25 + $0x90] sm:$0xff]  ;;  %v185_v39 = vld [vmem:[%s4398_s25 + $0x98] sm:$0xff]  ;;  %v1627_v45 = vpack.c.bf16 %v3294_v35, %v3293_v34 }
  0x2f   : > { %3638 = vmatprep.mubr.msk.bf16.mxu1 %vm272_vm1, %v4486_v62  ;;  %3792 = vmatprep.mubr.msk.bf16.mxu0 %vm272_vm1, %v1614_v63  ;;  %v3285_v63 = vld [vmem:[%s4398_s25 + $0x409] sm:$0xff]  ;;  %v205_v7 = vpack.c.bf16 %v175_v61, %v174_v59  ;;  %v3295_v40 = vld [vmem:[%s4398_s25 + $0x481] sm:$0xff]  ;;  %v210_v46 = vpack.c.bf16 %v185_v39, %v184_v37  ;;  %v3297_v52 = vld [vmem:[%s4398_s25 + $0x499] sm:$0xff] }
  0x30   : > { %v1623_v8 = vpack.c.bf16 %v3286_v0, %v3285_v63  ;;  %v186_v49 = vld [vmem:[%s4398_s25 + $0xa8] sm:$0xff]  ;;  %v187_v51 = vld [vmem:[%s4398_s25 + $0xb0] sm:$0xff]  ;;  %v188_v54 = vld [vmem:[%s4398_s25 + $0xc0] sm:$0xff] }
  0x31   : > { %v3298_v53 = vld [vmem:[%s4398_s25 + $0x4a1] sm:$0xff]  ;;  %v190_v61 = vld [vmem:[%s4398_s25 + $0xd8] sm:$0xff]  ;;  %v192_v0 = vld [vmem:[%s4398_s25 + $0xf0] sm:$0xff] }
  0x32   : > { %v191_v63 = vld [vmem:[%s4398_s25 + $0xe0] sm:$0xff]  ;;  %v202_v23 = vld [vmem:[%s4398_s25 + $0x168] sm:$0xff]  ;;  %v702_v35 = vld [vmem:[%s4398_s25 + $0x31] sm:$0xff] }
  0x33   : > { %v701_v34 = vld [vmem:[%s4398_s25 + $0x21] sm:$0xff]  ;;  %v703_v37 = vld [vmem:[%s4398_s25 + $0x39] sm:$0xff] }
  0x36   : > { %3639 = vmatmul.mubr.msk.bf16.gmra.mrb[16].mxu1 %vm272_vm1, %v4502_v10  ;;  %3793 = vmatmul.mubr.msk.bf16.vlgmr.msra.gmra.mrb[0].mxu0 %vm272_vm1, %v1615_v11  ;;  %v4582_v11 = vpack.c.bf16 %v177_v4, %v176_v2  ;;  %v193_v2 = vld [vmem:[%s4398_s25 + $0xf8] sm:$0xff]  ;;  %v213_v4 = vpack.c.bf16 %v191_v63, %v190_v61  ;;  %v3347_v61 = vld [vmem:[%s4398_s25 + $0x188] sm:$0xff] }
  0x37   : > { %3642 = vmatprep.mubr.msk.bf16.mxu1 %vm272_vm1, %v4504_v12  ;;  %3825 = vmatpush3.bf16.msra.mxu0 %v1976_v15  ;;  %v4588_v15 = vld [vmem:[%s5170_s1 + $0xc] sm:$0xf]  ;;  %v714_v63 = vld [vmem:[%s4398_s25 + $0xc1] sm:$0xff] }
  0x38   : > { %3796 = vmatprep.mubr.msk.bf16.mxu0 %vm272_vm1, %v1616_v13  ;;  %4192 = vmatprep.subr.msk.bf16.mxu0 %vm321_vm0, %v4513_v16  ;;  %v1624_v13 = vpack.c.bf16 %v3288_v6, %v3287_v5  ;;  %v214_v5 = vpack.c.bf16 %v193_v2, %v192_v0  ;;  %v2271_v6 = vsel %vm321_vm0, %v4513_v16, 0  ;;  %v196_v16 = vld [vmem:[%s4398_s25 + $0x120] sm:$0xff]  ;;  %v715_v0 = vld [vmem:[%s4398_s25 + $0xc9] sm:$0xff] }
  0x3e   : > { %3643 = vmatmul.mubr.msk.bf16.gmra.mrb[20].mxu1 %vm272_vm1, %v4529_v26  ;;  %3797 = vmatmul.mubr.msk.bf16.gmra.mrb[4].mxu0 %vm272_vm1, %v1617_v28  ;;  %v1625_v28 = vpack.c.bf16 %v3290_v27, %v3289_v19  ;;  %v199_v19 = vld [vmem:[%s4398_s25 + $0x140] sm:$0xff]  ;;  %v200_v27 = vld [vmem:[%s4398_s25 + $0x150] sm:$0xff] }
  0x3f   : > { %3646 = vmatprep.mubr.msk.bf16.mxu1 %vm272_vm1, %v4531_v29  ;;  %3800 = vmatprep.mubr.msk.bf16.mxu0 %vm272_vm1, %v1618_v30  ;;  %v208_v30 = vpack.c.bf16 %v181_v21, %v180_v20  ;;  %v201_v20 = vld [vmem:[%s4398_s25 + $0x158] sm:$0xff] }
  0x40   : > { %v218_v22 = vpack.c.bf16 %v201_v20, %v200_v27 }
  0x46   : > { %3647 = vmatmul.mubr.msk.bf16.gmra.mrb[24].mxu1 %vm272_vm1, %v4547_v41  ;;  %3801 = vmatmul.mubr.msk.bf16.gmra.mrb[8].mxu0 %vm272_vm1, %v1619_v42  ;;  %v3296_v42 = vld [vmem:[%s4398_s25 + $0x489] sm:$0xff] }
  0x47   : > { %3650 = vmatprep.mubr.msk.bf16.mxu1 %vm272_vm1, %v4549_v43  ;;  %3804 = vmatprep.mubr.msk.bf16.mxu0 %vm272_vm1, %v1620_v44  ;;  %v209_v44 = vpack.c.bf16 %v183_v33, %v182_v32  ;;  %v1628_v47 = vpack.c.bf16 %v3296_v42, %v3295_v40  ;;  %v700_v33 = vld [vmem:[%s4398_s25 + $0x19] sm:$0xff]  ;;  %v1092_v40 = vsel %vm321_vm0, %v4588_v15, 0  ;;  %v4680_v42 = vpack.c.bf16 %v703_v37, %v702_v35 }
  0x48   : > { %v4676_v39 = vpack.c.bf16 %v701_v34, %v700_v33  ;;  %v3172_v33 = vld [vmem:[%s4398_s25 + $0x350] sm:$0xff]  ;;  %v3174_v34 = vld [vmem:[%s4398_s25 + $0x368] sm:$0xff] }
  0x4e   : > { %3651 = vmatmul.mubr.msk.bf16.gmra.mrb[28].mxu1 %vm272_vm1, %v4565_v55  ;;  %3805 = vmatmul.mubr.msk.bf16.gmra.mrb[12].mxu0 %vm272_vm1, %v1621_v56  ;;  %v189_v56 = vld [vmem:[%s4398_s25 + $0xc8] sm:$0xff] }
  0x4f   : > { %3656 = vmatprep.mubr.msk.bf16.mxu1 %vm272_vm1, %v204_v57  ;;  %3808 = vmatprep.mubr.msk.bf16.mxu0 %vm272_vm1, %v1622_v58  ;;  %v211_v57 = vpack.c.bf16 %v187_v51, %v186_v49  ;;  %v1629_v58 = vpack.c.bf16 %v3298_v53, %v3297_v52  ;;  %v212_v59 = vpack.c.bf16 %v189_v56, %v188_v54  ;;  %v708_v51 = vld [vmem:[%s4398_s25 + $0x79] sm:$0xff]  ;;  %v710_v52 = vld [vmem:[%s4398_s25 + $0x91] sm:$0xff] }
  0x50   : > { %v711_v53 = vld [vmem:[%s4398_s25 + $0x99] sm:$0xff] }
  0x51   : > { %v4710_v56 = vpack.c.bf16 %v711_v53, %v710_v52  ;;  %v3184_v52 = vld [vmem:[%s4398_s25 + $0x3e0] sm:$0xff]  ;;  %v3395_v53 = vld [vmem:[%s4398_s25 + $0x318] sm:$0xff] }
  0x56   : > { %3657 = vmatmul.mubr.msk.bf16.vlgmr.msra.gmra.mrb[0].mxu1 %vm272_vm1, %v205_v7  ;;  %3809 = vmatmul.mubr.msk.bf16.gmra.mrb[16].mxu0 %vm272_vm1, %v1623_v8  ;;  %v4640_v8 = vld [vmem:[%s5170_s1 + $0x20] sm:$0xf] }
  0x57   : > { %3689 = vmatpush3.bf16.msra.mxu1 %v797_v9  ;;  %3660 = vmatprep.mubr.msk.bf16.mxu1 %vm272_vm1, %v4582_v11  ;;  %v195_v9 = vld [vmem:[%s4398_s25 + $0x110] sm:$0xff] }
  0x58   : > { %3812 = vmatprep.mubr.msk.bf16.mxu0 %vm272_vm1, %v1624_v13  ;;  %4187 = vmatprep.subr.msk.bf16.mxu1 %vm321_vm0, %v4588_v15  ;;  %v197_v13 = vld [vmem:[%s4398_s25 + $0x128] sm:$0xff] }
  0x59   : > { %v216_v18 = vpack.c.bf16 %v197_v13, %v196_v16  ;;  %v706_v15 = vld [vmem:[%s4398_s25 + $0x61] sm:$0xff]  ;;  %v719_v16 = vld [vmem:[%s4398_s25 + $0xf9] sm:$0xff] }
  0x5e   : > { %3661 = vmatmul.mubr.msk.bf16.gmra.mrb[4].mxu1 %vm272_vm1, %v207_v25  ;;  %3813 = vmatmul.mubr.msk.bf16.gmra.mrb[20].mxu0 %vm272_vm1, %v1625_v28  ;;  %v698_v28 = vld [vmem:[%s4398_s25 + $0x1] sm:$0xff] }
  0x5f   : > { %3664 = vmatprep.mubr.msk.bf16.mxu1 %vm272_vm1, %v208_v30  ;;  %3816 = vmatprep.mubr.msk.bf16.mxu0 %vm272_vm1, %v1626_v31 }
  0x66   : > { %3665 = vmatmul.mubr.msk.bf16.gmra.mrb[8].mxu1 %vm272_vm1, %v209_v44  ;;  %3817 = vmatmul.mubr.msk.bf16.gmra.mrb[24].mxu0 %vm272_vm1, %v1627_v45  ;;  %v705_v45 = vld [vmem:[%s4398_s25 + $0x51] sm:$0xff] }
  0x67   : > { %3668 = vmatprep.mubr.msk.bf16.mxu1 %vm272_vm1, %v210_v46  ;;  %3820 = vmatprep.mubr.msk.bf16.mxu0 %vm272_vm1, %v1628_v47 }
  0x6e   : > { %3669 = vmatmul.mubr.msk.bf16.gmra.mrb[12].mxu1 %vm272_vm1, %v211_v57  ;;  %3821 = vmatmul.mubr.msk.bf16.gmra.mrb[28].mxu0 %vm272_vm1, %v1629_v58  ;;  %v713_v58 = vld [vmem:[%s4398_s25 + $0xb1] sm:$0xff] }
  0x6f   : > { %3672 = vmatprep.mubr.msk.bf16.mxu1 %vm272_vm1, %v212_v59  ;;  %3826 = vmatprep.mubr.msk.bf16.mxu0 %vm272_vm1, %v205_v7  ;;  %v194_v7 = vld [vmem:[%s4398_s25 + $0x108] sm:$0xff] }
  0x70   : > { %v215_v17 = vpack.c.bf16 %v195_v9, %v194_v7  ;;  %v717_v7 = vld [vmem:[%s4398_s25 + $0xe1] sm:$0xff]  ;;  %v718_v9 = vld [vmem:[%s4398_s25 + $0xf1] sm:$0xff] }
  0x76   : > { %3673 = vmatmul.mubr.msk.bf16.gmra.mrb[16].mxu1 %vm272_vm1, %v213_v4  ;;  %3827 = vmatmul.mubr.msk.bf16.vlgmr.msra.gmra.mrb[0].mxu0 %vm272_vm1, %v4582_v11  ;;  %v198_v11 = vld [vmem:[%s4398_s25 + $0x138] sm:$0xff] }
  0x77   : > { %3676 = vmatprep.mubr.msk.bf16.mxu1 %vm272_vm1, %v214_v5  ;;  %3859 = vmatpush3.bf16.msra.mxu0 %v2271_v6  ;;  %v217_v21 = vpack.c.bf16 %v199_v19, %v198_v11  ;;  %v716_v6 = vld [vmem:[%s4398_s25 + $0xd9] sm:$0xff]  ;;  %v721_v11 = vld [vmem:[%s4398_s25 + $0x111] sm:$0xff]  ;;  %v722_v19 = vld [vmem:[%s4398_s25 + $0x121] sm:$0xff] }
  0x78   : > { %3830 = vmatprep.mubr.msk.bf16.mxu0 %vm272_vm1, %v207_v25  ;;  %4193 = vmatprep.subr.msk.bf16.mxu0 %vm321_vm0, %v4640_v8  ;;  %v203_v25 = vld [vmem:[%s4398_s25 + $0x170] sm:$0xff]  ;;  %v4739_v13 = vpack.c.bf16 %v717_v7, %v716_v6 }
  0x79   : > { %v219_v31 = vpack.c.bf16 %v203_v25, %v202_v23 }
  0x7e   : > { %3677 = vmatmul.mubr.msk.bf16.gmra.mrb[20].mxu1 %vm272_vm1, %v215_v17  ;;  %3831 = vmatmul.mubr.msk.bf16.gmra.mrb[4].mxu0 %vm272_vm1, %v208_v30  ;;  %v699_v30 = vld [vmem:[%s4398_s25 + $0x9] sm:$0xff] }
  0x7f   : > { %3680 = vmatprep.mubr.msk.bf16.mxu1 %vm272_vm1, %v216_v18  ;;  %3834 = vmatprep.mubr.msk.bf16.mxu0 %vm272_vm1, %v209_v44  ;;  %v730_v32 = vpack.c.bf16 %v699_v30, %v698_v28  ;;  %v704_v44 = vld [vmem:[%s4398_s25 + $0x49] sm:$0xff]  ;;  %v3170_v30 = vld [vmem:[%s4398_s25 + $0x338] sm:$0xff] }
  0x80   : > { %v4694_v47 = vpack.c.bf16 %v705_v45, %v704_v44  ;;  %v3169_v28 = vld [vmem:[%s4398_s25 + $0x330] sm:$0xff]  ;;  %v3178_v44 = vld [vmem:[%s4398_s25 + $0x398] sm:$0xff] }
  0x86   : > { %3681 = vmatmul.mubr.msk.bf16.gmra.mrb[24].mxu1 %vm272_vm1, %v217_v21  ;;  %3835 = vmatmul.mubr.msk.bf16.gmra.mrb[8].mxu0 %vm272_vm1, %v210_v46  ;;  %v707_v46 = vld [vmem:[%s4398_s25 + $0x69] sm:$0xff] }
  0x87   : > { %3684 = vmatprep.mubr.msk.bf16.mxu1 %vm272_vm1, %v218_v22  ;;  %3838 = vmatprep.mubr.msk.bf16.mxu0 %vm272_vm1, %v211_v57  ;;  %v4696_v49 = vpack.c.bf16 %v707_v46, %v706_v15  ;;  %v712_v57 = vld [vmem:[%s4398_s25 + $0xa9] sm:$0xff] }
  0x88   : > { %v4724_v2 = vpack.c.bf16 %v713_v58, %v712_v57  ;;  %v3182_v46 = vld [vmem:[%s4398_s25 + $0x3c8] sm:$0xff]  ;;  %v3185_v57 = vld [vmem:[%s4398_s25 + $0x3f0] sm:$0xff]  ;;  %v3186_v58 = vld [vmem:[%s4398_s25 + $0x3f8] sm:$0xff] }
  0x8e   : > { %3685 = vmatmul.mubr.msk.bf16.gmra.mrb[28].mxu1 %vm272_vm1, %v219_v31  ;;  %3839 = vmatmul.mubr.msk.bf16.gmra.mrb[12].mxu0 %vm272_vm1, %v212_v59  ;;  %v3346_v59 = vld [vmem:[%s4398_s25 + $0x180] sm:$0xff] }
  0x8f   : > { %3690 = vmatprep.mubr.msk.bf16.mxu1 %vm272_vm1, %v730_v32  ;;  %3842 = vmatprep.mubr.msk.bf16.mxu0 %vm272_vm1, %v213_v4  ;;  %v1924_v4 = vpack.c.bf16 %v3347_v61, %v3346_v59  ;;  %v1025_v32 = vpack.c.bf16 %v3170_v30, %v3169_v28  ;;  %v3237_v28 = vld [vmem:[%s4398_s25 + $0x5a8] sm:$0xff]  ;;  %v3239_v30 = vld [vmem:[%s4398_s25 + $0x5c0] sm:$0xff] }
  0x96   : > { %3691 = vmatmul.mubr.msk.bf16.vlgmr.msra.gmra.mrb[0].mxu1 %vm272_vm1, %v4676_v39  ;;  %3843 = vmatmul.mubr.msk.bf16.gmra.mrb[16].mxu0 %vm272_vm1, %v214_v5  ;;  %v4726_v5 = vpack.c.bf16 %v715_v0, %v714_v63  ;;  %v1033_v63 = vpack.c.bf16 %v3186_v58, %v3185_v57  ;;  %v3188_v0 = vld [vmem:[%s4398_s25 + $0x410] sm:$0xff] }
  0x97   : > { %3723 = vmatpush3.bf16.msra.mxu1 %v1092_v40  ;;  %3694 = vmatprep.mubr.msk.bf16.mxu1 %vm272_vm1, %v4680_v42  ;;  %v3176_v40 = vld [vmem:[%s4398_s25 + $0x380] sm:$0xff] }
  0x98   : > { %3846 = vmatprep.mubr.msk.bf16.mxu0 %vm272_vm1, %v215_v17  ;;  %4189 = vmatprep.subr.msk.bf16.mxu1 %vm321_vm0, %v4373_v1  ;;  %v709_v1 = vld [vmem:[%s4398_s25 + $0x81] sm:$0xff]  ;;  %v4741_v17 = vpack.c.bf16 %v719_v16, %v718_v9  ;;  %v3191_v9 = vld [vmem:[%s4398_s25 + $0x438] sm:$0xff] }
  0x99   : > { %v4708_v54 = vpack.c.bf16 %v709_v1, %v708_v51  ;;  %v3192_v16 = vld [vmem:[%s4398_s25 + $0x440] sm:$0xff] }
  0x9e   : > { %3695 = vmatmul.mubr.msk.bf16.gmra.mrb[4].mxu1 %vm272_vm1, %v4694_v47  ;;  %3847 = vmatmul.mubr.msk.bf16.gmra.mrb[20].mxu0 %vm272_vm1, %v216_v18  ;;  %v2565_v18 = vsel %vm321_vm0, %v4640_v8, 0  ;;  %v723_v8 = vld [vmem:[%s4398_s25 + $0x129] sm:$0xff] }
  0x9f   : > { %3698 = vmatprep.mubr.msk.bf16.mxu1 %vm272_vm1, %v4696_v49  ;;  %3850 = vmatprep.mubr.msk.bf16.mxu0 %vm272_vm1, %v217_v21  ;;  %v4759_v20 = vpack.c.bf16 %v723_v8, %v722_v19  ;;  %v726_v21 = vld [vmem:[%s4398_s25 + $0x151] sm:$0xff]  ;;  %v3198_v8 = vld [vmem:[%s4398_s25 + $0x488] sm:$0xff] }
  0xa0   : > { %v3196_v19 = vld [vmem:[%s4398_s25 + $0x470] sm:$0xff] }
  0xa6   : > { %3699 = vmatmul.mubr.msk.bf16.gmra.mrb[8].mxu1 %vm272_vm1, %v4708_v54  ;;  %3851 = vmatmul.mubr.msk.bf16.gmra.mrb[24].mxu0 %vm272_vm1, %v218_v22  ;;  %v727_v22 = vld [vmem:[%s4398_s25 + $0x159] sm:$0xff] }
  0xa7   : > { %3702 = vmatprep.mubr.msk.bf16.mxu1 %vm272_vm1, %v4710_v56  ;;  %3854 = vmatprep.mubr.msk.bf16.mxu0 %vm272_vm1, %v219_v31  ;;  %v4775_v25 = vpack.c.bf16 %v727_v22, %v726_v21  ;;  %v3200_v21 = vld [vmem:[%s4398_s25 + $0x4a0] sm:$0xff]  ;;  %v3235_v22 = vld [vmem:[%s4398_s25 + $0x590] sm:$0xff] }
  0xae   : > { %3703 = vmatmul.mubr.msk.bf16.gmra.mrb[12].mxu1 %vm272_vm1, %v4724_v2  ;;  %3855 = vmatmul.mubr.msk.bf16.gmra.mrb[28].mxu0 %vm272_vm1, %v1924_v4  ;;  %v3190_v4 = vld [vmem:[%s4398_s25 + $0x428] sm:$0xff] }
  0xaf   : > { %3706 = vmatprep.mubr.msk.bf16.mxu1 %vm272_vm1, %v4726_v5  ;;  %3860 = vmatprep.mubr.msk.bf16.mxu0 %vm272_vm1, %v4406_v14  ;;  %v720_v14 = vld [vmem:[%s4398_s25 + $0x109] sm:$0xff] }
  0xb0   : > { %v4757_v27 = vpack.c.bf16 %v721_v11, %v720_v14  ;;  %v1036_v14 = vpack.c.bf16 %v3192_v16, %v3191_v9 }
  0xb6   : > { %3707 = vmatmul.mubr.msk.bf16.gmra.mrb[16].mxu1 %vm272_vm1, %v4739_v13  ;;  %3861 = vmatmul.mubr.msk.bf16.vlgmr.msra.gmra.mrb[0].mxu0 %vm272_vm1, %v4420_v24  ;;  %v724_v24 = vld [vmem:[%s4398_s25 + $0x139] sm:$0xff] }
  0xb7   : > { %3710 = vmatprep.mubr.msk.bf16.mxu1 %vm272_vm1, %v4741_v17  ;;  %3893 = vmatpush3.bf16.msra.mxu0 %v2565_v18  ;;  %v3194_v18 = vld [vmem:[%s4398_s25 + $0x458] sm:$0xff] }
  0xb8   : > { %3864 = vmatprep.mubr.msk.bf16.mxu0 %vm272_vm1, %v4446_v36  ;;  %v725_v36 = vld [vmem:[%s4398_s25 + $0x141] sm:$0xff] }
  0xb9   : > { %v4773_v23 = vpack.c.bf16 %v725_v36, %v724_v24 }
  0xbe   : > { %3711 = vmatmul.mubr.msk.bf16.gmra.mrb[20].mxu1 %vm272_vm1, %v4757_v27  ;;  %3865 = vmatmul.mubr.msk.bf16.gmra.mrb[4].mxu0 %vm272_vm1, %v4450_v38  ;;  %v728_v38 = vld [vmem:[%s4398_s25 + $0x169] sm:$0xff] }
  0xbf   : > { %3714 = vmatprep.mubr.msk.bf16.mxu1 %vm272_vm1, %v4759_v20  ;;  %3868 = vmatprep.mubr.msk.bf16.mxu0 %vm272_vm1, %v4466_v48  ;;  %v729_v48 = vld [vmem:[%s4398_s25 + $0x171] sm:$0xff] }
  0xc0   : > { %v4789_v31 = vpack.c.bf16 %v729_v48, %v728_v38 }
  0xc6   : > { %3715 = vmatmul.mubr.msk.bf16.gmra.mrb[24].mxu1 %vm272_vm1, %v4773_v23  ;;  %3869 = vmatmul.mubr.msk.bf16.gmra.mrb[8].mxu0 %vm272_vm1, %v4468_v50  ;;  %v3171_v50 = vld [vmem:[%s4398_s25 + $0x348] sm:$0xff] }
  0xc7   : > { %3718 = vmatprep.mubr.msk.bf16.mxu1 %vm272_vm1, %v4775_v25  ;;  %3872 = vmatprep.mubr.msk.bf16.mxu0 %vm272_vm1, %v4484_v60  ;;  %v3173_v60 = vld [vmem:[%s4398_s25 + $0x360] sm:$0xff]  ;;  %v1026_v35 = vpack.c.bf16 %v3172_v33, %v3171_v50  ;;  %v3241_v33 = vld [vmem:[%s4398_s25 + $0x5d8] sm:$0xff] }
  0xc8   : > { %v1027_v37 = vpack.c.bf16 %v3174_v34, %v3173_v60  ;;  %v3243_v60 = vld [vmem:[%s4398_s25 + $0x5f0] sm:$0xff] }
  0xce   : > { %3719 = vmatmul.mubr.msk.bf16.gmra.mrb[28].mxu1 %vm272_vm1, %v4789_v31  ;;  %3873 = vmatmul.mubr.msk.bf16.gmra.mrb[12].mxu0 %vm272_vm1, %v4486_v62  ;;  %v3175_v62 = vld [vmem:[%s4398_s25 + $0x378] sm:$0xff] }
  0xcf   : > { %3724 = vmatprep.mubr.msk.bf16.mxu1 %vm272_vm1, %v1025_v32  ;;  %3876 = vmatprep.mubr.msk.bf16.mxu0 %vm272_vm1, %v4502_v10  ;;  %v3177_v10 = vld [vmem:[%s4398_s25 + $0x390] sm:$0xff]  ;;  %v1028_v45 = vpack.c.bf16 %v3176_v40, %v3175_v62  ;;  %v3247_v62 = vld [vmem:[%s4398_s25 + $0x620] sm:$0xff] }
  0xd0   : > { %v1029_v15 = vpack.c.bf16 %v3178_v44, %v3177_v10  ;;  %v3249_v44 = vld [vmem:[%s4398_s25 + $0x638] sm:$0xff] }
  0xd6   : > { %3725 = vmatmul.mubr.msk.bf16.vlgmr.msra.gmra.mrb[0].mxu1 %vm272_vm1, %v1026_v35  ;;  %3877 = vmatmul.mubr.msk.bf16.gmra.mrb[16].mxu0 %vm272_vm1, %v4504_v12  ;;  %v3180_v12 = vld [vmem:[%s4398_s25 + $0x3b0] sm:$0xff] }
  0xd7   : > { %3927 = vmatpush3.bf16.msra.mxu1 %v4381_v3  ;;  %3728 = vmatprep.mubr.msk.bf16.mxu1 %vm272_vm1, %v1027_v37  ;;  %v3179_v3 = vld [vmem:[%s4398_s25 + $0x3a8] sm:$0xff] }
  0xd8   : > { %3880 = vmatprep.mubr.msk.bf16.mxu0 %vm272_vm1, %v4529_v26  ;;  %v3181_v26 = vld [vmem:[%s4398_s25 + $0x3c0] sm:$0xff]  ;;  %v1030_v51 = vpack.c.bf16 %v3180_v12, %v3179_v3  ;;  %v3245_v37 = vld [vmem:[%s4398_s25 + $0x608] sm:$0xff] }
  0xd9   : > { %v1031_v1 = vpack.c.bf16 %v3182_v46, %v3181_v26 }
  0xde   : > { %3729 = vmatmul.mubr.msk.bf16.gmra.mrb[4].mxu1 %vm272_vm1, %v1028_v45  ;;  %3881 = vmatmul.mubr.msk.bf16.gmra.mrb[20].mxu0 %vm272_vm1, %v4531_v29  ;;  %v3183_v29 = vld [vmem:[%s4398_s25 + $0x3d8] sm:$0xff]  ;;  %v3444_v45 = vld [vmem:[%s4398_s25 + $0x181] sm:$0xff] }
  0xdf   : > { %3732 = vmatprep.mubr.msk.bf16.mxu1 %vm272_vm1, %v1029_v15  ;;  %3884 = vmatprep.mubr.msk.bf16.mxu0 %vm272_vm1, %v4547_v41  ;;  %v3396_v41 = vld [vmem:[%s4398_s25 + $0x320] sm:$0xff]  ;;  %v1032_v59 = vpack.c.bf16 %v3184_v52, %v3183_v29  ;;  %v3445_v15 = vld [vmem:[%s4398_s25 + $0x189] sm:$0xff] }
  0xe0   : > { %v2219_v61 = vpack.c.bf16 %v3396_v41, %v3395_v53 }
  0xe6   : > { %3733 = vmatmul.mubr.msk.bf16.gmra.mrb[8].mxu1 %vm272_vm1, %v1030_v51  ;;  %3885 = vmatmul.mubr.msk.bf16.gmra.mrb[24].mxu0 %vm272_vm1, %v4549_v43  ;;  %v3187_v43 = vld [vmem:[%s4398_s25 + $0x408] sm:$0xff] }
  0xe7   : > { %3736 = vmatprep.mubr.msk.bf16.mxu1 %vm272_vm1, %v1031_v1  ;;  %3888 = vmatprep.mubr.msk.bf16.mxu0 %vm272_vm1, %v4565_v55  ;;  %v3189_v55 = vld [vmem:[%s4398_s25 + $0x420] sm:$0xff]  ;;  %v1034_v6 = vpack.c.bf16 %v3188_v0, %v3187_v43 }
  0xe8   : > { %v1035_v7 = vpack.c.bf16 %v3190_v4, %v3189_v55  ;;  %v4929_v0 = vld [vmem:[%s5171_s2] ss:$0 sm:$0xff] }
  0xee   : > { %3737 = vmatmul.mubr.msk.bf16.gmra.mrb[12].mxu1 %vm272_vm1, %v1032_v59  ;;  %3889 = vmatmul.mubr.msk.bf16.gmra.mrb[28].mxu0 %vm272_vm1, %v2219_v61 }
  0xef   : > { %3740 = vmatprep.mubr.msk.bf16.mxu1 %vm272_vm1, %v1033_v63  ;;  %3894 = vmatprep.mubr.msk.bf16.mxu0 %vm272_vm1, %v4676_v39  ;;  %v3193_v39 = vld [vmem:[%s4398_s25 + $0x450] sm:$0xff] }
  0xf0   : > { %v1037_v11 = vpack.c.bf16 %v3194_v18, %v3193_v39 }
  0xf6   : > { %3741 = vmatmul.mubr.msk.bf16.gmra.mrb[16].mxu1 %vm272_vm1, %v1034_v6  ;;  %3895 = vmatmul.mubr.msk.bf16.vlgmr.msra.gmra.mrb[0].mxu0 %vm272_vm1, %v4680_v42  ;;  %v3195_v42 = vld [vmem:[%s4398_s25 + $0x468] sm:$0xff] }
  0xf7   : > { %3744 = vmatprep.mubr.msk.bf16.mxu1 %vm272_vm1, %v1035_v7  ;;  %3898 = vmatprep.mubr.msk.bf16.mxu0 %vm272_vm1, %v4694_v47  ;;  %v3197_v47 = vld [vmem:[%s4398_s25 + $0x480] sm:$0xff]  ;;  %v1038_v24 = vpack.c.bf16 %v3196_v19, %v3195_v42 }
  0xf8   : > { %v1039_v36 = vpack.c.bf16 %v3198_v8, %v3197_v47 }
  0xfe   : > { %3745 = vmatmul.mubr.msk.bf16.gmra.mrb[20].mxu1 %vm272_vm1, %v1036_v14  ;;  %3899 = vmatmul.mubr.msk.bf16.gmra.mrb[4].mxu0 %vm272_vm1, %v4696_v49  ;;  %v3199_v49 = vld [vmem:[%s4398_s25 + $0x498] sm:$0xff] }
  0xff   : > { %3748 = vmatprep.mubr.msk.bf16.mxu1 %vm272_vm1, %v1037_v11  ;;  %3902 = vmatprep.mubr.msk.bf16.mxu0 %vm272_vm1, %v4708_v54  ;;  %v3234_v54 = vld [vmem:[%s4398_s25 + $0x588] sm:$0xff]  ;;  %v1040_v38 = vpack.c.bf16 %v3200_v21, %v3199_v49 }
 0x100   : > { %v1328_v48 = vpack.c.bf16 %v3235_v22, %v3234_v54 }
 0x106   : > { %3749 = vmatmul.mubr.msk.bf16.gmra.mrb[24].mxu1 %vm272_vm1, %v1038_v24  ;;  %3903 = vmatmul.mubr.msk.bf16.gmra.mrb[8].mxu0 %vm272_vm1, %v4710_v56  ;;  %v3236_v56 = vld [vmem:[%s4398_s25 + $0x5a0] sm:$0xff] }
 0x107   : > { %3752 = vmatprep.mubr.msk.bf16.mxu1 %vm272_vm1, %v1039_v36  ;;  %3906 = vmatprep.mubr.msk.bf16.mxu0 %vm272_vm1, %v4724_v2  ;;  %v3238_v2 = vld [vmem:[%s4398_s25 + $0x5b8] sm:$0xff]  ;;  %v1329_v32 = vpack.c.bf16 %v3237_v28, %v3236_v56 }
 0x108   : > { %v1330_v50 = vpack.c.bf16 %v3239_v30, %v3238_v2 }
 0x10e   : > { %3753 = vmatmul.mubr.msk.bf16.gmra.mrb[28].mxu1 %vm272_vm1, %v1040_v38  ;;  %3907 = vmatmul.mubr.msk.bf16.gmra.mrb[12].mxu0 %vm272_vm1, %v4726_v5  ;;  %v3240_v5 = vld [vmem:[%s4398_s25 + $0x5d0] sm:$0xff] }
 0x10f   : > { %3774 = vmatprep.mubr.msk.bf16.mxu1 %vm272_vm1, %v1328_v48  ;;  %3910 = vmatprep.mubr.msk.bf16.mxu0 %vm272_vm1, %v4739_v13  ;;  %v3242_v13 = vld [vmem:[%s4398_s25 + $0x5e8] sm:$0xff]  ;;  %v1331_v34 = vpack.c.bf16 %v3241_v33, %v3240_v5 }
 0x110   : > { %v1332_v35 = vpack.c.bf16 %v3243_v60, %v3242_v13 }
 0x116   : > { %3775 = vmatmul.mubr.msk.bf16.vlgmr.msra.gmra.mrb[16].mxu1 %vm272_vm1, %v1329_v32  ;;  %3911 = vmatmul.mubr.msk.bf16.gmra.mrb[16].mxu0 %vm272_vm1, %v4741_v17  ;;  %v3244_v17 = vld [vmem:[%s4398_s25 + $0x600] sm:$0xff] }
 0x117   : > { %3778 = vmatprep.mubr.msk.bf16.mxu1 %vm272_vm1, %v1330_v50  ;;  %3914 = vmatprep.mubr.msk.bf16.mxu0 %vm272_vm1, %v4757_v27  ;;  %v3246_v27 = vld [vmem:[%s4398_s25 + $0x618] sm:$0xff]  ;;  %v1333_v40 = vpack.c.bf16 %v3245_v37, %v3244_v17 }
 0x118   : > { %v1334_v10 = vpack.c.bf16 %v3247_v62, %v3246_v27 }
 0x11e   : > { %3779 = vmatmul.mubr.msk.bf16.gmra.mrb[20].mxu1 %vm272_vm1, %v1331_v34  ;;  %3915 = vmatmul.mubr.msk.bf16.gmra.mrb[20].mxu0 %vm272_vm1, %v4759_v20  ;;  %v3248_v20 = vld [vmem:[%s4398_s25 + $0x630] sm:$0xff] }
 0x11f   : > { %3782 = vmatprep.mubr.msk.bf16.mxu1 %vm272_vm1, %v1332_v35  ;;  %3918 = vmatprep.mubr.msk.bf16.mxu0 %vm272_vm1, %v4773_v23  ;;  %v1335_v3 = vpack.c.bf16 %v3249_v44, %v3248_v20  ;;  %v2513_v23 = vpack.c.bf16 %v3445_v15, %v3444_v45 }
 0x126   : > { %3783 = vmatmul.mubr.msk.bf16.gmra.mrb[24].mxu1 %vm272_vm1, %v1333_v40  ;;  %3919 = vmatmul.mubr.msk.bf16.gmra.mrb[24].mxu0 %vm272_vm1, %v4775_v25 }
 0x127   : > { %3786 = vmatprep.mubr.msk.bf16.mxu1 %vm272_vm1, %v1334_v10  ;;  %3922 = vmatprep.mubr.msk.bf16.mxu0 %vm272_vm1, %v4789_v31 }
 0x12e   : > { %3787 = vmatmul.mubr.msk.bf16.gmra.mrb[28].mxu1 %vm272_vm1, %v1335_v3  ;;  %3923 = vmatmul.mubr.msk.bf16.gmra.mrb[28].mxu0 %vm272_vm1, %v2513_v23 }
 0x1a9   : > { %v3726_v12 = vpop.f32.mrb[0].mxu1 }
 0x1aa   : > { %v1128_v26 = vpop.f32.mrb[1].mxu1 }
 0x1ab   : > { %v3727_v46 = vpop.f32.mrb[2].mxu1 }
 0x1ac   : > { %v1131_v51 = vpop.f32.mrb[3].mxu1 }
 0x1b1   : > { %v3730_v25 = vpop.f32.mrb[4].mxu1 }
 0x1b2   : > { %v1144_v1 = vpop.f32.mrb[5].mxu1 }
 0x1b3   : > { %v3731_v29 = vpop.f32.mrb[6].mxu1 }
 0x1b4   : > { %v1147_v52 = vpop.f32.mrb[7].mxu1 }
 0x1b9   : > { %v3734_v53 = vpop.f32.mrb[8].mxu1 }
 0x1ba   : > { %v1160_v41 = vpop.f32.mrb[9].mxu1 }
 0x1bb   : > { %v3735_v57 = vpop.f32.mrb[10].mxu1 }
 0x1bc   : > { %v4916_v31 = vpop.f32.mrb[11].mxu1 }
 0x1c1   : > { %v4918_v58 = vpop.f32.mrb[12].mxu1 }
 0x1c2   : > { %v4920_v59 = vpop.f32.mrb[13].mxu1 }
 0x1c3   : > { %v4922_v61 = vpop.f32.mrb[14].mxu1 }
 0x1c4   : > { %v4924_v63 = vpop.f32.mrb[15].mxu1 }
 0x1c9   : > { %v3896_v43 = vpop.f32.mrb[0].mxu0 }
 0x1ca   : > { %v3928_v55 = vadd.f32 %v3896_v43, %v3726_v12  ;;  %v2601_v4 = vpop.f32.mrb[1].mxu0 }
 0x1cb   : > { %v3929_v6 = vadd.f32 %v2601_v4, %v1128_v26  ;;  %v3897_v7 = vpop.f32.mrb[2].mxu0 }
 0x1cc   : > { %v4932_v9 = vadd.f32 %v3928_v55, %v4929_v0  ;;  %v3930_v16 = vadd.f32 %v3897_v7, %v3727_v46  ;;  %v2604_v39 = vpop.f32.mrb[3].mxu0 }
 0x1cd   : > { %v4935_v18 = vadd.f32 %v3929_v6, %v4929_v0  ;;  %v3931_v14 = vadd.f32 %v2604_v39, %v1131_v51 }
 0x1ce   : > { %v2801_v11 = vsub.f32 0.0, %v4932_v9  ;;  %v4939_v42 = vadd.f32 %v3930_v16, %v4929_v0 }
 0x1cf   : > { %v2799_v19 = vsub.f32 0.0, %v4935_v18  ;;  %v4943_v47 = vadd.f32 %v3931_v14, %v4929_v0 }
 0x1d0   : > { %v2835_v8 = vmul.f32 1.442695, %v2801_v11  ;;  %v2802_v24 = vsub.f32 0.0, %v4939_v42 }
 0x1d1   : > { %v2831_v36 = vmul.f32 1.442695, %v2799_v19  ;;  %v2800_v49 = vsub.f32 0.0, %v4943_v47  ;;  %v3900_v21 = vpop.f32.mrb[4].mxu0 }
 0x1d2   : > { %4203 = vpow2.f32 %v2835_v8  ;;  %v2837_v54 = vmul.f32 1.442695, %v2802_v24  ;;  %v3932_v22 = vadd.f32 %v3900_v21, %v3730_v25  ;;  %v2617_v38 = vpop.f32.mrb[5].mxu0 }
 0x1d3   : > { %4205 = vpow2.f32 %v2831_v36  ;;  %v2833_v48 = vmul.f32 1.442695, %v2800_v49  ;;  %v3933_v56 = vadd.f32 %v2617_v38, %v1144_v1  ;;  %v3901_v28 = vpop.f32.mrb[6].mxu0 }
 0x1d4   : > { %4207 = vpow2.f32 %v2837_v54  ;;  %v4948_v2 = vadd.f32 %v3932_v22, %v4929_v0  ;;  %v3934_v30 = vadd.f32 %v3901_v28, %v3731_v29  ;;  %v2620_v32 = vpop.f32.mrb[7].mxu0 }
 0x1d5   : > { %4209 = vpow2.f32 %v2833_v48  ;;  %v4951_v50 = vadd.f32 %v3933_v56, %v4929_v0  ;;  %v3935_v5 = vadd.f32 %v2620_v32, %v1147_v52 }
 0x1d6   : > { %v2805_v33 = vsub.f32 0.0, %v4948_v2  ;;  %v4955_v13 = vadd.f32 %v3934_v30, %v4929_v0 }
 0x1d7   : > { %v2803_v60 = vsub.f32 0.0, %v4951_v50  ;;  %v4959_v34 = vadd.f32 %v3935_v5, %v4929_v0 }
 0x1d8   : > { %v2843_v35 = vmul.f32 1.442695, %v2805_v33  ;;  %v2806_v17 = vsub.f32 0.0, %v4955_v13 }
 0x1d9   : > { %v2839_v37 = vmul.f32 1.442695, %v2803_v60  ;;  %v2804_v27 = vsub.f32 0.0, %v4959_v34  ;;  %v3904_v62 = vpop.f32.mrb[8].mxu0 }
 0x1da   : > { %4211 = vpow2.f32 %v2843_v35  ;;  %v2845_v40 = vmul.f32 1.442695, %v2806_v17  ;;  %v3936_v10 = vadd.f32 %v3904_v62, %v3734_v53  ;;  %v2633_v20 = vpop.f32.mrb[9].mxu0 }
 0x1db   : > { %4213 = vpow2.f32 %v2839_v37  ;;  %v2841_v44 = vmul.f32 1.442695, %v2804_v27  ;;  %v3937_v45 = vadd.f32 %v2633_v20, %v1160_v41  ;;  %v3905_v15 = vpop.f32.mrb[10].mxu0 }
 0x1dc   : > { %v4204_v3 = vpop.eup %4203  ;;  %4215 = vpow2.f32 %v2845_v40  ;;  %v4964_v23 = vadd.f32 %v3936_v10, %v4929_v0  ;;  %v3938_v12 = vadd.f32 %v3905_v15, %v3735_v57  ;;  %v2636_v26 = vpop.f32.mrb[11].mxu0 }
 0x1dd   : > { %v4206_v46 = vpop.eup %4205  ;;  %v2897_v51 = vadd.f32 1.0, %v4204_v3  ;;  %4217 = vpow2.f32 %v2841_v44  ;;  %v4967_v25 = vadd.f32 %v3937_v45, %v4929_v0  ;;  %v3939_v1 = vadd.f32 %v2636_v26, %v4916_v31 }
 0x1de   : > { %v4208_v29 = vpop.eup %4207  ;;  %v2895_v52 = vadd.f32 1.0, %v4206_v46  ;;  %v2809_v53 = vsub.f32 0.0, %v4964_v23  ;;  %v4972_v41 = vadd.f32 %v3938_v12, %v4929_v0 }
 0x1df   : > { %v4210_v43 = vpop.eup %4209  ;;  %4219 = vrcp.f32 %v2897_v51  ;;  %v2898_v55 = vadd.f32 1.0, %v4208_v29  ;;  %v2807_v57 = vsub.f32 0.0, %v4967_v25  ;;  %v4976_v4 = vadd.f32 %v3939_v1, %v4929_v0 }
 0x1e0   : > { %4221 = vrcp.f32 %v2895_v52  ;;  %v2896_v6 = vadd.f32 1.0, %v4210_v43  ;;  %v2851_v7 = vmul.f32 1.442695, %v2809_v53  ;;  %v2810_v31 = vsub.f32 0.0, %v4972_v41 }
 0x1e1   : > { %4223 = vrcp.f32 %v2898_v55  ;;  %v2847_v16 = vmul.f32 1.442695, %v2807_v57  ;;  %v2808_v39 = vsub.f32 0.0, %v4976_v4  ;;  %v3908_v14 = vpop.f32.mrb[12].mxu0 }
 0x1e2   : > { %4225 = vrcp.f32 %v2896_v6  ;;  %v2853_v11 = vmul.f32 1.442695, %v2810_v31  ;;  %v3940_v19 = vadd.f32 %v3908_v14, %v4918_v58  ;;  %v2649_v8 = vpop.f32.mrb[13].mxu0 }
 0x1e3   : > { %4227 = vpow2.f32 %v2851_v7  ;;  %v2849_v24 = vmul.f32 1.442695, %v2808_v39  ;;  %v3941_v36 = vadd.f32 %v2649_v8, %v4920_v59  ;;  %v3909_v49 = vpop.f32.mrb[14].mxu0 }
 0x1e4   : > { %v4212_v21 = vpop.eup %4211  ;;  %4229 = vpow2.f32 %v2847_v16  ;;  %v4983_v54 = vadd.f32 %v3940_v19, %v4929_v0  ;;  %v3942_v22 = vadd.f32 %v3909_v49, %v4922_v61  ;;  %v2652_v38 = vpop.f32.mrb[15].mxu0 }
 0x1e5   : > { %v4214_v48 = vpop.eup %4213  ;;  %v2901_v56 = vadd.f32 1.0, %v4212_v21  ;;  %4231 = vpow2.f32 %v2853_v11  ;;  %v4987_v58 = vadd.f32 %v3941_v36, %v4929_v0  ;;  %v3943_v28 = vadd.f32 %v2652_v38, %v4924_v63 }
 0x1e6   : > { %v4216_v30 = vpop.eup %4215  ;;  %v2899_v59 = vadd.f32 1.0, %v4214_v48  ;;  %4233 = vpow2.f32 %v2849_v24  ;;  %v2813_v32 = vsub.f32 0.0, %v4983_v54  ;;  %v4993_v5 = vadd.f32 %v3942_v22, %v4929_v0 }
 0x1e7   : > { %v4218_v33 = vpop.eup %4217  ;;  %4235 = vrcp.f32 %v2901_v56  ;;  %v2902_v61 = vadd.f32 1.0, %v4216_v30  ;;  %v2811_v60 = vsub.f32 0.0, %v4987_v58  ;;  %v4997_v35 = vadd.f32 %v3943_v28, %v4929_v0 }
 0x1e8   : > { %4237 = vrcp.f32 %v2899_v59  ;;  %v2900_v17 = vadd.f32 1.0, %v4218_v33  ;;  %v2859_v63 = vmul.f32 1.442695, %v2813_v32  ;;  %v2814_v37 = vsub.f32 0.0, %v4993_v5 }
 0x1e9   : > { %v3776_v27 = vpop.f32.mrb[16].mxu1  ;;  %v4220_v62 = vpop.eup %4219  ;;  %4239 = vrcp.f32 %v2902_v61  ;;  %v2855_v40 = vmul.f32 1.442695, %v2811_v60  ;;  %v2812_v10 = vsub.f32 0.0, %v4997_v35 }
 0x1ea   : > { %v3912_v20 = vpop.f32.mrb[16].mxu0  ;;  %v1487_v44 = vpop.f32.mrb[17].mxu1  ;;  %v2961_v15 = vmul.f32 %v4220_v62, %v4932_v9  ;;  %4241 = vrcp.f32 %v2900_v17  ;;  %v2861_v3 = vmul.f32 1.442695, %v2814_v37 }
 0x1eb   : > { %v4222_v45 = vpop.eup %4221  ;;  %v3944_v12 = vadd.f32 %v3912_v20, %v3776_v27  ;;  %v2665_v26 = vpop.f32.mrb[17].mxu0  ;;  %4243 = vpow2.f32 %v2859_v63  ;;  %v2857_v29 = vmul.f32 1.442695, %v2812_v10 }
 0x1ec   : > { %v3777_v46 = vpop.f32.mrb[18].mxu1  ;;  %v4224_v51 = vpop.eup %4223  ;;  %v2959_v1 = vmul.f32 %v4222_v45, %v4935_v18  ;;  %v3945_v52 = vadd.f32 %v2665_v26, %v1487_v44  ;;  %2994 = vst.msk [vmem:[%s5003_s15 + $0x10] sm:$0xff] %vm2991_vm2, %v2961_v15  ;;  %4245 = vpow2.f32 %v2855_v40 }
 0x1ed   : > { %v3913_v53 = vpop.f32.mrb[18].mxu0  ;;  %v1490_v43 = vpop.f32.mrb[19].mxu1  ;;  %v2962_v9 = vmul.f32 %v4224_v51, %v4939_v42  ;;  %v5012_v57 = vadd.f32 %v3944_v12, %v4929_v0  ;;  %4247 = vpow2.f32 %v2861_v3 }
 0x1ee   : > { %v4226_v55 = vpop.eup %4225  ;;  %v3946_v6 = vadd.f32 %v3913_v53, %v3777_v46  ;;  %v2668_v7 = vpop.f32.mrb[19].mxu0  ;;  %2992 = vst.msk [vmem:[%s5003_s15] sm:$0xff] %vm2991_vm2, %v2959_v1  ;;  %v5018_v16 = vadd.f32 %v3945_v52, %v4929_v0  ;;  %4249 = vpow2.f32 %v2857_v29 }
 0x1ef   : > { %v4228_v31 = vpop.eup %4227  ;;  %v2960_v18 = vmul.f32 %v4226_v55, %v4943_v47  ;;  %v3947_v39 = vadd.f32 %v2668_v7, %v1490_v43  ;;  %2995 = vst.msk [vmem:[%s5003_s15 + $0x18] sm:$0xff] %vm2991_vm2, %v2962_v9  ;;  %v2817_v11 = vsub.f32 0.0, %v5012_v57 }
 0x1f0   : > { %v4230_v14 = vpop.eup %4229  ;;  %v2905_v42 = vadd.f32 1.0, %v4228_v31  ;;  %v5024_v19 = vadd.f32 %v3946_v6, %v4929_v0  ;;  %v2815_v47 = vsub.f32 0.0, %v5018_v16 }
 0x1f1   : > { %v4232_v8 = vpop.eup %4231  ;;  %2993 = vst.msk [vmem:[%s5003_s15 + $0x8] sm:$0xff] %vm2991_vm2, %v2960_v18  ;;  %v2903_v24 = vadd.f32 1.0, %v4230_v14  ;;  %v5030_v36 = vadd.f32 %v3947_v39, %v4929_v0  ;;  %v2867_v22 = vmul.f32 1.442695, %v2817_v11  ;;  %v3780_v48 = vpop.f32.mrb[20].mxu1 }
 0x1f2   : > { %v4234_v49 = vpop.eup %4233  ;;  %4251 = vrcp.f32 %v2905_v42  ;;  %v2906_v21 = vadd.f32 1.0, %v4232_v8  ;;  %v2818_v38 = vsub.f32 0.0, %v5024_v19  ;;  %v2863_v30 = vmul.f32 1.442695, %v2815_v47  ;;  %v3916_v32 = vpop.f32.mrb[20].mxu0 }
 0x1f3   : > { %v4236_v56 = vpop.eup %4235  ;;  %4253 = vrcp.f32 %v2903_v24  ;;  %v2904_v28 = vadd.f32 1.0, %v4234_v49  ;;  %v2816_v59 = vsub.f32 0.0, %v5030_v36  ;;  %v1503_v33 = vpop.f32.mrb[21].mxu1  ;;  %v3948_v63 = vadd.f32 %v3916_v32, %v3780_v48 }
 0x1f4   : > { %v4238_v61 = vpop.eup %4237  ;;  %v2965_v60 = vmul.f32 %v4236_v56, %v4948_v2  ;;  %4255 = vrcp.f32 %v2906_v21  ;;  %v2869_v17 = vmul.f32 1.442695, %v2818_v38  ;;  %v2681_v37 = vpop.f32.mrb[21].mxu0 }
 0x1f5   : > { %v3781_v27 = vpop.f32.mrb[22].mxu1  ;;  %v4240_v62 = vpop.eup %4239  ;;  %v2963_v40 = vmul.f32 %v4238_v61, %v4951_v50  ;;  %4257 = vrcp.f32 %v2904_v28  ;;  %v2865_v10 = vmul.f32 1.442695, %v2816_v59  ;;  %v3949_v20 = vadd.f32 %v2681_v37, %v1503_v33 }
 0x1f6   : > { %v3917_v44 = vpop.f32.mrb[22].mxu0  ;;  %v1506_v45 = vpop.f32.mrb[23].mxu1  ;;  %2998 = vst.msk [vmem:[%s5003_s15 + $0x30] sm:$0xff] %vm2991_vm2, %v2965_v60  ;;  %v2966_v2 = vmul.f32 %v4240_v62, %v4955_v13  ;;  %4259 = vpow2.f32 %v2867_v22  ;;  %v5040_v3 = vadd.f32 %v3948_v63, %v4929_v0 }
 0x1f7   : > { %v4242_v15 = vpop.eup %4241  ;;  %v3950_v12 = vadd.f32 %v3917_v44, %v3781_v27  ;;  %v2684_v26 = vpop.f32.mrb[23].mxu0  ;;  %2996 = vst.msk [vmem:[%s5003_s15 + $0x20] sm:$0xff] %vm2991_vm2, %v2963_v40  ;;  %4261 = vpow2.f32 %v2863_v30  ;;  %v5046_v51 = vadd.f32 %v3949_v20, %v4929_v0 }
 0x1f8   : > { %v4244_v46 = vpop.eup %4243  ;;  %v2964_v50 = vmul.f32 %v4242_v15, %v4959_v34  ;;  %v3951_v1 = vadd.f32 %v2684_v26, %v1506_v45  ;;  %2999 = vst.msk [vmem:[%s5003_s15 + $0x38] sm:$0xff] %vm2991_vm2, %v2966_v2  ;;  %4263 = vpow2.f32 %v2869_v17  ;;  %v2821_v52 = vsub.f32 0.0, %v5040_v3 }
 0x1f9   : > { %v4246_v29 = vpop.eup %4245  ;;  %v2909_v13 = vadd.f32 1.0, %v4244_v46  ;;  %v5052_v53 = vadd.f32 %v3950_v12, %v4929_v0  ;;  %4265 = vpow2.f32 %v2865_v10  ;;  %v2819_v34 = vsub.f32 0.0, %v5046_v51  ;;  %v3784_v39 = vpop.f32.mrb[24].mxu1 }
 0x1fa   : > { %v4248_v43 = vpop.eup %4247  ;;  %2997 = vst.msk [vmem:[%s5003_s15 + $0x28] sm:$0xff] %vm2991_vm2, %v2964_v50  ;;  %v2907_v55 = vadd.f32 1.0, %v4246_v29  ;;  %v5058_v9 = vadd.f32 %v3951_v1, %v4929_v0  ;;  %v2875_v31 = vmul.f32 1.442695, %v2821_v52  ;;  %v3920_v8 = vpop.f32.mrb[24].mxu0 }
 0x1fb   : > { %v4250_v6 = vpop.eup %4249  ;;  %4267 = vrcp.f32 %v2909_v13  ;;  %v2910_v7 = vadd.f32 1.0, %v4248_v43  ;;  %v2822_v18 = vsub.f32 0.0, %v5052_v53  ;;  %v2871_v42 = vmul.f32 1.442695, %v2819_v34  ;;  %v1519_v24 = vpop.f32.mrb[25].mxu1 }
 0x1fc   : > { %4269 = vrcp.f32 %v2907_v55  ;;  %v2908_v14 = vadd.f32 1.0, %v4250_v6  ;;  %v2820_v11 = vsub.f32 0.0, %v5058_v9  ;;  %v4252_v47 = vpop.eup %4251  ;;  %v3952_v21 = vadd.f32 %v3920_v8, %v3784_v39  ;;  %v2697_v22 = vpop.f32.mrb[25].mxu0 }
 0x1fd   : > { %4271 = vrcp.f32 %v2910_v7  ;;  %v2877_v49 = vmul.f32 1.442695, %v2822_v18  ;;  %v3785_v38 = vpop.f32.mrb[26].mxu1  ;;  %v4254_v48 = vpop.eup %4253  ;;  %v2969_v56 = vmul.f32 %v4252_v47, %v4964_v23  ;;  %v3953_v30 = vadd.f32 %v2697_v22, %v1519_v24 }
 0x1fe   : > { %4273 = vrcp.f32 %v2908_v14  ;;  %v2873_v28 = vmul.f32 1.442695, %v2820_v11  ;;  %v3921_v59 = vpop.f32.mrb[26].mxu0  ;;  %v1522_v32 = vpop.f32.mrb[27].mxu1  ;;  %v2967_v61 = vmul.f32 %v4254_v48, %v4967_v25  ;;  %v5065_v60 = vadd.f32 %v3952_v21, %v4929_v0 }
 0x1ff   : > { %v4256_v33 = vpop.eup %4255  ;;  %4275 = vpow2.f32 %v2875_v31  ;;  %v3954_v17 = vadd.f32 %v3921_v59, %v3785_v38  ;;  %v2700_v63 = vpop.f32.mrb[27].mxu0  ;;  %3002 = vst.msk [vmem:[%s5003_s15 + $0x50] sm:$0xff] %vm2991_vm2, %v2969_v56  ;;  %v5071_v27 = vadd.f32 %v3953_v30, %v4929_v0 }
 0x200   : > { %v4258_v37 = vpop.eup %4257  ;;  %v2970_v23 = vmul.f32 %v4256_v33, %v4972_v41  ;;  %4277 = vpow2.f32 %v2871_v42  ;;  %v3955_v62 = vadd.f32 %v2700_v63, %v1522_v32  ;;  %3000 = vst.msk [vmem:[%s5003_s15 + $0x40] sm:$0xff] %vm2991_vm2, %v2967_v61  ;;  %v2825_v10 = vsub.f32 0.0, %v5065_v60 }
 0x201   : > { %v4260_v40 = vpop.eup %4259  ;;  %v2968_v25 = vmul.f32 %v4258_v37, %v4976_v4  ;;  %4279 = vpow2.f32 %v2877_v49  ;;  %v5078_v20 = vadd.f32 %v3954_v17, %v4929_v0  ;;  %v2823_v45 = vsub.f32 0.0, %v5071_v27  ;;  %v3788_v46 = vpop.f32.mrb[28].mxu1 }
 0x202   : > { %v4262_v44 = vpop.eup %4261  ;;  %3003 = vst.msk [vmem:[%s5003_s15 + $0x58] sm:$0xff] %vm2991_vm2, %v2970_v23  ;;  %v2913_v41 = vadd.f32 1.0, %v4260_v40  ;;  %4281 = vpow2.f32 %v2873_v28  ;;  %v5084_v15 = vadd.f32 %v3955_v62, %v4929_v0  ;;  %v2883_v12 = vmul.f32 1.442695, %v2825_v10  ;;  %v3924_v52 = vpop.f32.mrb[28].mxu0 }
 0x203   : > { %v4264_v2 = vpop.eup %4263  ;;  %3001 = vst.msk [vmem:[%s5003_s15 + $0x48] sm:$0xff] %vm2991_vm2, %v2968_v25  ;;  %v2911_v4 = vadd.f32 1.0, %v4262_v44  ;;  %v2826_v26 = vsub.f32 0.0, %v5078_v20  ;;  %v2879_v29 = vmul.f32 1.442695, %v2823_v45  ;;  %v1535_v43 = vpop.f32.mrb[29].mxu1  ;;  %v3956_v7 = vadd.f32 %v3924_v52, %v3788_v46 }
 0x204   : > { %v4266_v50 = vpop.eup %4265  ;;  %4283 = vrcp.f32 %v2913_v41  ;;  %v2914_v1 = vadd.f32 1.0, %v4264_v2  ;;  %v2824_v13 = vsub.f32 0.0, %v5084_v15  ;;  %v2713_v31 = vpop.f32.mrb[29].mxu0 }
 0x205   : > { %v4268_v55 = vpop.eup %4267  ;;  %4285 = vrcp.f32 %v2911_v4  ;;  %v2912_v34 = vadd.f32 1.0, %v4266_v50  ;;  %v2885_v6 = vmul.f32 1.442695, %v2826_v26  ;;  %v3789_v18 = vpop.f32.mrb[30].mxu1  ;;  %v3957_v11 = vadd.f32 %v2713_v31, %v1535_v43 }
 0x206   : > { %v4270_v39 = vpop.eup %4269  ;;  %v2973_v14 = vmul.f32 %v4268_v55, %v4983_v54  ;;  %4287 = vrcp.f32 %v2914_v1  ;;  %v2881_v42 = vmul.f32 1.442695, %v2824_v13  ;;  %v3925_v8 = vpop.f32.mrb[30].mxu0  ;;  %v5093_v21 = vadd.f32 %v3956_v7, %v4929_v0 }
 0x207   : > { %v1538_v24 = vpop.f32.mrb[31].mxu1  ;;  %v4272_v47 = vpop.eup %4271  ;;  %v2971_v49 = vmul.f32 %v4270_v39, %v4987_v58  ;;  %4289 = vrcp.f32 %v2912_v34  ;;  %v3958_v22 = vadd.f32 %v3925_v8, %v3789_v18  ;;  %v5099_v56 = vadd.f32 %v3957_v11, %v4929_v0 }
 0x208   : > { %v2716_v38 = vpop.f32.mrb[31].mxu0  ;;  %v4274_v48 = vpop.eup %4273  ;;  %3006 = vst.msk [vmem:[%s5003_s15 + $0x70] sm:$0xff] %vm2991_vm2, %v2973_v14  ;;  %v2974_v54 = vmul.f32 %v4272_v47, %v4993_v5  ;;  %4291 = vpow2.f32 %v2883_v12  ;;  %v2829_v59 = vsub.f32 0.0, %v5093_v21 }
 0x209   : > { %v3959_v28 = vadd.f32 %v2716_v38, %v1538_v24  ;;  %v4276_v30 = vpop.eup %4275  ;;  %3004 = vst.msk [vmem:[%s5003_s15 + $0x60] sm:$0xff] %vm2991_vm2, %v2971_v49  ;;  %v2972_v58 = vmul.f32 %v4274_v48, %v4997_v35  ;;  %4293 = vpow2.f32 %v2879_v29  ;;  %v5106_v32 = vadd.f32 %v3958_v22, %v4929_v0 }
 0x20a   : > { %v4278_v33 = vpop.eup %4277  ;;  %3007 = vst.msk [vmem:[%s5003_s15 + $0x78] sm:$0xff] %vm2991_vm2, %v2974_v54  ;;  %v2917_v5 = vadd.f32 1.0, %v4276_v30  ;;  %4295 = vpow2.f32 %v2885_v6  ;;  %v2827_v61 = vsub.f32 0.0, %v5099_v56  ;;  %v2891_v40 = vmul.f32 1.442695, %v2829_v59 }
 0x20b   : > { %v5112_v17 = vadd.f32 %v3959_v28, %v4929_v0  ;;  %v4280_v63 = vpop.eup %4279  ;;  %3005 = vst.msk [vmem:[%s5003_s15 + $0x68] sm:$0xff] %vm2991_vm2, %v2972_v58  ;;  %v2915_v35 = vadd.f32 1.0, %v4278_v33  ;;  %4297 = vpow2.f32 %v2881_v42  ;;  %v2830_v37 = vsub.f32 0.0, %v5106_v32 }
 0x20c   : > { %v4282_v23 = vpop.eup %4281  ;;  %4299 = vrcp.f32 %v2917_v5  ;;  %v2918_v62 = vadd.f32 1.0, %v4280_v63  ;;  %v2887_v44 = vmul.f32 1.442695, %v2827_v61 }
 0x20d   : > { %v2828_v25 = vsub.f32 0.0, %v5112_v17  ;;  %4301 = vrcp.f32 %v2915_v35  ;;  %v2916_v10 = vadd.f32 1.0, %v4282_v23  ;;  %v2893_v41 = vmul.f32 1.442695, %v2830_v37 }
 0x20e   : > { %v4284_v0 = vpop.eup %4283  ;;  %4303 = vrcp.f32 %v2918_v62 }
 0x20f   : > { %v4286_v45 = vpop.eup %4285  ;;  %v2977_v2 = vmul.f32 %v4284_v0, %v5012_v57  ;;  %4305 = vrcp.f32 %v2916_v10  ;;  %v2889_v4 = vmul.f32 1.442695, %v2828_v25 }
 0x210   : > { %v4288_v12 = vpop.eup %4287  ;;  %v2975_v26 = vmul.f32 %v4286_v45, %v5018_v16  ;;  %4307 = vpow2.f32 %v2891_v40 }
 0x211   : > { %v4290_v46 = vpop.eup %4289  ;;  %3010 = vst.msk [vmem:[%s5003_s15 + $0x90] sm:$0xff] %vm2991_vm2, %v2977_v2  ;;  %v2978_v50 = vmul.f32 %v4288_v12, %v5024_v19  ;;  %4309 = vpow2.f32 %v2887_v44 }
 0x212   : > { %v4292_v1 = vpop.eup %4291  ;;  %3008 = vst.msk [vmem:[%s5003_s15 + $0x80] sm:$0xff] %vm2991_vm2, %v2975_v26  ;;  %v2976_v29 = vmul.f32 %v4290_v46, %v5030_v36  ;;  %4311 = vpow2.f32 %v2893_v41 }
 0x213   : > { %v4294_v57 = vpop.eup %4293  ;;  %3011 = vst.msk [vmem:[%s5003_s15 + $0x98] sm:$0xff] %vm2991_vm2, %v2978_v50  ;;  %v2921_v13 = vadd.f32 1.0, %v4292_v1  ;;  %4313 = vpow2.f32 %v2889_v4 }
 0x214   : > { %v4296_v52 = vpop.eup %4295  ;;  %3009 = vst.msk [vmem:[%s5003_s15 + $0x88] sm:$0xff] %vm2991_vm2, %v2976_v29  ;;  %v2919_v16 = vadd.f32 1.0, %v4294_v57 }
 0x215   : > { %v4298_v43 = vpop.eup %4297  ;;  %4315 = vrcp.f32 %v2921_v13  ;;  %v2922_v19 = vadd.f32 1.0, %v4296_v52 }
 0x216   : > { %v4300_v55 = vpop.eup %4299  ;;  %4317 = vrcp.f32 %v2919_v16  ;;  %v2920_v34 = vadd.f32 1.0, %v4298_v43 }
 0x217   : > { %v4302_v36 = vpop.eup %4301  ;;  %v2981_v6 = vmul.f32 %v4300_v55, %v5040_v3  ;;  %4319 = vrcp.f32 %v2922_v19 }
 0x218   : > { %v4304_v7 = vpop.eup %4303  ;;  %v2979_v31 = vmul.f32 %v4302_v36, %v5046_v51  ;;  %4321 = vrcp.f32 %v2920_v34 }
 0x219   : > { %v4306_v18 = vpop.eup %4305  ;;  %3014 = vst.msk [vmem:[%s5003_s15 + $0xb0] sm:$0xff] %vm2991_vm2, %v2981_v6  ;;  %v2982_v39 = vmul.f32 %v4304_v7, %v5052_v53 }
 0x21a   : > { %v4308_v14 = vpop.eup %4307  ;;  %3012 = vst.msk [vmem:[%s5003_s15 + $0xa0] sm:$0xff] %vm2991_vm2, %v2979_v31  ;;  %v2980_v42 = vmul.f32 %v4306_v18, %v5058_v9 }
 0x21b   : > { %v4310_v11 = vpop.eup %4309  ;;  %3015 = vst.msk [vmem:[%s5003_s15 + $0xb8] sm:$0xff] %vm2991_vm2, %v2982_v39  ;;  %v2925_v8 = vadd.f32 1.0, %v4308_v14 }
 0x21c   : > { %v4312_v3 = vpop.eup %4311  ;;  %3013 = vst.msk [vmem:[%s5003_s15 + $0xa8] sm:$0xff] %vm2991_vm2, %v2980_v42  ;;  %v2923_v51 = vadd.f32 1.0, %v4310_v11 }
 0x21d   : > { %v4314_v24 = vpop.eup %4313  ;;  %4323 = vrcp.f32 %v2925_v8  ;;  %v2926_v47 = vadd.f32 1.0, %v4312_v3 }
 0x21e   : > { %4325 = vrcp.f32 %v2923_v51  ;;  %v2924_v53 = vadd.f32 1.0, %v4314_v24 }
 0x21f   : > { %v4316_v49 = vpop.eup %4315  ;;  %4327 = vrcp.f32 %v2926_v47 }
 0x220   : > { %v4318_v9 = vpop.eup %4317  ;;  %v2985_v22 = vmul.f32 %v4316_v49, %v5065_v60  ;;  %4329 = vrcp.f32 %v2924_v53 }
 0x221   : > { %v4320_v38 = vpop.eup %4319  ;;  %v2983_v48 = vmul.f32 %v4318_v9, %v5071_v27 }
 0x222   : > { %v4322_v54 = vpop.eup %4321  ;;  %3018 = vst.msk [vmem:[%s5003_s15 + $0xd0] sm:$0xff] %vm2991_vm2, %v2985_v22  ;;  %v2986_v28 = vmul.f32 %v4320_v38, %v5078_v20 }
 0x223   : > { %3016 = vst.msk [vmem:[%s5003_s15 + $0xc0] sm:$0xff] %vm2991_vm2, %v2983_v48  ;;  %v2984_v30 = vmul.f32 %v4322_v54, %v5084_v15 }
 0x224   : > { %3019 = vst.msk [vmem:[%s5003_s15 + $0xd8] sm:$0xff] %vm2991_vm2, %v2986_v28 }
 0x225   : > { %3017 = vst.msk [vmem:[%s5003_s15 + $0xc8] sm:$0xff] %vm2991_vm2, %v2984_v30 }
 0x227   : > { %v4324_v60 = vpop.eup %4323 }
 0x228   : > { %v4326_v58 = vpop.eup %4325  ;;  %v2989_v27 = vmul.f32 %v4324_v60, %v5093_v21 }
 0x229   : > { %v4328_v59 = vpop.eup %4327  ;;  %v2987_v33 = vmul.f32 %v4326_v58, %v5099_v56 }
 0x22a   : > { %v4330_v5 = vpop.eup %4329  ;;  %3022 = vst.msk [vmem:[%s5003_s15 + $0xf0] sm:$0xff] %vm2991_vm2, %v2989_v27  ;;  %v2990_v20 = vmul.f32 %v4328_v59, %v5106_v32 }
 0x22b   : > { %3020 = vst.msk [vmem:[%s5003_s15 + $0xe0] sm:$0xff] %vm2991_vm2, %v2987_v33  ;;  %v2988_v15 = vmul.f32 %v4330_v5, %v5112_v17 }
 0x22c   : > { %3023 = vst.msk [vmem:[%s5003_s15 + $0xf8] sm:$0xff] %vm2991_vm2, %v2990_v20 }
 0x22d   : > { %3021 = vst.msk [vmem:[%s5003_s15 + $0xe8] sm:$0xff] %vm2991_vm2, %v2988_v15 }
 0x22e PF: > { %s13_s12 = sadd.s32 1, %s4337_s12  }
 0x22f   : > { %p10_p4 = scmp.ge.s32.totalorder %s13_s12, 4  }
 0x231   :  { %12 = sbr.rel (!%p10_p4) target bundleno = 1 (0x1), region = 75 }

// kernel: _forward.4
= control target key start
LH: loop header
LB: loop body
LE: loop exit
PB: predicated region body
PF: predicated region fallthrough
CT: control target
= control target key end

     0   :  { %s5129_s18 = smov 0   ;;  %s6231_s0 = inlined_call_operand.vmem [shape: f32[2,18,18,16], index: 0, kind: input, shape index: {}]   ;;  %s6232_s1 = inlined_call_operand.vmem [shape: bf16[9,16,16], index: 1, kind: input, shape index: {}]   ;;  %s6233_s2 = inlined_call_operand.vmem [shape: f32[1,16], index: 2, kind: input, shape index: {}]   ;;  %s6234_s3 = inlined_call_operand.vmem [shape: bf16[16,64], index: 3, kind: input, shape index: {}]   ;;  %s6235_s4 = inlined_call_operand.vmem [shape: f32[1,64], index: 4, kind: input, shape index: {}]   ;;  %s6236_s5 = inlined_call_operand.vmem [shape: f32[2,16,16,64], index: 5, kind: output, shape index: {}]  }
   0x1 LB: > { %s3629_s19 = sadd.s32 4294967295, %s5097_s18   ;;  %p3633_p0 = scmp.ge.s32.totalorder %s5097_s18, 1  ;;  %s5097_s18 = sphi %s5129_s18, %s15_s18  }
   0x2   : > { %p187_p1 = scmp.lt.s32.totalorder %s5097_s18, 3 }
   0x4   : > { %p188_p2 = pnand %p3633_p0, %p187_p1 }
   0x5   : > { %v4795_v0 = vld [vmem:[%s6232_s1 + $0x20] sm:$0xff] (!%p188_p2)   ;;  %p215_p3 = scmp.lt.s32.totalorder (!%p188_p2), %s3629_s19, 1  ;;  %v4796_v1 = vld [vmem:[%s6232_s1 + $0x8] sm:$0xff] (!%p188_p2)   ;;  %vm333_vm0 = vcmask (!%p188_p2), 130048   ;;  %v5179_v16 = vld [vmem:[%s6232_s1 + $0x30] sm:$0xff] (!%p188_p2)   ;;  %vm3541_vm1 = vcmask (!%p188_p2), 523264  }
   0x6   : > { %191 = sbr.rel (%p188_p2) target bundleno = 855 (0x357), region = 40  ;;  %4326 = vmatprep.subr.bf16.mxu0 (!%p188_p2), %v4795_v0  ;;  %v4797_v2 = vld [vmem:[%s6232_s1 + $0x28] sm:$0xff] (!%p188_p2)   ;;  %4190 = vmatprep.subr.bf16.mxu1 (!%p188_p2), %v4796_v1  ;;  %v4798_v3 = vld [vmem:[%s6232_s1] sm:$0xff] (!%p188_p2)   ;;  %v5186_v17 = vld [vmem:[%s6232_s1 + $0x10] sm:$0xff] (!%p188_p2)  }
   0x7   : > { %4327 = vmatpush3.bf16.msra.mxu0 (!%p188_p2), %v4795_v0  ;;  %4191 = vmatpush3.bf16.msra.mxu1 (!%p188_p2), %v4796_v1 }
   0x8   : > { %4360 = vmatprep.subr.bf16.mxu0 (!%p188_p2), %v4797_v2  ;;  %4224 = vmatprep.subr.bf16.mxu1 (!%p188_p2), %v4798_v3 }
   0xd   : > { %s6238_s19 = smov (!%p215_p3, %s3629_s19), 1 }
   0xe   : > { %s4786_s28 = smul.u32 432, %s6238_s19  ;;  %s4019_s25 = sshll.u32 %s6238_s19, 8 }
  0x10   : > { %s5155_s6 = scalar_lea.vmem %s6231_s0, %s4786_s28  ;;  %s6050_s28 = scalar_lea.vmem %s6236_s5, %s4019_s25 }
  0x11   : > { %v276_v4 = vld [vmem:[%s5155_s6 + $0x1] sm:$0xff]  ;;  %v277_v5 = vld [vmem:[%s5155_s6 + $0x9] sm:$0xff]  ;;  %v3743_v6 = vld [vmem:[%s5155_s6 + $0x19] sm:$0xff] }
  0x12   : > { %v308_v7 = vpack.c.bf16 %v277_v5, %v276_v4  ;;  %v3744_v8 = vld [vmem:[%s5155_s6 + $0x21] sm:$0xff]  ;;  %v5162_v9 = vld [vmem:[%s5155_s6 + $0x31] sm:$0xff]  ;;  %v5165_v10 = vld [vmem:[%s5155_s6 + $0x39] sm:$0xff] }
  0x13   : > { %v1387_v11 = vpack.c.bf16 %v3744_v8, %v3743_v6  ;;  %v5169_v12 = vpack.c.bf16 %v5165_v10, %v5162_v9  ;;  %v3747_v13 = vld [vmem:[%s5155_s6 + $0x49] sm:$0xff]  ;;  %v3748_v14 = vld [vmem:[%s5155_s6 + $0x51] sm:$0xff]  ;;  %v3749_v18 = vld [vmem:[%s5155_s6 + $0x61] sm:$0xff] }
  0x14   : > { %4192 = vmatprep.mubr.msk.bf16.mxu1 %vm333_vm0, %v308_v7  ;;  %v5174_v15 = vpack.c.bf16 %v3748_v14, %v3747_v13  ;;  %v3750_v19 = vld [vmem:[%s5155_s6 + $0x69] sm:$0xff]  ;;  %v3751_v20 = vld [vmem:[%s5155_s6 + $0x79] sm:$0xff]  ;;  %v3752_v21 = vld [vmem:[%s5155_s6 + $0x81] sm:$0xff] }
  0x15   : > { %4328 = vmatprep.mubr.msk.bf16.mxu0 %vm333_vm0, %v1387_v11  ;;  %4193 = vmatmul.mubr.msk.bf16.vlgmr.msra.gmra.mrb[0].mxu1 %vm333_vm0, %v1387_v11  ;;  %v5200_v22 = vpack.c.bf16 %v3750_v19, %v3749_v18  ;;  %v5202_v23 = vpack.c.bf16 %v3752_v21, %v3751_v20  ;;  %v3753_v24 = vld [vmem:[%s5155_s6 + $0x91] sm:$0xff]  ;;  %v3754_v25 = vld [vmem:[%s5155_s6 + $0x99] sm:$0xff]  ;;  %v3755_v26 = vld [vmem:[%s5155_s6 + $0xa9] sm:$0xff] }
  0x16   : > { %4329 = vmatmul.mubr.msk.bf16.vlgmr.msra.gmra.mrb[0].mxu0 %vm333_vm0, %v5169_v12  ;;  %4196 = vmatprep.mubr.msk.bf16.mxu1 %vm333_vm0, %v5169_v12  ;;  %v3756_v27 = vld [vmem:[%s5155_s6 + $0xb1] sm:$0xff]  ;;  %v5216_v28 = vpack.c.bf16 %v3754_v25, %v3753_v24  ;;  %v3757_v30 = vld [vmem:[%s5155_s6 + $0xc1] sm:$0xff]  ;;  %v3758_v31 = vld [vmem:[%s5155_s6 + $0xc9] sm:$0xff] }
  0x17   : > { %4361 = vmatpush3.bf16.msra.mxu0 %v4797_v2  ;;  %4332 = vmatprep.mubr.msk.bf16.mxu0 %vm333_vm0, %v5174_v15  ;;  %v5218_v29 = vpack.c.bf16 %v3756_v27, %v3755_v26  ;;  %v3759_v32 = vld [vmem:[%s5155_s6 + $0xd9] sm:$0xff]  ;;  %v3760_v33 = vld [vmem:[%s5155_s6 + $0xe1] sm:$0xff]  ;;  %v5232_v34 = vpack.c.bf16 %v3758_v31, %v3757_v30  ;;  %v3761_v36 = vld [vmem:[%s5155_s6 + $0xf1] sm:$0xff] }
  0x18   : > { %4225 = vmatpush3.bf16.msra.mxu1 %v4798_v3  ;;  %4394 = vmatprep.subr.bf16.mxu0 %v5179_v16  ;;  %v5234_v35 = vpack.c.bf16 %v3760_v33, %v3759_v32  ;;  %v3762_v37 = vld [vmem:[%s5155_s6 + $0xf9] sm:$0xff]  ;;  %v3763_v38 = vld [vmem:[%s5155_s6 + $0x109] sm:$0xff]  ;;  %v3764_v39 = vld [vmem:[%s5155_s6 + $0x111] sm:$0xff] }
  0x19   : > { %4258 = vmatprep.subr.bf16.mxu1 %v5186_v17  ;;  %v5248_v40 = vpack.c.bf16 %v3762_v37, %v3761_v36  ;;  %v5250_v41 = vpack.c.bf16 %v3764_v39, %v3763_v38  ;;  %v3765_v42 = vld [vmem:[%s5155_s6 + $0x121] sm:$0xff]  ;;  %v3766_v43 = vld [vmem:[%s5155_s6 + $0x129] sm:$0xff]  ;;  %v3767_v44 = vld [vmem:[%s5155_s6 + $0x139] sm:$0xff] }
  0x1a   : > { %v3768_v45 = vld [vmem:[%s5155_s6 + $0x141] sm:$0xff]  ;;  %v5264_v46 = vpack.c.bf16 %v3766_v43, %v3765_v42  ;;  %v3769_v48 = vld [vmem:[%s5155_s6 + $0x151] sm:$0xff]  ;;  %v3770_v49 = vld [vmem:[%s5155_s6 + $0x159] sm:$0xff] }
  0x1b   : > { %v5266_v47 = vpack.c.bf16 %v3768_v45, %v3767_v44  ;;  %v3771_v50 = vld [vmem:[%s5155_s6 + $0x169] sm:$0xff]  ;;  %v3772_v51 = vld [vmem:[%s5155_s6 + $0x171] sm:$0xff]  ;;  %v5280_v52 = vpack.c.bf16 %v3770_v49, %v3769_v48  ;;  %v3773_v54 = vld [vmem:[%s5155_s6 + $0x181] sm:$0xff] }
  0x1c   : > { %v5282_v53 = vpack.c.bf16 %v3772_v51, %v3771_v50  ;;  %v3774_v55 = vld [vmem:[%s5155_s6 + $0x189] sm:$0xff]  ;;  %v226_v56 = vld [vmem:[%s5155_s6] sm:$0xff]  ;;  %v228_v63 = vld [vmem:[%s5155_s6 + $0x18] sm:$0xff] }
  0x1d   : > { %4197 = vmatmul.mubr.msk.bf16.gmra.mrb[4].mxu1 %vm333_vm0, %v5174_v15  ;;  %v227_v57 = vld [vmem:[%s5155_s6 + $0x8] sm:$0xff]  ;;  %v3794_v58 = vld [vmem:[%s5155_s6 + $0x1a] sm:$0xff]  ;;  %v5298_v60 = vpack.c.bf16 %v3774_v55, %v3773_v54  ;;  %v3796_v1 = vld [vmem:[%s5155_s6 + $0x32] sm:$0xff] }
  0x1e   : > { %4333 = vmatmul.mubr.msk.bf16.gmra.mrb[4].mxu0 %vm333_vm0, %v5200_v22  ;;  %4200 = vmatprep.mubr.msk.bf16.mxu1 %vm333_vm0, %v5200_v22  ;;  %v3795_v59 = vld [vmem:[%s5155_s6 + $0x22] sm:$0xff]  ;;  %v258_v61 = vpack.c.bf16 %v227_v57, %v226_v56  ;;  %v3797_v2 = vld [vmem:[%s5155_s6 + $0x3a] sm:$0xff]  ;;  %v230_v3 = vld [vmem:[%s5155_s6 + $0x30] sm:$0xff] }
  0x1f   : > { %4336 = vmatprep.mubr.msk.bf16.mxu0 %vm333_vm0, %v5202_v23  ;;  %v5300_v62 = vpack.c.bf16 %v3795_v59, %v3794_v58  ;;  %v229_v0 = vld [vmem:[%s5155_s6 + $0x20] sm:$0xff]  ;;  %v231_v4 = vld [vmem:[%s5155_s6 + $0x38] sm:$0xff]  ;;  %v3798_v5 = vld [vmem:[%s5155_s6 + $0x4a] sm:$0xff]  ;;  %v5319_v8 = vpack.c.bf16 %v3797_v2, %v3796_v1 }
  0x20   : > { %v3799_v6 = vld [vmem:[%s5155_s6 + $0x52] sm:$0xff]  ;;  %v5317_v7 = vpack.c.bf16 %v229_v0, %v228_v63  ;;  %v5321_v11 = vpack.c.bf16 %v231_v4, %v230_v3  ;;  %v232_v19 = vld [vmem:[%s5155_s6 + $0x48] sm:$0xff]  ;;  %v234_v25 = vld [vmem:[%s5155_s6 + $0x60] sm:$0xff] }
  0x21   : > { %v5323_v13 = vpack.c.bf16 %v3799_v6, %v3798_v5  ;;  %v5328_v14 = vld [vmem:[%s6232_s1 + $0x38] sm:$0xff]   ;;  %v233_v20 = vld [vmem:[%s5155_s6 + $0x50] sm:$0xff]  ;;  %v3800_v21 = vld [vmem:[%s5155_s6 + $0x62] sm:$0xff] }
  0x22   : > { %v5335_v18 = vld [vmem:[%s6232_s1 + $0x18] sm:$0xff]   ;;  %v3801_v24 = vld [vmem:[%s5155_s6 + $0x6a] sm:$0xff]  ;;  %v3803_v30 = vld [vmem:[%s5155_s6 + $0x82] sm:$0xff] }
  0x23   : > { %v235_v26 = vld [vmem:[%s5155_s6 + $0x68] sm:$0xff]  ;;  %v3802_v27 = vld [vmem:[%s5155_s6 + $0x7a] sm:$0xff]  ;;  %v5357_v31 = vpack.c.bf16 %v3801_v24, %v3800_v21  ;;  %v3804_v37 = vld [vmem:[%s5155_s6 + $0x92] sm:$0xff] }
  0x24   : > { %v5359_v32 = vpack.c.bf16 %v235_v26, %v234_v25  ;;  %v5361_v33 = vpack.c.bf16 %v3803_v30, %v3802_v27  ;;  %v237_v36 = vld [vmem:[%s5155_s6 + $0x80] sm:$0xff]  ;;  %v238_v39 = vld [vmem:[%s5155_s6 + $0x90] sm:$0xff]  ;;  %v239_v42 = vld [vmem:[%s5155_s6 + $0x98] sm:$0xff] }
  0x25   : > { %4201 = vmatmul.mubr.msk.bf16.gmra.mrb[8].mxu1 %vm333_vm0, %v5202_v23  ;;  %v3805_v38 = vld [vmem:[%s5155_s6 + $0x9a] sm:$0xff]  ;;  %v3806_v43 = vld [vmem:[%s5155_s6 + $0xaa] sm:$0xff]  ;;  %v3807_v44 = vld [vmem:[%s5155_s6 + $0xb2] sm:$0xff]  ;;  %v5383_v49 = vpack.c.bf16 %v239_v42, %v238_v39 }
  0x26   : > { %4337 = vmatmul.mubr.msk.bf16.gmra.mrb[8].mxu0 %vm333_vm0, %v5216_v28  ;;  %4204 = vmatprep.mubr.msk.bf16.mxu1 %vm333_vm0, %v5216_v28  ;;  %v5381_v48 = vpack.c.bf16 %v3805_v38, %v3804_v37  ;;  %v5385_v50 = vpack.c.bf16 %v3807_v44, %v3806_v43  ;;  %v240_v51 = vld [vmem:[%s5155_s6 + $0xa8] sm:$0xff]  ;;  %v241_v54 = vld [vmem:[%s5155_s6 + $0xb0] sm:$0xff]  ;;  %v242_v57 = vld [vmem:[%s5155_s6 + $0xc0] sm:$0xff] }
  0x27   : > { %4340 = vmatprep.mubr.msk.bf16.mxu0 %vm333_vm0, %v5218_v29  ;;  %v3808_v55 = vld [vmem:[%s5155_s6 + $0xc2] sm:$0xff]  ;;  %v3809_v56 = vld [vmem:[%s5155_s6 + $0xca] sm:$0xff]  ;;  %v3810_v59 = vld [vmem:[%s5155_s6 + $0xda] sm:$0xff]  ;;  %v5403_v63 = vpack.c.bf16 %v241_v54, %v240_v51 }
  0x28   : > { %v243_v58 = vld [vmem:[%s5155_s6 + $0xc8] sm:$0xff]  ;;  %v5405_v0 = vpack.c.bf16 %v3809_v56, %v3808_v55  ;;  %v244_v3 = vld [vmem:[%s5155_s6 + $0xd8] sm:$0xff]  ;;  %v245_v4 = vld [vmem:[%s5155_s6 + $0xe0] sm:$0xff] }
  0x29   : > { %v5407_v1 = vpack.c.bf16 %v243_v58, %v242_v57  ;;  %v3812_v5 = vld [vmem:[%s5155_s6 + $0xf2] sm:$0xff]  ;;  %v3813_v6 = vld [vmem:[%s5155_s6 + $0xfa] sm:$0xff]  ;;  %v3814_v21 = vld [vmem:[%s5155_s6 + $0x10a] sm:$0xff]  ;;  %v5427_v25 = vpack.c.bf16 %v245_v4, %v244_v3 }
  0x2a   : > { %v3815_v24 = vld [vmem:[%s5155_s6 + $0x112] sm:$0xff]  ;;  %v5429_v26 = vpack.c.bf16 %v3813_v6, %v3812_v5  ;;  %v3816_v37 = vld [vmem:[%s5155_s6 + $0x122] sm:$0xff]  ;;  %v3817_v38 = vld [vmem:[%s5155_s6 + $0x12a] sm:$0xff] }
  0x2b   : > { %v5433_v30 = vpack.c.bf16 %v3815_v24, %v3814_v21  ;;  %v250_v39 = vld [vmem:[%s5155_s6 + $0x120] sm:$0xff]  ;;  %v251_v42 = vld [vmem:[%s5155_s6 + $0x128] sm:$0xff]  ;;  %v5453_v54 = vpack.c.bf16 %v3817_v38, %v3816_v37  ;;  %v252_v57 = vld [vmem:[%s5155_s6 + $0x138] sm:$0xff] }
  0x2c   : > { %v3818_v43 = vld [vmem:[%s5155_s6 + $0x13a] sm:$0xff]  ;;  %v3819_v44 = vld [vmem:[%s5155_s6 + $0x142] sm:$0xff]  ;;  %v5455_v55 = vpack.c.bf16 %v251_v42, %v250_v39  ;;  %v254_v3 = vld [vmem:[%s5155_s6 + $0x150] sm:$0xff] }
  0x2d   : > { %4205 = vmatmul.mubr.msk.bf16.gmra.mrb[12].mxu1 %vm333_vm0, %v5218_v29  ;;  %v5457_v56 = vpack.c.bf16 %v3819_v44, %v3818_v43  ;;  %v253_v58 = vld [vmem:[%s5155_s6 + $0x140] sm:$0xff]  ;;  %v255_v4 = vld [vmem:[%s5155_s6 + $0x158] sm:$0xff]  ;;  %v3822_v5 = vld [vmem:[%s5155_s6 + $0x16a] sm:$0xff] }
  0x2e   : > { %4341 = vmatmul.mubr.msk.bf16.gmra.mrb[12].mxu0 %vm333_vm0, %v5232_v34  ;;  %4208 = vmatprep.mubr.msk.bf16.mxu1 %vm333_vm0, %v5232_v34  ;;  %v3823_v6 = vld [vmem:[%s5155_s6 + $0x172] sm:$0xff]  ;;  %v5479_v21 = vpack.c.bf16 %v255_v4, %v254_v3  ;;  %v3824_v37 = vld [vmem:[%s5155_s6 + $0x182] sm:$0xff]  ;;  %v3825_v38 = vld [vmem:[%s5155_s6 + $0x18a] sm:$0xff] }
  0x2f   : > { %4344 = vmatprep.mubr.msk.bf16.mxu0 %vm333_vm0, %v5234_v35  ;;  %v5481_v24 = vpack.c.bf16 %v3823_v6, %v3822_v5  ;;  %v758_v39 = vld [vmem:[%s5155_s6 + $0x2] sm:$0xff]  ;;  %v759_v42 = vld [vmem:[%s5155_s6 + $0xa] sm:$0xff]  ;;  %v5499_v44 = vpack.c.bf16 %v3825_v38, %v3824_v37  ;;  %v5726_v5 = vld [vmem:[%s6233_s2] ss:$0 sm:$0xff] }
  0x35   : > { %4209 = vmatmul.mubr.msk.bf16.gmra.mrb[16].mxu1 %vm333_vm0, %v5234_v35 }
  0x36   : > { %4345 = vmatmul.mubr.msk.bf16.gmra.mrb[16].mxu0 %vm333_vm0, %v5248_v40  ;;  %4212 = vmatprep.mubr.msk.bf16.mxu1 %vm333_vm0, %v5248_v40 }
  0x37   : > { %4348 = vmatprep.mubr.msk.bf16.mxu0 %vm333_vm0, %v5250_v41 }
  0x3d   : > { %4213 = vmatmul.mubr.msk.bf16.gmra.mrb[20].mxu1 %vm333_vm0, %v5250_v41 }
  0x3e   : > { %4349 = vmatmul.mubr.msk.bf16.gmra.mrb[20].mxu0 %vm333_vm0, %v5264_v46  ;;  %4216 = vmatprep.mubr.msk.bf16.mxu1 %vm333_vm0, %v5264_v46 }
  0x3f   : > { %4352 = vmatprep.mubr.msk.bf16.mxu0 %vm333_vm0, %v5266_v47 }
  0x45   : > { %4217 = vmatmul.mubr.msk.bf16.gmra.mrb[24].mxu1 %vm333_vm0, %v5266_v47 }
  0x46   : > { %4353 = vmatmul.mubr.msk.bf16.gmra.mrb[24].mxu0 %vm333_vm0, %v5280_v52  ;;  %4220 = vmatprep.mubr.msk.bf16.mxu1 %vm333_vm0, %v5280_v52 }
  0x47   : > { %4356 = vmatprep.mubr.msk.bf16.mxu0 %vm333_vm0, %v5282_v53 }
  0x4d   : > { %4221 = vmatmul.mubr.msk.bf16.gmra.mrb[28].mxu1 %vm333_vm0, %v5282_v53 }
  0x4e   : > { %4357 = vmatmul.mubr.msk.bf16.gmra.mrb[28].mxu0 %vm333_vm0, %v5298_v60  ;;  %4226 = vmatprep.mubr.msk.bf16.mxu1 %vm333_vm0, %v258_v61  ;;  %v3811_v61 = vld [vmem:[%s5155_s6 + $0xe2] sm:$0xff] }
  0x4f   : > { %4362 = vmatprep.mubr.msk.bf16.mxu0 %vm333_vm0, %v5300_v62  ;;  %v5409_v2 = vpack.c.bf16 %v3811_v61, %v3810_v59  ;;  %v3820_v59 = vld [vmem:[%s5155_s6 + $0x152] sm:$0xff]  ;;  %v3821_v61 = vld [vmem:[%s5155_s6 + $0x15a] sm:$0xff] }
  0x55   : > { %4227 = vmatmul.mubr.msk.bf16.vlgmr.msra.gmra.mrb[0].mxu1 %vm333_vm0, %v5317_v7 }
  0x56   : > { %4363 = vmatmul.mubr.msk.bf16.vlgmr.msra.gmra.mrb[0].mxu0 %vm333_vm0, %v5319_v8  ;;  %4230 = vmatprep.mubr.msk.bf16.mxu1 %vm333_vm0, %v5321_v11 }
  0x57   : > { %4395 = vmatpush3.bf16.msra.mxu0 %v5179_v16  ;;  %4366 = vmatprep.mubr.msk.bf16.mxu0 %vm333_vm0, %v5323_v13  ;;  %v5354_v16 = vpack.c.bf16 %v233_v20, %v232_v19  ;;  %v246_v19 = vld [vmem:[%s5155_s6 + $0xf0] sm:$0xff]  ;;  %v247_v20 = vld [vmem:[%s5155_s6 + $0xf8] sm:$0xff] }
  0x58   : > { %4259 = vmatpush3.bf16.msra.mxu1 %v5186_v17  ;;  %4428 = vmatprep.subr.bf16.mxu0 %v5328_v14  ;;  %v236_v17 = vld [vmem:[%s5155_s6 + $0x78] sm:$0xff]  ;;  %v5431_v27 = vpack.c.bf16 %v247_v20, %v246_v19  ;;  %v5475_v19 = vpack.c.bf16 %v253_v58, %v252_v57  ;;  %v5477_v20 = vpack.c.bf16 %v3821_v61, %v3820_v59  ;;  %v4803_v58 = vld [vmem:[%s6232_s1 + $0x40] sm:$0xff]  }
  0x59   : > { %4292 = vmatprep.subr.bf16.mxu1 %v5335_v18  ;;  %v5379_v45 = vpack.c.bf16 %v237_v36, %v236_v17  ;;  %v248_v17 = vld [vmem:[%s5155_s6 + $0x108] sm:$0xff]  ;;  %v249_v36 = vld [vmem:[%s5155_s6 + $0x110] sm:$0xff]  ;;  %v790_v57 = vpack.c.bf16 %v759_v42, %v758_v39  ;;  %v3875_v59 = vld [vmem:[%s5155_s6 + $0x198] sm:$0xff] }
  0x5a   : > { %v5451_v51 = vpack.c.bf16 %v249_v36, %v248_v17  ;;  %v256_v17 = vld [vmem:[%s5155_s6 + $0x168] sm:$0xff]  ;;  %v257_v36 = vld [vmem:[%s5155_s6 + $0x170] sm:$0xff]  ;;  %v3876_v61 = vld [vmem:[%s5155_s6 + $0x1a0] sm:$0xff] }
  0x5b   : > { %v5497_v43 = vpack.c.bf16 %v257_v36, %v256_v17  ;;  %v1999_v3 = vpack.c.bf16 %v3876_v61, %v3875_v59 }
  0x5d   : > { %4231 = vmatmul.mubr.msk.bf16.gmra.mrb[4].mxu1 %vm333_vm0, %v5354_v16 }
  0x5e   : > { %4367 = vmatmul.mubr.msk.bf16.gmra.mrb[4].mxu0 %vm333_vm0, %v5357_v31  ;;  %4234 = vmatprep.mubr.msk.bf16.mxu1 %vm333_vm0, %v5359_v32 }
  0x5f   : > { %4370 = vmatprep.mubr.msk.bf16.mxu0 %vm333_vm0, %v5361_v33 }
  0x65   : > { %4235 = vmatmul.mubr.msk.bf16.gmra.mrb[8].mxu1 %vm333_vm0, %v5379_v45 }
  0x66   : > { %4371 = vmatmul.mubr.msk.bf16.gmra.mrb[8].mxu0 %vm333_vm0, %v5381_v48  ;;  %4238 = vmatprep.mubr.msk.bf16.mxu1 %vm333_vm0, %v5383_v49 }
  0x67   : > { %4374 = vmatprep.mubr.msk.bf16.mxu0 %vm333_vm0, %v5385_v50 }
  0x6d   : > { %4239 = vmatmul.mubr.msk.bf16.gmra.mrb[12].mxu1 %vm333_vm0, %v5403_v63 }
  0x6e   : > { %4375 = vmatmul.mubr.msk.bf16.gmra.mrb[12].mxu0 %vm333_vm0, %v5405_v0  ;;  %4242 = vmatprep.mubr.msk.bf16.mxu1 %vm333_vm0, %v5407_v1 }
  0x6f   : > { %4378 = vmatprep.mubr.msk.bf16.mxu0 %vm333_vm0, %v5409_v2 }
  0x75   : > { %4243 = vmatmul.mubr.msk.bf16.gmra.mrb[16].mxu1 %vm333_vm0, %v5427_v25 }
  0x76   : > { %4379 = vmatmul.mubr.msk.bf16.gmra.mrb[16].mxu0 %vm333_vm0, %v5429_v26  ;;  %4246 = vmatprep.mubr.msk.bf16.mxu1 %vm333_vm0, %v5431_v27 }
  0x77   : > { %4382 = vmatprep.mubr.msk.bf16.mxu0 %vm333_vm0, %v5433_v30 }
  0x7d   : > { %4247 = vmatmul.mubr.msk.bf16.gmra.mrb[20].mxu1 %vm333_vm0, %v5451_v51 }
  0x7e   : > { %4383 = vmatmul.mubr.msk.bf16.gmra.mrb[20].mxu0 %vm333_vm0, %v5453_v54  ;;  %4250 = vmatprep.mubr.msk.bf16.mxu1 %vm333_vm0, %v5455_v55 }
  0x7f   : > { %4386 = vmatprep.mubr.msk.bf16.mxu0 %vm333_vm0, %v5457_v56 }
  0x85   : > { %4251 = vmatmul.mubr.msk.bf16.gmra.mrb[24].mxu1 %vm333_vm0, %v5475_v19 }
  0x86   : > { %4387 = vmatmul.mubr.msk.bf16.gmra.mrb[24].mxu0 %vm333_vm0, %v5477_v20  ;;  %4254 = vmatprep.mubr.msk.bf16.mxu1 %vm333_vm0, %v5479_v21 }
  0x87   : > { %4390 = vmatprep.mubr.msk.bf16.mxu0 %vm333_vm0, %v5481_v24 }
  0x8d   : > { %4255 = vmatmul.mubr.msk.bf16.gmra.mrb[28].mxu1 %vm333_vm0, %v5497_v43 }
  0x8e   : > { %4391 = vmatmul.mubr.msk.bf16.gmra.mrb[28].mxu0 %vm333_vm0, %v5499_v44  ;;  %4260 = vmatprep.mubr.msk.bf16.mxu1 %vm333_vm0, %v790_v57 }
  0x8f   : > { %4396 = vmatprep.mubr.msk.bf16.mxu0 %vm333_vm0, %v5321_v11 }
  0x95   : > { %4261 = vmatmul.mubr.msk.bf16.vlgmr.msra.gmra.mrb[0].mxu1 %vm333_vm0, %v5300_v62  ;;  %v3873_v62 = vld [vmem:[%s5155_s6 + $0x180] sm:$0xff] }
  0x96   : > { %4397 = vmatmul.mubr.msk.bf16.vlgmr.msra.gmra.mrb[0].mxu0 %vm333_vm0, %v5354_v16  ;;  %4264 = vmatprep.mubr.msk.bf16.mxu1 %vm333_vm0, %v5319_v8 }
  0x97   : > { %4429 = vmatpush3.bf16.msra.mxu0 %v5328_v14  ;;  %4400 = vmatprep.mubr.msk.bf16.mxu0 %vm333_vm0, %v5359_v32  ;;  %v3874_v14 = vld [vmem:[%s5155_s6 + $0x188] sm:$0xff] }
  0x98   : > { %4293 = vmatpush3.bf16.msra.mxu1 %v5335_v18  ;;  %4462 = vmatprep.subr.bf16.mxu0 %v4803_v58  ;;  %v1998_v18 = vpack.c.bf16 %v3874_v14, %v3873_v62 }
  0x9d   : > { %4265 = vmatmul.mubr.msk.bf16.gmra.mrb[4].mxu1 %vm333_vm0, %v5323_v13 }
  0x9e   : > { %4401 = vmatmul.mubr.msk.bf16.gmra.mrb[4].mxu0 %vm333_vm0, %v5379_v45  ;;  %4268 = vmatprep.mubr.msk.bf16.mxu1 %vm333_vm0, %v5357_v31 }
  0x9f   : > { %4404 = vmatprep.mubr.msk.bf16.mxu0 %vm333_vm0, %v5383_v49 }
  0xa5   : > { %4269 = vmatmul.mubr.msk.bf16.gmra.mrb[8].mxu1 %vm333_vm0, %v5361_v33 }
  0xa6   : > { %4405 = vmatmul.mubr.msk.bf16.gmra.mrb[8].mxu0 %vm333_vm0, %v5403_v63  ;;  %4272 = vmatprep.mubr.msk.bf16.mxu1 %vm333_vm0, %v5381_v48 }
  0xa7   : > { %4408 = vmatprep.mubr.msk.bf16.mxu0 %vm333_vm0, %v5407_v1 }
  0xad   : > { %4273 = vmatmul.mubr.msk.bf16.gmra.mrb[12].mxu1 %vm333_vm0, %v5385_v50 }
  0xae   : > { %4409 = vmatmul.mubr.msk.bf16.gmra.mrb[12].mxu0 %vm333_vm0, %v5427_v25  ;;  %4276 = vmatprep.mubr.msk.bf16.mxu1 %vm333_vm0, %v5405_v0 }
  0xaf   : > { %4412 = vmatprep.mubr.msk.bf16.mxu0 %vm333_vm0, %v5431_v27 }
  0xb5   : > { %4277 = vmatmul.mubr.msk.bf16.gmra.mrb[16].mxu1 %vm333_vm0, %v5409_v2 }
  0xb6   : > { %4413 = vmatmul.mubr.msk.bf16.gmra.mrb[16].mxu0 %vm333_vm0, %v5451_v51  ;;  %4280 = vmatprep.mubr.msk.bf16.mxu1 %vm333_vm0, %v5429_v26 }
  0xb7   : > { %4416 = vmatprep.mubr.msk.bf16.mxu0 %vm333_vm0, %v5455_v55 }
  0xbd   : > { %4281 = vmatmul.mubr.msk.bf16.gmra.mrb[20].mxu1 %vm333_vm0, %v5433_v30 }
  0xbe   : > { %4417 = vmatmul.mubr.msk.bf16.gmra.mrb[20].mxu0 %vm333_vm0, %v5475_v19  ;;  %4284 = vmatprep.mubr.msk.bf16.mxu1 %vm333_vm0, %v5453_v54 }
  0xbf   : > { %4420 = vmatprep.mubr.msk.bf16.mxu0 %vm333_vm0, %v5479_v21 }
  0xc5   : > { %4285 = vmatmul.mubr.msk.bf16.gmra.mrb[24].mxu1 %vm333_vm0, %v5457_v56 }
  0xc6   : > { %4421 = vmatmul.mubr.msk.bf16.gmra.mrb[24].mxu0 %vm333_vm0, %v5497_v43  ;;  %4288 = vmatprep.mubr.msk.bf16.mxu1 %vm333_vm0, %v5477_v20 }
  0xc7   : > { %4424 = vmatprep.mubr.msk.bf16.mxu0 %vm333_vm0, %v1998_v18 }
  0xcd   : > { %4289 = vmatmul.mubr.msk.bf16.gmra.mrb[28].mxu1 %vm333_vm0, %v5481_v24 }
  0xce   : > { %4425 = vmatmul.mubr.msk.bf16.gmra.mrb[28].mxu0 %vm333_vm0, %v1999_v3  ;;  %4294 = vmatprep.mubr.msk.bf16.mxu1 %vm333_vm0, %v5317_v7 }
  0xcf   : > { %4430 = vmatprep.mubr.msk.bf16.mxu0 %vm333_vm0, %v5169_v12  ;;  %v3926_v12 = vld [vmem:[%s5155_s6 + $0x199] sm:$0xff] }
  0xd5   : > { %4295 = vmatmul.mubr.msk.bf16.vlgmr.msra.gmra.mrb[0].mxu1 %vm333_vm0, %v5321_v11 }
  0xd6   : > { %4431 = vmatmul.mubr.msk.bf16.vlgmr.msra.gmra.mrb[0].mxu0 %vm333_vm0, %v5174_v15  ;;  %4298 = vmatprep.mubr.msk.bf16.mxu1 %vm333_vm0, %v5354_v16  ;;  %v3927_v15 = vld [vmem:[%s5155_s6 + $0x1a1] sm:$0xff] }
  0xd7   : > { %4463 = vmatpush3.bf16.msra.mxu0 %v4803_v58  ;;  %4434 = vmatprep.mubr.msk.bf16.mxu0 %vm333_vm0, %v5200_v22  ;;  %v2297_v22 = vpack.c.bf16 %v3927_v15, %v3926_v12 }
  0xdd   : > { %4299 = vmatmul.mubr.msk.bf16.gmra.mrb[4].mxu1 %vm333_vm0, %v5359_v32 }
  0xde   : > { %4435 = vmatmul.mubr.msk.bf16.gmra.mrb[4].mxu0 %vm333_vm0, %v5202_v23  ;;  %4302 = vmatprep.mubr.msk.bf16.mxu1 %vm333_vm0, %v5379_v45  ;;  %v3977_v23 = vld [vmem:[%s5155_s6 + $0x19a] sm:$0xff] }
  0xdf   : > { %4438 = vmatprep.mubr.msk.bf16.mxu0 %vm333_vm0, %v5216_v28  ;;  %v3978_v28 = vld [vmem:[%s5155_s6 + $0x1a2] sm:$0xff] }
  0xe5   : > { %4303 = vmatmul.mubr.msk.bf16.gmra.mrb[8].mxu1 %vm333_vm0, %v5383_v49 }
  0xe6   : > { %4439 = vmatmul.mubr.msk.bf16.gmra.mrb[8].mxu0 %vm333_vm0, %v5218_v29  ;;  %4306 = vmatprep.mubr.msk.bf16.mxu1 %vm333_vm0, %v5403_v63  ;;  %v2595_v29 = vpack.c.bf16 %v3978_v28, %v3977_v23 }
  0xe7   : > { %4442 = vmatprep.mubr.msk.bf16.mxu0 %vm333_vm0, %v5232_v34  ;;  %v4804_v34 = vld [vmem:[%s6234_s3] sm:$0xff]  }
  0xe8   : > { %4496 = vmatprep.subr.bf16.mxu1 %v4804_v34 }
  0xe9   : > { %4497 = vmatpush3.bf16.msra.mxu1 %v4804_v34 }
  0xed   : > { %4307 = vmatmul.mubr.msk.bf16.gmra.mrb[12].mxu1 %vm333_vm0, %v5407_v1 }
  0xee   : > { %4443 = vmatmul.mubr.msk.bf16.gmra.mrb[12].mxu0 %vm333_vm0, %v5234_v35  ;;  %4310 = vmatprep.mubr.msk.bf16.mxu1 %vm333_vm0, %v5427_v25 }
  0xef   : > { %4446 = vmatprep.mubr.msk.bf16.mxu0 %vm333_vm0, %v5248_v40 }
  0xf5   : > { %4311 = vmatmul.mubr.msk.bf16.gmra.mrb[16].mxu1 %vm333_vm0, %v5431_v27 }
  0xf6   : > { %4447 = vmatmul.mubr.msk.bf16.gmra.mrb[16].mxu0 %vm333_vm0, %v5250_v41  ;;  %4314 = vmatprep.mubr.msk.bf16.mxu1 %vm333_vm0, %v5451_v51 }
  0xf7   : > { %4450 = vmatprep.mubr.msk.bf16.mxu0 %vm333_vm0, %v5264_v46 }
  0xfd   : > { %4315 = vmatmul.mubr.msk.bf16.gmra.mrb[20].mxu1 %vm333_vm0, %v5455_v55 }
  0xfe   : > { %4451 = vmatmul.mubr.msk.bf16.gmra.mrb[20].mxu0 %vm333_vm0, %v5266_v47  ;;  %4318 = vmatprep.mubr.msk.bf16.mxu1 %vm333_vm0, %v5475_v19 }
  0xff   : > { %4454 = vmatprep.mubr.msk.bf16.mxu0 %vm333_vm0, %v5280_v52 }
 0x105   : > { %4319 = vmatmul.mubr.msk.bf16.gmra.mrb[24].mxu1 %vm333_vm0, %v5479_v21 }
 0x106   : > { %4455 = vmatmul.mubr.msk.bf16.gmra.mrb[24].mxu0 %vm333_vm0, %v5282_v53  ;;  %4322 = vmatprep.mubr.msk.bf16.mxu1 %vm333_vm0, %v5497_v43 }
 0x107   : > { %4458 = vmatprep.mubr.msk.bf16.mxu0 %vm333_vm0, %v5298_v60 }
 0x10d   : > { %4323 = vmatmul.mubr.msk.bf16.gmra.mrb[28].mxu1 %vm333_vm0, %v1998_v18 }
 0x10e   : > { %4459 = vmatmul.mubr.msk.bf16.gmra.mrb[28].mxu0 %vm333_vm0, %v2297_v22 }
 0x10f   : > { %4464 = vmatprep.mubr.msk.bf16.mxu0 %vm333_vm0, %v5319_v8 }
 0x116   : > { %4465 = vmatmul.mubr.msk.bf16.vlgmr.msra.gmra.mrb[0].mxu0 %vm333_vm0, %v5323_v13 }
 0x117   : > { %4468 = vmatprep.mubr.msk.bf16.mxu0 %vm333_vm0, %v5357_v31 }
 0x11e   : > { %4469 = vmatmul.mubr.msk.bf16.gmra.mrb[4].mxu0 %vm333_vm0, %v5361_v33 }
 0x11f   : > { %4472 = vmatprep.mubr.msk.bf16.mxu0 %vm333_vm0, %v5381_v48 }
 0x126   : > { %4473 = vmatmul.mubr.msk.bf16.gmra.mrb[8].mxu0 %vm333_vm0, %v5385_v50 }
 0x127   : > { %4476 = vmatprep.mubr.msk.bf16.mxu0 %vm333_vm0, %v5405_v0 }
 0x12e   : > { %4477 = vmatmul.mubr.msk.bf16.gmra.mrb[12].mxu0 %vm333_vm0, %v5409_v2 }
 0x12f   : > { %4480 = vmatprep.mubr.msk.bf16.mxu0 %vm333_vm0, %v5429_v26 }
 0x136   : > { %4481 = vmatmul.mubr.msk.bf16.gmra.mrb[16].mxu0 %vm333_vm0, %v5433_v30 }
 0x137   : > { %4484 = vmatprep.mubr.msk.bf16.mxu0 %vm333_vm0, %v5453_v54 }
 0x13e   : > { %4485 = vmatmul.mubr.msk.bf16.gmra.mrb[20].mxu0 %vm333_vm0, %v5457_v56 }
 0x13f   : > { %4488 = vmatprep.mubr.msk.bf16.mxu0 %vm333_vm0, %v5477_v20 }
 0x146   : > { %4489 = vmatmul.mubr.msk.bf16.gmra.mrb[24].mxu0 %vm333_vm0, %v5481_v24 }
 0x147   : > { %4492 = vmatprep.mubr.msk.bf16.mxu0 %vm333_vm0, %v5499_v44 }
 0x14e   : > { %4493 = vmatmul.mubr.msk.bf16.gmra.mrb[28].mxu0 %vm333_vm0, %v2595_v29 }
 0x1a8   : > { %v4296_v35 = vpop.f32.mrb[0].mxu1 }
 0x1a9   : > { %v1196_v40 = vpop.f32.mrb[1].mxu1 }
 0x1aa   : > { %v4297_v41 = vpop.f32.mrb[2].mxu1 }
 0x1ab   : > { %v1199_v46 = vpop.f32.mrb[3].mxu1 }
 0x1b0   : > { %v4300_v47 = vpop.f32.mrb[4].mxu1 }
 0x1b1   : > { %v1212_v52 = vpop.f32.mrb[5].mxu1 }
 0x1b2   : > { %v4301_v53 = vpop.f32.mrb[6].mxu1 }
 0x1b3   : > { %v1215_v60 = vpop.f32.mrb[7].mxu1 }
 0x1b8   : > { %v5675_v7 = vpop.f32.mrb[8].mxu1 }
 0x1b9   : > { %v5677_v8 = vpop.f32.mrb[9].mxu1 }
 0x1ba   : > { %v5679_v11 = vpop.f32.mrb[10].mxu1 }
 0x1bb   : > { %v5681_v13 = vpop.f32.mrb[11].mxu1 }
 0x1c0   : > { %v5683_v16 = vpop.f32.mrb[12].mxu1 }
 0x1c1   : > { %v5685_v31 = vpop.f32.mrb[13].mxu1 }
 0x1c2   : > { %v5687_v32 = vpop.f32.mrb[14].mxu1 }
 0x1c3   : > { %v5689_v33 = vpop.f32.mrb[15].mxu1 }
 0x1c8   : > { %v5691_v45 = vpop.f32.mrb[16].mxu1 }
 0x1c9   : > { %v5693_v48 = vpop.f32.mrb[17].mxu1 }
 0x1ca   : > { %v5695_v49 = vpop.f32.mrb[18].mxu1 }
 0x1cb   : > { %v5697_v50 = vpop.f32.mrb[19].mxu1 }
 0x1d0   : > { %v5699_v63 = vpop.f32.mrb[20].mxu1 }
 0x1d1   : > { %v5701_v0 = vpop.f32.mrb[21].mxu1 }
 0x1d2   : > { %v5703_v1 = vpop.f32.mrb[22].mxu1 }
 0x1d3   : > { %v5705_v2 = vpop.f32.mrb[23].mxu1 }
 0x1d8   : > { %v5707_v25 = vpop.f32.mrb[24].mxu1 }
 0x1d9   : > { %v5709_v26 = vpop.f32.mrb[25].mxu1 }
 0x1da   : > { %v5711_v27 = vpop.f32.mrb[26].mxu1 }
 0x1db   : > { %v5713_v30 = vpop.f32.mrb[27].mxu1 }
 0x1e0   : > { %v5715_v51 = vpop.f32.mrb[28].mxu1 }
 0x1e1   : > { %v5717_v54 = vpop.f32.mrb[29].mxu1 }
 0x1e2   : > { %v5719_v55 = vpop.f32.mrb[30].mxu1 }
 0x1e3   : > { %v5721_v56 = vpop.f32.mrb[31].mxu1 }
 0x1e9   : > { %v4466_v4 = vpop.f32.mrb[0].mxu0 }
 0x1ea   : > { %v4530_v6 = vadd.f32 %v4466_v4, %v4296_v35  ;;  %v2687_v19 = vpop.f32.mrb[1].mxu0 }
 0x1eb   : > { %v4531_v20 = vadd.f32 %v2687_v19, %v1196_v40  ;;  %v4467_v21 = vpop.f32.mrb[2].mxu0 }
 0x1ec   : > { %v5729_v24 = vadd.f32 %v4530_v6, %v5726_v5  ;;  %v4532_v17 = vadd.f32 %v4467_v21, %v4297_v41  ;;  %v2690_v36 = vpop.f32.mrb[3].mxu0 }
 0x1ed   : > { %v5732_v37 = vadd.f32 %v4531_v20, %v5726_v5  ;;  %v4533_v38 = vadd.f32 %v2690_v36, %v1199_v46 }
 0x1ee   : > { %v2887_v39 = vsub.f32 0.0, %v5729_v24  ;;  %v5736_v42 = vadd.f32 %v4532_v17, %v5726_v5 }
 0x1ef   : > { %v2885_v43 = vsub.f32 0.0, %v5732_v37  ;;  %v5740_v44 = vadd.f32 %v4533_v38, %v5726_v5 }
 0x1f0   : > { %v2921_v57 = vmul.f32 1.442695, %v2887_v39  ;;  %v2888_v58 = vsub.f32 0.0, %v5736_v42 }
 0x1f1   : > { %v2917_v62 = vmul.f32 1.442695, %v2885_v43  ;;  %v2886_v14 = vsub.f32 0.0, %v5740_v44  ;;  %v4470_v18 = vpop.f32.mrb[4].mxu0 }
 0x1f2   : > { %4805 = vpow2.f32 %v2921_v57  ;;  %v2923_v59 = vmul.f32 1.442695, %v2888_v58  ;;  %v4534_v61 = vadd.f32 %v4470_v18, %v4300_v47  ;;  %v2703_v3 = vpop.f32.mrb[5].mxu0 }
 0x1f3   : > { %4807 = vpow2.f32 %v2917_v62  ;;  %v2919_v12 = vmul.f32 1.442695, %v2886_v14  ;;  %v4535_v15 = vadd.f32 %v2703_v3, %v1212_v52  ;;  %v4471_v22 = vpop.f32.mrb[6].mxu0 }
 0x1f4   : > { %4809 = vpow2.f32 %v2923_v59  ;;  %v5745_v23 = vadd.f32 %v4534_v61, %v5726_v5  ;;  %v4536_v28 = vadd.f32 %v4471_v22, %v4301_v53  ;;  %v2706_v29 = vpop.f32.mrb[7].mxu0 }
 0x1f5   : > { %4811 = vpow2.f32 %v2919_v12  ;;  %v5748_v34 = vadd.f32 %v4535_v15, %v5726_v5  ;;  %v4537_v35 = vadd.f32 %v2706_v29, %v1215_v60 }
 0x1f6   : > { %v2891_v40 = vsub.f32 0.0, %v5745_v23  ;;  %v5752_v41 = vadd.f32 %v4536_v28, %v5726_v5 }
 0x1f7   : > { %v2889_v46 = vsub.f32 0.0, %v5748_v34  ;;  %v5756_v47 = vadd.f32 %v4537_v35, %v5726_v5 }
 0x1f8   : > { %v2929_v52 = vmul.f32 1.442695, %v2891_v40  ;;  %v2892_v4 = vsub.f32 0.0, %v5752_v41 }
 0x1f9   : > { %v2925_v53 = vmul.f32 1.442695, %v2889_v46  ;;  %v2890_v6 = vsub.f32 0.0, %v5756_v47  ;;  %v4474_v19 = vpop.f32.mrb[8].mxu0 }
 0x1fa   : > { %4813 = vpow2.f32 %v2929_v52  ;;  %v2931_v20 = vmul.f32 1.442695, %v2892_v4  ;;  %v4538_v60 = vadd.f32 %v4474_v19, %v5675_v7  ;;  %v2719_v21 = vpop.f32.mrb[9].mxu0 }
 0x1fb   : > { %4815 = vpow2.f32 %v2925_v53  ;;  %v2927_v17 = vmul.f32 1.442695, %v2890_v6  ;;  %v4539_v36 = vadd.f32 %v2719_v21, %v5677_v8  ;;  %v4475_v38 = vpop.f32.mrb[10].mxu0 }
 0x1fc   : > { %v4806_v39 = vpop.eup %4805  ;;  %4817 = vpow2.f32 %v2931_v20  ;;  %v5763_v43 = vadd.f32 %v4538_v60, %v5726_v5  ;;  %v4540_v57 = vadd.f32 %v4475_v38, %v5679_v11  ;;  %v2722_v58 = vpop.f32.mrb[11].mxu0 }
 0x1fd   : > { %v4808_v62 = vpop.eup %4807  ;;  %v2983_v14 = vadd.f32 1.0, %v4806_v39  ;;  %4819 = vpow2.f32 %v2927_v17  ;;  %v5767_v18 = vadd.f32 %v4539_v36, %v5726_v5  ;;  %v4541_v7 = vadd.f32 %v2722_v58, %v5681_v13 }
 0x1fe   : > { %v4810_v59 = vpop.eup %4809  ;;  %v2981_v61 = vadd.f32 1.0, %v4808_v62  ;;  %v2895_v8 = vsub.f32 0.0, %v5763_v43  ;;  %v5772_v3 = vadd.f32 %v4540_v57, %v5726_v5 }
 0x1ff   : > { %v4812_v12 = vpop.eup %4811  ;;  %4821 = vrcp.f32 %v2983_v14  ;;  %v2984_v15 = vadd.f32 1.0, %v4810_v59  ;;  %v2893_v11 = vsub.f32 0.0, %v5767_v18  ;;  %v5776_v22 = vadd.f32 %v4541_v7, %v5726_v5 }
 0x200   : > { %4823 = vrcp.f32 %v2981_v61  ;;  %v2982_v28 = vadd.f32 1.0, %v4812_v12  ;;  %v2937_v29 = vmul.f32 1.442695, %v2895_v8  ;;  %v2896_v13 = vsub.f32 0.0, %v5772_v3 }
 0x201   : > { %4825 = vrcp.f32 %v2984_v15  ;;  %v2933_v35 = vmul.f32 1.442695, %v2893_v11  ;;  %v2894_v40 = vsub.f32 0.0, %v5776_v22  ;;  %v4478_v46 = vpop.f32.mrb[12].mxu0 }
 0x202   : > { %4827 = vrcp.f32 %v2982_v28  ;;  %v2939_v52 = vmul.f32 1.442695, %v2896_v13  ;;  %v4542_v4 = vadd.f32 %v4478_v46, %v5683_v16  ;;  %v2735_v53 = vpop.f32.mrb[13].mxu0 }
 0x203   : > { %4829 = vpow2.f32 %v2937_v29  ;;  %v2935_v6 = vmul.f32 1.442695, %v2894_v40  ;;  %v4543_v19 = vadd.f32 %v2735_v53, %v5685_v31  ;;  %v4479_v20 = vpop.f32.mrb[14].mxu0 }
 0x204   : > { %v4814_v60 = vpop.eup %4813  ;;  %4831 = vpow2.f32 %v2933_v35  ;;  %v5783_v21 = vadd.f32 %v4542_v4, %v5726_v5  ;;  %v4544_v17 = vadd.f32 %v4479_v20, %v5687_v32  ;;  %v2738_v36 = vpop.f32.mrb[15].mxu0 }
 0x205   : > { %v4816_v38 = vpop.eup %4815  ;;  %v2987_v39 = vadd.f32 1.0, %v4814_v60  ;;  %4833 = vpow2.f32 %v2939_v52  ;;  %v5787_v57 = vadd.f32 %v4543_v19, %v5726_v5  ;;  %v4545_v16 = vadd.f32 %v2738_v36, %v5689_v33 }
 0x206   : > { %v4818_v58 = vpop.eup %4817  ;;  %v2985_v62 = vadd.f32 1.0, %v4816_v38  ;;  %4835 = vpow2.f32 %v2935_v6  ;;  %v2899_v31 = vsub.f32 0.0, %v5783_v21  ;;  %v5792_v14 = vadd.f32 %v4544_v17, %v5726_v5 }
 0x207   : > { %v4820_v7 = vpop.eup %4819  ;;  %4837 = vrcp.f32 %v2987_v39  ;;  %v2988_v32 = vadd.f32 1.0, %v4818_v58  ;;  %v2897_v59 = vsub.f32 0.0, %v5787_v57  ;;  %v5796_v61 = vadd.f32 %v4545_v16, %v5726_v5 }
 0x208   : > { %4839 = vrcp.f32 %v2985_v62  ;;  %v2986_v8 = vadd.f32 1.0, %v4820_v7  ;;  %v2945_v12 = vmul.f32 1.442695, %v2899_v31  ;;  %v2900_v33 = vsub.f32 0.0, %v5792_v14 }
 0x209   : > { %v4822_v15 = vpop.eup %4821  ;;  %4841 = vrcp.f32 %v2988_v32  ;;  %v2941_v11 = vmul.f32 1.442695, %v2897_v59  ;;  %v2898_v28 = vsub.f32 0.0, %v5796_v61  ;;  %v4482_v29 = vpop.f32.mrb[16].mxu0 }
 0x20a   : > { %v4824_v13 = vpop.eup %4823  ;;  %v3047_v35 = vmul.f32 %v4822_v15, %v5729_v24  ;;  %4843 = vrcp.f32 %v2986_v8  ;;  %v2947_v40 = vmul.f32 1.442695, %v2900_v33  ;;  %v4546_v46 = vadd.f32 %v4482_v29, %v5691_v45  ;;  %v2751_v52 = vpop.f32.mrb[17].mxu0 }
 0x20b   : > { %v4826_v4 = vpop.eup %4825  ;;  %4845 = vpow2.f32 %v2945_v12  ;;  %v2943_v53 = vmul.f32 1.442695, %v2898_v28  ;;  %v4547_v6 = vadd.f32 %v2751_v52, %v5693_v48  ;;  %v4483_v19 = vpop.f32.mrb[18].mxu0  ;;  %v3045_v45 = vmul.f32 %v4824_v13, %v5732_v37 }
 0x20c   : > { %v4828_v20 = vpop.eup %4827  ;;  %v3048_v60 = vmul.f32 %v4826_v4, %v5736_v42  ;;  %4847 = vpow2.f32 %v2941_v11  ;;  %v5805_v17 = vadd.f32 %v4546_v46, %v5726_v5  ;;  %v2754_v36 = vpop.f32.mrb[19].mxu0  ;;  %v5808_v38 = vadd.f32 %v5162_v9, %v3047_v35 }
 0x20d   : > { %v4830_v24 = vpop.eup %4829  ;;  %4849 = vpow2.f32 %v2947_v40  ;;  %v5812_v39 = vadd.f32 %v4547_v6, %v5726_v5  ;;  %v3046_v31 = vmul.f32 %v4828_v20, %v5740_v44  ;;  %v4548_v37 = vadd.f32 %v4483_v19, %v5695_v49  ;;  %v5061_v6 = vld [vmem:[%s5155_s6 + $0x19] sm:$0xff]  ;;  %v5062_v20 = vld [vmem:[%s5155_s6 + $0x21] sm:$0xff] }
 0x20e   : > { %v4832_v48 = vpop.eup %4831  ;;  %v5815_v16 = vadd.f32 %v5165_v10, %v3048_v60  ;;  %v2991_v42 = vadd.f32 1.0, %v4830_v24  ;;  %4851 = vpow2.f32 %v2943_v53  ;;  %v2903_v58 = vsub.f32 0.0, %v5805_v17 }
 0x20f   : > { %v4834_v62 = vpop.eup %4833  ;;  %v2989_v7 = vadd.f32 1.0, %v4832_v48  ;;  %v2901_v9 = vsub.f32 0.0, %v5812_v39  ;;  %v5824_v11 = vadd.f32 %v4548_v37, %v5726_v5  ;;  %v4549_v29 = vadd.f32 %v2754_v36, %v5697_v50  ;;  %v5063_v36 = vld [vmem:[%s5155_s6 + $0x61] sm:$0xff] }
 0x210   : > { %v4836_v32 = vpop.eup %4835  ;;  %v3110_v59 = vpack.c.bf16 %v5815_v16, %v5808_v38  ;;  %4853 = vrcp.f32 %v2991_v42  ;;  %v2992_v8 = vadd.f32 1.0, %v4834_v62  ;;  %v2953_v10 = vmul.f32 1.442695, %v2903_v58 }
 0x211   : > { %v4838_v12 = vpop.eup %4837  ;;  %4855 = vrcp.f32 %v2989_v7  ;;  %v2990_v33 = vadd.f32 1.0, %v4836_v32  ;;  %v2949_v15 = vmul.f32 1.442695, %v2901_v9  ;;  %v4486_v44 = vpop.f32.mrb[20].mxu0  ;;  %v2904_v46 = vsub.f32 0.0, %v5824_v11 }
 0x212   : > { %v4840_v28 = vpop.eup %4839  ;;  %v3051_v49 = vmul.f32 %v4838_v12, %v5745_v23  ;;  %4857 = vrcp.f32 %v2992_v8  ;;  %v4550_v13 = vadd.f32 %v4486_v44, %v5699_v63  ;;  %v2767_v35 = vpop.f32.mrb[21].mxu0  ;;  %v3077_v19 = vadd.f32 %v5061_v6, %v3045_v45 }
 0x213   : > { %v4842_v40 = vpop.eup %4841  ;;  %4859 = vrcp.f32 %v2990_v33  ;;  %v4551_v52 = vadd.f32 %v2767_v35, %v5701_v0  ;;  %v4487_v4 = vpop.f32.mrb[22].mxu0  ;;  %v3078_v60 = vadd.f32 %v5062_v20, %v3046_v31  ;;  %v5834_v23 = vadd.f32 %v4549_v29, %v5726_v5 }
 0x214   : > { %v4844_v53 = vpop.eup %4843  ;;  %4861 = vpow2.f32 %v2953_v10  ;;  %v2770_v50 = vpop.f32.mrb[23].mxu0  ;;  %v5837_v24 = vadd.f32 %v5063_v36, %v3051_v49  ;;  %v3049_v48 = vmul.f32 %v4840_v28, %v5748_v34  ;;  %v2955_v42 = vmul.f32 1.442695, %v2904_v46 }
 0x215   : > { %v4846_v63 = vpop.eup %4845  ;;  %4863 = vpow2.f32 %v2949_v15  ;;  %v3052_v58 = vmul.f32 %v4842_v40, %v5752_v41  ;;  %v2902_v45 = vsub.f32 0.0, %v5834_v23  ;;  %v5843_v31 = vadd.f32 %v4550_v13, %v5726_v5 }
 0x216   : > { %v4848_v0 = vpop.eup %4847  ;;  %v2995_v62 = vadd.f32 1.0, %v4846_v63  ;;  %v3050_v9 = vmul.f32 %v4844_v53, %v5756_v47  ;;  %4865 = vpow2.f32 %v2955_v42  ;;  %v5847_v32 = vadd.f32 %v4551_v52, %v5726_v5  ;;  %v5066_v63 = vld [vmem:[%s5155_s6 + $0x51] sm:$0xff] }
 0x217   : > { %v4850_v7 = vpop.eup %4849  ;;  %v2993_v37 = vadd.f32 1.0, %v4848_v0  ;;  %v2951_v10 = vmul.f32 1.442695, %v2902_v45  ;;  %v2907_v41 = vsub.f32 0.0, %v5843_v31  ;;  %v4552_v15 = vadd.f32 %v4487_v4, %v5703_v1  ;;  %v5064_v4 = vld [vmem:[%s5155_s6 + $0x49] sm:$0xff]  ;;  %v5067_v0 = vld [vmem:[%s5155_s6 + $0x91] sm:$0xff] }
 0x218   : > { %v4852_v34 = vpop.eup %4851  ;;  %4867 = vrcp.f32 %v2995_v62  ;;  %v2996_v8 = vadd.f32 1.0, %v4850_v7  ;;  %v2905_v33 = vsub.f32 0.0, %v5847_v32  ;;  %v3109_v49 = vpack.c.bf16 %v3078_v60, %v3077_v19  ;;  %v5065_v60 = vld [vmem:[%s5155_s6 + $0x69] sm:$0xff] }
 0x219   : > { %4869 = vrcp.f32 %v2993_v37  ;;  %v2994_v12 = vadd.f32 1.0, %v4852_v34  ;;  %v4490_v44 = vpop.f32.mrb[24].mxu0  ;;  %v2961_v28 = vmul.f32 1.442695, %v2907_v41  ;;  %v4553_v29 = vadd.f32 %v2770_v50, %v5705_v2 }
 0x21a   : > { %v4854_v47 = vpop.eup %4853  ;;  %4871 = vrcp.f32 %v2996_v8  ;;  %v2783_v13 = vpop.f32.mrb[25].mxu0  ;;  %v2957_v46 = vmul.f32 1.442695, %v2905_v33  ;;  %v5855_v52 = vadd.f32 %v4552_v15, %v5726_v5  ;;  %v3081_v6 = vadd.f32 %v5064_v4, %v3049_v48  ;;  %4498 = vmatprep.mubr.msk.bf16.mxu1 %vm333_vm0, %v3109_v49 }
 0x21b   : > { %v4856_v35 = vpop.eup %4855  ;;  %v3055_v40 = vmul.f32 %v4854_v47, %v5763_v43  ;;  %4873 = vrcp.f32 %v2994_v12  ;;  %v4491_v53 = vpop.f32.mrb[26].mxu0  ;;  %v5860_v2 = vadd.f32 %v4553_v29, %v5726_v5  ;;  %v4554_v19 = vadd.f32 %v4490_v44, %v5707_v25  ;;  %4499 = vmatmul.mubr.msk.bf16.vlgmr.msra.gmra.mrb[32].mxu1 %vm333_vm0, %v3110_v59 }
 0x21c   : > { %v4858_v1 = vpop.eup %4857  ;;  %4875 = vpow2.f32 %v2951_v10  ;;  %v2786_v43 = vpop.f32.mrb[27].mxu0  ;;  %v5864_v50 = vadd.f32 %v5065_v60, %v3052_v58  ;;  %v3082_v36 = vadd.f32 %v5066_v63, %v3050_v9  ;;  %v2908_v42 = vsub.f32 0.0, %v5855_v52  ;;  %v5071_v60 = vld [vmem:[%s5155_s6 + $0xc1] sm:$0xff] }
 0x21d   : > { %v4860_v20 = vpop.eup %4859  ;;  %4877 = vpow2.f32 %v2961_v28  ;;  %v5873_v62 = vadd.f32 %v5067_v0, %v3055_v40  ;;  %v3053_v25 = vmul.f32 %v4856_v35, %v5767_v18  ;;  %v2906_v58 = vsub.f32 0.0, %v5860_v2  ;;  %v5068_v35 = vld [vmem:[%s5155_s6 + $0x79] sm:$0xff] }
 0x21e   : > { %v4862_v48 = vpop.eup %4861  ;;  %4879 = vpow2.f32 %v2957_v46  ;;  %v3056_v7 = vmul.f32 %v4858_v1, %v5772_v3  ;;  %v2963_v37 = vmul.f32 1.442695, %v2908_v42  ;;  %v5879_v34 = vadd.f32 %v4554_v19, %v5726_v5  ;;  %v5069_v1 = vld [vmem:[%s5155_s6 + $0x99] sm:$0xff] }
 0x21f   : > { %v4864_v45 = vpop.eup %4863  ;;  %v2999_v9 = vadd.f32 1.0, %v4862_v48  ;;  %v3054_v38 = vmul.f32 %v4860_v20, %v5776_v22  ;;  %v2959_v59 = vmul.f32 1.442695, %v2906_v58  ;;  %v4555_v8 = vadd.f32 %v2783_v13, %v5709_v26 }
 0x220   : > { %v2997_v16 = vadd.f32 1.0, %v4864_v45  ;;  %v4866_v10 = vpop.eup %4865  ;;  %v2911_v18 = vsub.f32 0.0, %v5879_v34  ;;  %v4556_v41 = vadd.f32 %v4491_v53, %v5711_v27  ;;  %v3111_v12 = vpack.c.bf16 %v3082_v36, %v3081_v6  ;;  %v5070_v6 = vld [vmem:[%s5155_s6 + $0x81] sm:$0xff] }
 0x221   : > { %4881 = vrcp.f32 %v2999_v9  ;;  %v4494_v3 = vpop.f32.mrb[28].mxu0  ;;  %v3000_v15 = vadd.f32 1.0, %v4866_v10  ;;  %v5886_v44 = vadd.f32 %v4555_v8, %v5726_v5  ;;  %v4557_v22 = vadd.f32 %v2786_v43, %v5713_v30 }
 0x222   : > { %v4868_v33 = vpop.eup %4867  ;;  %4883 = vrcp.f32 %v2997_v16  ;;  %v2799_v47 = vpop.f32.mrb[29].mxu0  ;;  %v2969_v49 = vmul.f32 1.442695, %v2911_v18  ;;  %v5891_v27 = vadd.f32 %v4556_v41, %v5726_v5  ;;  %4502 = vmatprep.mubr.msk.bf16.mxu1 %vm333_vm0, %v3111_v12  ;;  %v3085_v40 = vadd.f32 %v5068_v35, %v3053_v25  ;;  %v5072_v41 = vld [vmem:[%s5155_s6 + $0xc9] sm:$0xff] }
 0x223   : > { %v4870_v26 = vpop.eup %4869  ;;  %v3059_v28 = vmul.f32 %v4868_v33, %v5783_v21  ;;  %4885 = vpow2.f32 %v2963_v37  ;;  %v4495_v29 = vpop.f32.mrb[30].mxu0  ;;  %v2909_v30 = vsub.f32 0.0, %v5886_v44  ;;  %v5897_v46 = vadd.f32 %v4557_v22, %v5726_v5  ;;  %v5073_v22 = vld [vmem:[%s5155_s6 + $0xb1] sm:$0xff] }
 0x224   : > { %v4872_v13 = vpop.eup %4871  ;;  %4887 = vrcp.f32 %v3000_v15  ;;  %v2802_v21 = vpop.f32.mrb[31].mxu0  ;;  %v5900_v4 = vadd.f32 %v5069_v1, %v3056_v7  ;;  %v3086_v19 = vadd.f32 %v5070_v6, %v3054_v38  ;;  %v2912_v43 = vsub.f32 0.0, %v5891_v27 }
 0x225   : > { %v4874_v53 = vpop.eup %4873  ;;  %4889 = vpow2.f32 %v2959_v59  ;;  %v5905_v63 = vadd.f32 %v5071_v60, %v3059_v28  ;;  %v3057_v36 = vmul.f32 %v4870_v26, %v5787_v57  ;;  %v2965_v42 = vmul.f32 1.442695, %v2909_v30 }
 0x226   : > { %v4876_v20 = vpop.eup %4875  ;;  %4891 = vpow2.f32 %v2969_v49  ;;  %v3060_v0 = vmul.f32 %v4872_v13, %v5792_v14  ;;  %v3058_v25 = vmul.f32 %v4874_v53, %v5796_v61  ;;  %v2910_v45 = vsub.f32 0.0, %v5897_v46  ;;  %v5074_v13 = vld [vmem:[%s5155_s6 + $0xa9] sm:$0xff] }
 0x227   : > { %v4878_v48 = vpop.eup %4877  ;;  %v2998_v58 = vadd.f32 1.0, %v4876_v20  ;;  %4893 = vpow2.f32 %v2965_v42  ;;  %v2971_v37 = vmul.f32 1.442695, %v2912_v43  ;;  %v3112_v38 = vpack.c.bf16 %v5864_v50, %v5837_v24 }
 0x228   : > { %v4880_v7 = vpop.eup %4879  ;;  %v3003_v9 = vadd.f32 1.0, %v4878_v48  ;;  %v2967_v16 = vmul.f32 1.442695, %v2910_v45  ;;  %v4558_v59 = vadd.f32 %v4494_v3, %v5715_v51  ;;  %v4559_v14 = vadd.f32 %v2799_v47, %v5717_v54 }
 0x229   : > { %4895 = vrcp.f32 %v2998_v58  ;;  %v3001_v57 = vadd.f32 1.0, %v4880_v7  ;;  %4503 = vmatmul.mubr.msk.bf16.gmra.mrb[36].mxu1 %vm333_vm0, %v3112_v38  ;;  %v4560_v61 = vadd.f32 %v4495_v29, %v5719_v55  ;;  %v3113_v8 = vpack.c.bf16 %v3086_v19, %v3085_v40  ;;  %v5076_v19 = vld [vmem:[%s5155_s6 + $0xf9] sm:$0xff] }
 0x22a   : > { %4897 = vrcp.f32 %v3003_v9  ;;  %v5918_v18 = vadd.f32 %v4558_v59, %v5726_v5  ;;  %v4561_v24 = vadd.f32 %v2802_v21, %v5721_v56  ;;  %v3114_v50 = vpack.c.bf16 %v5900_v4, %v5873_v62  ;;  %v5075_v4 = vld [vmem:[%s5155_s6 + $0xf1] sm:$0xff] }
 0x22b   : > { %v4882_v10 = vpop.eup %4881  ;;  %4899 = vrcp.f32 %v3001_v57  ;;  %v5924_v12 = vadd.f32 %v5072_v41, %v3060_v0  ;;  %v5927_v54 = vadd.f32 %v4559_v14, %v5726_v5  ;;  %v5930_v55 = vadd.f32 %v4560_v61, %v5726_v5  ;;  %4506 = vmatprep.mubr.msk.bf16.mxu1 %vm333_vm0, %v3113_v8  ;;  %v5078_v57 = vld [vmem:[%s5155_s6 + $0xe1] sm:$0xff] }
 0x22c   : > { %v4884_v51 = vpop.eup %4883  ;;  %4901 = vpow2.f32 %v2971_v37  ;;  %v3063_v56 = vmul.f32 %v4882_v10, %v5805_v17  ;;  %v2915_v62 = vsub.f32 0.0, %v5918_v18  ;;  %v5936_v33 = vadd.f32 %v4561_v24, %v5726_v5  ;;  %v5077_v37 = vld [vmem:[%s5155_s6 + $0xd9] sm:$0xff] }
 0x22d   : > { %v4886_v3 = vpop.eup %4885  ;;  %4903 = vpow2.f32 %v2967_v16  ;;  %v3090_v47 = vadd.f32 %v5073_v22, %v3058_v25  ;;  %v2913_v28 = vsub.f32 0.0, %v5927_v54  ;;  %v2916_v49 = vsub.f32 0.0, %v5930_v55 }
 0x22e   : > { %v4888_v15 = vpop.eup %4887  ;;  %v3004_v26 = vadd.f32 1.0, %v4886_v3  ;;  %v3089_v35 = vadd.f32 %v5074_v13, %v3057_v36  ;;  %v2977_v40 = vmul.f32 1.442695, %v2915_v62  ;;  %v2914_v30 = vsub.f32 0.0, %v5936_v33  ;;  %v5079_v3 = vld [vmem:[%s5155_s6 + $0x121] sm:$0xff] }
 0x22f   : > { %v4890_v29 = vpop.eup %4889  ;;  %v3064_v17 = vmul.f32 %v4888_v15, %v5824_v11  ;;  %v3061_v21 = vmul.f32 %v4884_v51, %v5812_v39  ;;  %v2973_v1 = vmul.f32 1.442695, %v2913_v28  ;;  %v5946_v6 = vadd.f32 %v5075_v4, %v3063_v56  ;;  %v5082_v28 = vld [vmem:[%s5155_s6 + $0x111] sm:$0xff] }
 0x230   : > { %v4892_v5 = vpop.eup %4891  ;;  %4905 = vrcp.f32 %v3004_v26  ;;  %v3002_v53 = vadd.f32 1.0, %v4890_v29  ;;  %v2979_v11 = vmul.f32 1.442695, %v2916_v49  ;;  %v3115_v36 = vpack.c.bf16 %v3090_v47, %v3089_v35 }
 0x231   : > { %v5949_v43 = vadd.f32 %v5076_v19, %v3064_v17  ;;  %v3007_v20 = vadd.f32 1.0, %v4892_v5  ;;  %4907 = vpow2.f32 %v2977_v40  ;;  %v4894_v60 = vpop.eup %4893  ;;  %4507 = vmatmul.mubr.msk.bf16.gmra.mrb[40].mxu1 %vm333_vm0, %v3114_v50  ;;  %v3116_v39 = vpack.c.bf16 %v5924_v12, %v5905_v63 }
 0x232   : > { %4909 = vrcp.f32 %v3002_v53  ;;  %v3005_v48 = vadd.f32 1.0, %v4894_v60  ;;  %v2975_v0 = vmul.f32 1.442695, %v2914_v30  ;;  %4510 = vmatprep.mubr.msk.bf16.mxu1 %vm333_vm0, %v3115_v36  ;;  %v3093_v38 = vadd.f32 %v5077_v37, %v3061_v21  ;;  %v5088_v37 = vld [vmem:[%s5155_s6 + $0x189] sm:$0xff] }
 0x233   : > { %v4896_v42 = vpop.eup %4895  ;;  %4911 = vrcp.f32 %v3007_v20  ;;  %v3118_v25 = vpack.c.bf16 %v5949_v43, %v5946_v6  ;;  %v5083_v6 = vld [vmem:[%s5155_s6 + $0x151] sm:$0xff]  ;;  %v5084_v43 = vld [vmem:[%s5155_s6 + $0x159] sm:$0xff] }
 0x234   : > { %v4898_v58 = vpop.eup %4897  ;;  %v3062_v45 = vmul.f32 %v4896_v42, %v5834_v23  ;;  %4913 = vpow2.f32 %v2973_v1  ;;  %v5085_v20 = vld [vmem:[%s5155_s6 + $0x139] sm:$0xff] }
 0x235   : > { %v4900_v7 = vpop.eup %4899  ;;  %4915 = vrcp.f32 %v3005_v48  ;;  %v3067_v23 = vmul.f32 %v4898_v58, %v5843_v31  ;;  %v5080_v31 = vld [vmem:[%s5155_s6 + $0x129] sm:$0xff] }
 0x236   : > { %v4902_v9 = vpop.eup %4901  ;;  %v3094_v63 = vadd.f32 %v5078_v57, %v3062_v45  ;;  %4917 = vpow2.f32 %v2979_v11  ;;  %v3065_v10 = vmul.f32 %v4900_v7, %v5847_v32  ;;  %v5081_v32 = vld [vmem:[%s5155_s6 + $0x109] sm:$0xff]  ;;  %v5086_v11 = vld [vmem:[%s5155_s6 + $0x141] sm:$0xff] }
 0x237   : > { %v4904_v16 = vpop.eup %4903  ;;  %v3008_v59 = vadd.f32 1.0, %v4902_v9  ;;  %4919 = vpow2.f32 %v2975_v0  ;;  %v3099_v56 = vadd.f32 %v5079_v3, %v3067_v23  ;;  %v5087_v7 = vld [vmem:[%s5155_s6 + $0x181] sm:$0xff]  ;;  %v5089_v57 = vld [vmem:[%s5155_s6 + $0x169] sm:$0xff] }
 0x238   : > { %v3006_v14 = vadd.f32 1.0, %v4904_v16  ;;  %v3117_v61 = vpack.c.bf16 %v3094_v63, %v3093_v38  ;;  %v3097_v47 = vadd.f32 %v5081_v32, %v3065_v10  ;;  %v5090_v16 = vld [vmem:[%s5155_s6 + $0x171] sm:$0xff] }
 0x239   : > { %4921 = vrcp.f32 %v3008_v59  ;;  %4511 = vmatmul.mubr.msk.bf16.gmra.mrb[44].mxu1 %vm333_vm0, %v3116_v39 }
 0x23a   : > { %v4906_v8 = vpop.eup %4905  ;;  %4923 = vrcp.f32 %v3006_v14  ;;  %4514 = vmatprep.mubr.msk.bf16.mxu1 %vm333_vm0, %v3117_v61 }
 0x23b   : > { %v4908_v24 = vpop.eup %4907  ;;  %v3068_v50 = vmul.f32 %v4906_v8, %v5855_v52 }
 0x23c   : > { %v4910_v51 = vpop.eup %4909  ;;  %v3011_v41 = vadd.f32 1.0, %v4908_v24 }
 0x23d   : > { %v4912_v12 = vpop.eup %4911  ;;  %v3100_v62 = vadd.f32 %v5080_v31, %v3068_v50  ;;  %v3066_v15 = vmul.f32 %v4910_v51, %v5860_v2 }
 0x23e   : > { %v4914_v22 = vpop.eup %4913  ;;  %4925 = vrcp.f32 %v3011_v41  ;;  %v3071_v30 = vmul.f32 %v4912_v12, %v5879_v34 }
 0x23f   : > { %v4916_v26 = vpop.eup %4915  ;;  %v3098_v49 = vadd.f32 %v5082_v28, %v3066_v15  ;;  %v3009_v29 = vadd.f32 1.0, %v4914_v22  ;;  %v3120_v52 = vpack.c.bf16 %v3100_v62, %v3099_v56 }
 0x240   : > { %v4918_v13 = vpop.eup %4917  ;;  %v3069_v21 = vmul.f32 %v4916_v26, %v5886_v44  ;;  %v3103_v19 = vadd.f32 %v5083_v6, %v3071_v30 }
 0x241   : > { %v4920_v35 = vpop.eup %4919  ;;  %4927 = vrcp.f32 %v3009_v29  ;;  %v3012_v17 = vadd.f32 1.0, %v4918_v13  ;;  %v3119_v40 = vpack.c.bf16 %v3098_v49, %v3097_v47  ;;  %4515 = vmatmul.mubr.msk.bf16.gmra.mrb[48].mxu1 %vm333_vm0, %v3118_v25 }
 0x242   : > { %v3010_v2 = vadd.f32 1.0, %v4920_v35  ;;  %v3101_v60 = vadd.f32 %v5085_v20, %v3069_v21 }
 0x243   : > { %v4922_v5 = vpop.eup %4921  ;;  %4929 = vrcp.f32 %v3012_v17  ;;  %4518 = vmatprep.mubr.msk.bf16.mxu1 %vm333_vm0, %v3119_v40 }
 0x244   : > { %v4924_v53 = vpop.eup %4923  ;;  %v3072_v1 = vmul.f32 %v4922_v5, %v5891_v27  ;;  %4931 = vrcp.f32 %v3010_v2 }
 0x245   : > { %v3070_v4 = vmul.f32 %v4924_v53, %v5897_v46 }
 0x246   : > { %v3104_v34 = vadd.f32 %v5084_v43, %v3072_v1 }
 0x247   : > { %v3102_v36 = vadd.f32 %v5086_v11, %v3070_v4 }
 0x248   : > { %v3122_v44 = vpack.c.bf16 %v3104_v34, %v3103_v19  ;;  %v4926_v39 = vpop.eup %4925 }
 0x249   : > { %v3121_v42 = vpack.c.bf16 %v3102_v36, %v3101_v60  ;;  %4519 = vmatmul.mubr.msk.bf16.gmra.mrb[52].mxu1 %vm333_vm0, %v3120_v52  ;;  %v3075_v46 = vmul.f32 %v4926_v39, %v5918_v18 }
 0x24b   : > { %v4928_v27 = vpop.eup %4927  ;;  %4522 = vmatprep.mubr.msk.bf16.mxu1 %vm333_vm0, %v3121_v42  ;;  %v3107_v9 = vadd.f32 %v5087_v7, %v3075_v46 }
 0x24c   : > { %v3073_v0 = vmul.f32 %v4928_v27, %v5927_v54  ;;  %v5996_v54 = vld [vmem:[%s6235_s4] ss:$0 sm:$0xff] }
 0x24d   : > { %v4930_v48 = vpop.eup %4929 }
 0x24e   : > { %v4932_v25 = vpop.eup %4931  ;;  %v3076_v58 = vmul.f32 %v4930_v48, %v5930_v55  ;;  %v3105_v63 = vadd.f32 %v5089_v57, %v3073_v0 }
 0x24f   : > { %v3074_v45 = vmul.f32 %v4932_v25, %v5936_v33 }
 0x250   : > { %v3108_v38 = vadd.f32 %v5088_v37, %v3076_v58 }
 0x251   : > { %v3106_v59 = vadd.f32 %v5090_v16, %v3074_v45  ;;  %4523 = vmatmul.mubr.msk.bf16.gmra.mrb[56].mxu1 %vm333_vm0, %v3122_v44 }
 0x252   : > { %v3124_v14 = vpack.c.bf16 %v3108_v38, %v3107_v9 }
 0x253   : > { %v3123_v18 = vpack.c.bf16 %v3106_v59, %v3105_v63 }
 0x255   : > { %4526 = vmatprep.mubr.msk.bf16.mxu1 %vm333_vm0, %v3123_v18 }
 0x259   : > { %4527 = vmatmul.mubr.msk.bf16.gmra.mrb[60].mxu1 %vm333_vm0, %v3124_v14 }
 0x2ee   : > { %v4500_v55 = vpop.f32.mrb[32].mxu1 }
 0x2ef   : > { %v5999_v33 = vadd.f32 %v4500_v55, %v5996_v54  ;;  %v3222_v61 = vpop.f32.mrb[33].mxu1 }
 0x2f0   : > { %v6002_v23 = vadd.f32 %v5996_v54, %v3222_v61  ;;  %v4501_v8 = vpop.f32.mrb[34].mxu1 }
 0x2f1   : > { %v3351_v10 = vsub.f32 0.0, %v5999_v33  ;;  %v6006_v24 = vadd.f32 %v4501_v8, %v5996_v54  ;;  %v3225_v50 = vpop.f32.mrb[35].mxu1 }
 0x2f2   : > { %v3349_v51 = vsub.f32 0.0, %v6002_v23  ;;  %v6010_v41 = vadd.f32 %v5996_v54, %v3225_v50 }
 0x2f3   : > { %v3385_v12 = vmul.f32 1.442695, %v3351_v10  ;;  %v3352_v3 = vsub.f32 0.0, %v6006_v24 }
 0x2f4   : > { %v3381_v56 = vmul.f32 1.442695, %v3349_v51  ;;  %v3350_v31 = vsub.f32 0.0, %v6010_v41 }
 0x2f5   : > { %4933 = vpow2.f32 %v3385_v12  ;;  %v3387_v62 = vmul.f32 1.442695, %v3352_v3 }
 0x2f6   : > { %4935 = vpow2.f32 %v3381_v56  ;;  %v3383_v15 = vmul.f32 1.442695, %v3350_v31 }
 0x2f7   : > { %4937 = vpow2.f32 %v3387_v62 }
 0x2f8   : > { %4939 = vpow2.f32 %v3383_v15 }
 0x2fc   : > { %v4504_v22 = vpop.f32.mrb[36].mxu1 }
 0x2fd   : > { %v6015_v32 = vadd.f32 %v4504_v22, %v5996_v54  ;;  %v3238_v47 = vpop.f32.mrb[37].mxu1 }
 0x2fe   : > { %v6018_v26 = vadd.f32 %v5996_v54, %v3238_v47  ;;  %v4505_v28 = vpop.f32.mrb[38].mxu1 }
 0x2ff   : > { %v3355_v49 = vsub.f32 0.0, %v6015_v32  ;;  %v6022_v29 = vadd.f32 %v4505_v28, %v5996_v54  ;;  %v3241_v52 = vpop.f32.mrb[39].mxu1  ;;  %v4934_v13 = vpop.eup %4933 }
 0x300   : > { %v3353_v35 = vsub.f32 0.0, %v6018_v26  ;;  %v6026_v17 = vadd.f32 %v5996_v54, %v3241_v52  ;;  %v4936_v40 = vpop.eup %4935  ;;  %v3447_v30 = vadd.f32 1.0, %v4934_v13 }
 0x301   : > { %v3356_v2 = vsub.f32 0.0, %v6022_v29  ;;  %v4938_v5 = vpop.eup %4937  ;;  %v3445_v21 = vadd.f32 1.0, %v4936_v40  ;;  %v3393_v6 = vmul.f32 1.442695, %v3355_v49 }
 0x302   : > { %v3354_v53 = vsub.f32 0.0, %v6026_v17  ;;  %v4940_v1 = vpop.eup %4939  ;;  %4941 = vrcp.f32 %v3447_v30  ;;  %v3448_v4 = vadd.f32 1.0, %v4938_v5  ;;  %v3389_v43 = vmul.f32 1.442695, %v3353_v35 }
 0x303   : > { %4943 = vrcp.f32 %v3445_v21  ;;  %v3446_v19 = vadd.f32 1.0, %v4940_v1  ;;  %v3395_v20 = vmul.f32 1.442695, %v3356_v2 }
 0x304   : > { %v4508_v34 = vpop.f32.mrb[40].mxu1  ;;  %4945 = vrcp.f32 %v3448_v4  ;;  %v3391_v36 = vmul.f32 1.442695, %v3354_v53 }
 0x305   : > { %v6031_v60 = vadd.f32 %v4508_v34, %v5996_v54  ;;  %v3254_v11 = vpop.f32.mrb[41].mxu1  ;;  %4947 = vrcp.f32 %v3446_v19 }
 0x306   : > { %v6034_v44 = vadd.f32 %v5996_v54, %v3254_v11  ;;  %v4509_v39 = vpop.f32.mrb[42].mxu1  ;;  %4949 = vpow2.f32 %v3393_v6 }
 0x307   : > { %v3359_v42 = vsub.f32 0.0, %v6031_v60  ;;  %v6038_v27 = vadd.f32 %v4509_v39, %v5996_v54  ;;  %v3257_v46 = vpop.f32.mrb[43].mxu1  ;;  %4951 = vpow2.f32 %v3389_v43 }
 0x308   : > { %v3357_v48 = vsub.f32 0.0, %v6034_v44  ;;  %v6042_v0 = vadd.f32 %v5996_v54, %v3257_v46  ;;  %4953 = vpow2.f32 %v3395_v20 }
 0x309   : > { %v3401_v25 = vmul.f32 1.442695, %v3359_v42  ;;  %v3360_v58 = vsub.f32 0.0, %v6038_v27  ;;  %4955 = vpow2.f32 %v3391_v36 }
 0x30a   : > { %v3397_v45 = vmul.f32 1.442695, %v3357_v48  ;;  %v3358_v7 = vsub.f32 0.0, %v6042_v0 }
 0x30b   : > { %4957 = vpow2.f32 %v3401_v25  ;;  %v3403_v9 = vmul.f32 1.442695, %v3360_v58 }
 0x30c   : > { %4959 = vpow2.f32 %v3397_v45  ;;  %v3399_v37 = vmul.f32 1.442695, %v3358_v7  ;;  %v4512_v38 = vpop.f32.mrb[44].mxu1  ;;  %v4942_v57 = vpop.eup %4941 }
 0x30d   : > { %4961 = vpow2.f32 %v3403_v9  ;;  %v6053_v63 = vadd.f32 %v4512_v38, %v5996_v54  ;;  %v3270_v16 = vpop.f32.mrb[45].mxu1  ;;  %v4944_v59 = vpop.eup %4943  ;;  %v3511_v14 = vmul.f32 %v4942_v57, %v5999_v33 }
 0x30e   : > { %4963 = vpow2.f32 %v3399_v37  ;;  %v6057_v18 = vadd.f32 %v5996_v54, %v3270_v16  ;;  %v4513_v55 = vpop.f32.mrb[46].mxu1  ;;  %v4946_v61 = vpop.eup %4945  ;;  %v3509_v8 = vmul.f32 %v4944_v59, %v6002_v23 }
 0x30f   : > { %v3363_v10 = vsub.f32 0.0, %v6053_v63  ;;  %v3273_v50 = vpop.f32.mrb[47].mxu1  ;;  %v4948_v51 = vpop.eup %4947  ;;  %3544 = vst.msk [vmem:[%s6050_s28 + $0x10] sm:$0xff] %vm3541_vm1, %v3511_v14  ;;  %v3512_v12 = vmul.f32 %v4946_v61, %v6006_v24  ;;  %v6065_v33 = vadd.f32 %v4513_v55, %v5996_v54 }
 0x310   : > { %v4950_v3 = vpop.eup %4949  ;;  %3542 = vst.msk [vmem:[%s6050_s28] sm:$0xff] %vm3541_vm1, %v3509_v8  ;;  %v3510_v56 = vmul.f32 %v4948_v51, %v6010_v41  ;;  %v3361_v23 = vsub.f32 0.0, %v6057_v18  ;;  %v6074_v22 = vadd.f32 %v5996_v54, %v3273_v50 }
 0x311   : > { %v3409_v31 = vmul.f32 1.442695, %v3363_v10  ;;  %v4952_v62 = vpop.eup %4951  ;;  %3545 = vst.msk [vmem:[%s6050_s28 + $0x18] sm:$0xff] %vm3541_vm1, %v3512_v12  ;;  %v3451_v15 = vadd.f32 1.0, %v4950_v3  ;;  %v3364_v41 = vsub.f32 0.0, %v6065_v33 }
 0x312   : > { %v4954_v47 = vpop.eup %4953  ;;  %3543 = vst.msk [vmem:[%s6050_s28 + $0x8] sm:$0xff] %vm3541_vm1, %v3510_v56  ;;  %v3449_v24 = vadd.f32 1.0, %v4952_v62  ;;  %v3405_v40 = vmul.f32 1.442695, %v3361_v23  ;;  %v3362_v53 = vsub.f32 0.0, %v6074_v22 }
 0x313   : > { %4965 = vpow2.f32 %v3409_v31  ;;  %v4956_v28 = vpop.eup %4955  ;;  %v3452_v49 = vadd.f32 1.0, %v4954_v47  ;;  %v3411_v39 = vmul.f32 1.442695, %v3364_v41 }
 0x314   : > { %4967 = vrcp.f32 %v3451_v15  ;;  %v4516_v52 = vpop.f32.mrb[48].mxu1  ;;  %v3450_v35 = vadd.f32 1.0, %v4956_v28  ;;  %v3407_v58 = vmul.f32 1.442695, %v3362_v53 }
 0x315   : > { %v4958_v13 = vpop.eup %4957  ;;  %4969 = vrcp.f32 %v3449_v24  ;;  %v6080_v30 = vadd.f32 %v4516_v52, %v5996_v54  ;;  %v3286_v2 = vpop.f32.mrb[49].mxu1 }
 0x316   : > { %v4960_v5 = vpop.eup %4959  ;;  %4971 = vrcp.f32 %v3452_v49  ;;  %v3455_v21 = vadd.f32 1.0, %v4958_v13  ;;  %v6084_v1 = vadd.f32 %v5996_v54, %v3286_v2  ;;  %v4517_v4 = vpop.f32.mrb[50].mxu1 }
 0x317   : > { %v4962_v6 = vpop.eup %4961  ;;  %4973 = vrcp.f32 %v3450_v35  ;;  %v3453_v19 = vadd.f32 1.0, %v4960_v5  ;;  %v3367_v43 = vsub.f32 0.0, %v6080_v30  ;;  %v6088_v34 = vadd.f32 %v4517_v4, %v5996_v54  ;;  %v3289_v20 = vpop.f32.mrb[51].mxu1 }
 0x318   : > { %v4964_v11 = vpop.eup %4963  ;;  %4975 = vrcp.f32 %v3455_v21  ;;  %v3456_v36 = vadd.f32 1.0, %v4962_v6  ;;  %v6091_v42 = vadd.f32 %v5996_v54, %v3289_v20  ;;  %v3365_v48 = vsub.f32 0.0, %v6084_v1 }
 0x319   : > { %4977 = vrcp.f32 %v3453_v19  ;;  %v3454_v46 = vadd.f32 1.0, %v4964_v11  ;;  %v3368_v25 = vsub.f32 0.0, %v6088_v34  ;;  %v3417_v7 = vmul.f32 1.442695, %v3367_v43 }
 0x31a   : > { %4979 = vrcp.f32 %v3456_v36  ;;  %v3366_v45 = vsub.f32 0.0, %v6091_v42  ;;  %v3413_v38 = vmul.f32 1.442695, %v3365_v48 }
 0x31b   : > { %4981 = vrcp.f32 %v3454_v46  ;;  %v3419_v57 = vmul.f32 1.442695, %v3368_v25 }
 0x31c   : > { %4983 = vpow2.f32 %v3405_v40  ;;  %v4520_v9 = vpop.f32.mrb[52].mxu1  ;;  %v3415_v61 = vmul.f32 1.442695, %v3366_v45 }
 0x31d   : > { %v4966_v37 = vpop.eup %4965  ;;  %4985 = vpow2.f32 %v3411_v39  ;;  %v6097_v16 = vadd.f32 %v4520_v9, %v5996_v54  ;;  %v3302_v59 = vpop.f32.mrb[53].mxu1 }
 0x31e   : > { %v4968_v14 = vpop.eup %4967  ;;  %v3459_v55 = vadd.f32 1.0, %v4966_v37  ;;  %4987 = vpow2.f32 %v3407_v58  ;;  %v6100_v8 = vadd.f32 %v5996_v54, %v3302_v59  ;;  %v4521_v10 = vpop.f32.mrb[54].mxu1 }
 0x31f   : > { %v4970_v50 = vpop.eup %4969  ;;  %v3515_v51 = vmul.f32 %v4968_v14, %v6015_v32  ;;  %4989 = vpow2.f32 %v3417_v7  ;;  %v3371_v12 = vsub.f32 0.0, %v6097_v16  ;;  %v6105_v3 = vadd.f32 %v4521_v10, %v5996_v54  ;;  %v3305_v56 = vpop.f32.mrb[55].mxu1 }
 0x320   : > { %v4972_v31 = vpop.eup %4971  ;;  %v3513_v23 = vmul.f32 %v4970_v50, %v6018_v26  ;;  %4991 = vrcp.f32 %v3459_v55  ;;  %v3369_v62 = vsub.f32 0.0, %v6100_v8  ;;  %v6110_v15 = vadd.f32 %v5996_v54, %v3305_v56 }
 0x321   : > { %v4974_v47 = vpop.eup %4973  ;;  %3548 = vst.msk [vmem:[%s6050_s28 + $0x30] sm:$0xff] %vm3541_vm1, %v3515_v51  ;;  %v3516_v32 = vmul.f32 %v4972_v31, %v6022_v29  ;;  %4993 = vpow2.f32 %v3413_v38  ;;  %v3425_v24 = vmul.f32 1.442695, %v3371_v12  ;;  %v3372_v28 = vsub.f32 0.0, %v6105_v3 }
 0x322   : > { %v4976_v49 = vpop.eup %4975  ;;  %3546 = vst.msk [vmem:[%s6050_s28 + $0x20] sm:$0xff] %vm3541_vm1, %v3513_v23  ;;  %v3514_v26 = vmul.f32 %v4974_v47, %v6026_v17  ;;  %4995 = vpow2.f32 %v3419_v57  ;;  %v3421_v41 = vmul.f32 1.442695, %v3369_v62  ;;  %v3370_v52 = vsub.f32 0.0, %v6110_v15 }
 0x323   : > { %v4978_v13 = vpop.eup %4977  ;;  %3549 = vst.msk [vmem:[%s6050_s28 + $0x38] sm:$0xff] %vm3541_vm1, %v3516_v32  ;;  %v3519_v29 = vmul.f32 %v4976_v49, %v6031_v60  ;;  %4997 = vpow2.f32 %v3415_v61  ;;  %v3427_v35 = vmul.f32 1.442695, %v3372_v28 }
 0x324   : > { %v4980_v40 = vpop.eup %4979  ;;  %3547 = vst.msk [vmem:[%s6050_s28 + $0x28] sm:$0xff] %vm3541_vm1, %v3514_v26  ;;  %v3517_v2 = vmul.f32 %v4978_v13, %v6034_v44  ;;  %4999 = vpow2.f32 %v3425_v24  ;;  %v3423_v17 = vmul.f32 1.442695, %v3370_v52  ;;  %v4524_v5 = vpop.f32.mrb[56].mxu1 }
 0x325   : > { %v4982_v21 = vpop.eup %4981  ;;  %3552 = vst.msk [vmem:[%s6050_s28 + $0x50] sm:$0xff] %vm3541_vm1, %v3519_v29  ;;  %v3520_v53 = vmul.f32 %v4980_v40, %v6038_v27  ;;  %5001 = vpow2.f32 %v3421_v41  ;;  %v6130_v60 = vadd.f32 %v4524_v5, %v5996_v54  ;;  %v3318_v4 = vpop.f32.mrb[57].mxu1 }
 0x326   : > { %v4984_v6 = vpop.eup %4983  ;;  %3550 = vst.msk [vmem:[%s6050_s28 + $0x40] sm:$0xff] %vm3541_vm1, %v3517_v2  ;;  %v3518_v44 = vmul.f32 %v4982_v21, %v6042_v0  ;;  %5003 = vpow2.f32 %v3427_v35  ;;  %v4525_v19 = vpop.f32.mrb[58].mxu1  ;;  %v6147_v45 = vadd.f32 %v5996_v54, %v3318_v4 }
 0x327   : > { %v4986_v43 = vpop.eup %4985  ;;  %3553 = vst.msk [vmem:[%s6050_s28 + $0x58] sm:$0xff] %vm3541_vm1, %v3520_v53  ;;  %v3457_v20 = vadd.f32 1.0, %v4984_v6  ;;  %5005 = vpow2.f32 %v3423_v17  ;;  %v3375_v27 = vsub.f32 0.0, %v6130_v60  ;;  %v6139_v11 = vadd.f32 %v4525_v19, %v5996_v54  ;;  %v3321_v36 = vpop.f32.mrb[59].mxu1 }
 0x328   : > { %v4988_v39 = vpop.eup %4987  ;;  %3551 = vst.msk [vmem:[%s6050_s28 + $0x48] sm:$0xff] %vm3541_vm1, %v3518_v44  ;;  %v3460_v46 = vadd.f32 1.0, %v4986_v43  ;;  %v6144_v48 = vadd.f32 %v5996_v54, %v3321_v36  ;;  %v3373_v10 = vsub.f32 0.0, %v6147_v45 }
 0x329   : > { %v4990_v0 = vpop.eup %4989  ;;  %5007 = vrcp.f32 %v3457_v20  ;;  %v3458_v25 = vadd.f32 1.0, %v4988_v39  ;;  %v3433_v58 = vmul.f32 1.442695, %v3375_v27 }
 0x32a   : > { %v4992_v7 = vpop.eup %4991  ;;  %5009 = vrcp.f32 %v3460_v46  ;;  %v3463_v9 = vadd.f32 1.0, %v4990_v0  ;;  %v3374_v32 = vsub.f32 0.0, %v6144_v48  ;;  %v3429_v35 = vmul.f32 1.442695, %v3373_v10 }
 0x32b   : > { %v4994_v37 = vpop.eup %4993  ;;  %v3523_v38 = vmul.f32 %v4992_v7, %v6053_v63  ;;  %5011 = vrcp.f32 %v3458_v25  ;;  %v3376_v63 = vsub.f32 0.0, %v6139_v11 }
 0x32c   : > { %v4996_v57 = vpop.eup %4995  ;;  %5013 = vrcp.f32 %v3463_v9  ;;  %v3461_v59 = vadd.f32 1.0, %v4994_v37  ;;  %v4528_v14 = vpop.f32.mrb[60].mxu1  ;;  %v3431_v21 = vmul.f32 1.442695, %v3374_v32 }
 0x32d   : > { %v4998_v55 = vpop.eup %4997  ;;  %3556 = vst.msk [vmem:[%s6050_s28 + $0x70] sm:$0xff] %vm3541_vm1, %v3523_v38  ;;  %v3464_v61 = vadd.f32 1.0, %v4996_v57  ;;  %5015 = vpow2.f32 %v3433_v58  ;;  %v6154_v50 = vadd.f32 %v4528_v14, %v5996_v54  ;;  %v3334_v51 = vpop.f32.mrb[61].mxu1  ;;  %v3435_v17 = vmul.f32 1.442695, %v3376_v63 }
 0x32e   : > { %v5000_v12 = vpop.eup %4999  ;;  %5017 = vrcp.f32 %v3461_v59  ;;  %v3462_v56 = vadd.f32 1.0, %v4998_v55  ;;  %v6158_v31 = vadd.f32 %v5996_v54, %v3334_v51  ;;  %v4529_v23 = vpop.f32.mrb[62].mxu1 }
 0x32f   : > { %v5002_v62 = vpop.eup %5001  ;;  %5019 = vrcp.f32 %v3464_v61  ;;  %v3467_v47 = vadd.f32 1.0, %v5000_v12  ;;  %v6162_v24 = vadd.f32 %v4529_v23, %v5996_v54  ;;  %v3337_v28 = vpop.f32.mrb[63].mxu1  ;;  %v3379_v41 = vsub.f32 0.0, %v6154_v50 }
 0x330   : > { %v5004_v49 = vpop.eup %5003  ;;  %5021 = vrcp.f32 %v3462_v56  ;;  %v3465_v26 = vadd.f32 1.0, %v5002_v62  ;;  %v6166_v52 = vadd.f32 %v5996_v54, %v3337_v28  ;;  %v3377_v40 = vsub.f32 0.0, %v6158_v31 }
 0x331   : > { %v5006_v13 = vpop.eup %5005  ;;  %5023 = vrcp.f32 %v3467_v47  ;;  %v3468_v29 = vadd.f32 1.0, %v5004_v49  ;;  %v3380_v53 = vsub.f32 0.0, %v6162_v24  ;;  %v3441_v6 = vmul.f32 1.442695, %v3379_v41 }
 0x332   : > { %5025 = vrcp.f32 %v3465_v26  ;;  %v3466_v2 = vadd.f32 1.0, %v5006_v13  ;;  %v3378_v44 = vsub.f32 0.0, %v6166_v52  ;;  %v3437_v20 = vmul.f32 1.442695, %v3377_v40 }
 0x333   : > { %v5008_v5 = vpop.eup %5007  ;;  %5027 = vrcp.f32 %v3468_v29  ;;  %v3443_v46 = vmul.f32 1.442695, %v3380_v53 }
 0x334   : > { %v5010_v4 = vpop.eup %5009  ;;  %v3521_v54 = vmul.f32 %v5008_v5, %v6057_v18  ;;  %5029 = vrcp.f32 %v3466_v2  ;;  %v3439_v25 = vmul.f32 1.442695, %v3378_v44 }
 0x335   : > { %v5012_v19 = vpop.eup %5011  ;;  %v3524_v43 = vmul.f32 %v5010_v4, %v6065_v33  ;;  %5031 = vpow2.f32 %v3429_v35 }
 0x336   : > { %v5014_v27 = vpop.eup %5013  ;;  %3554 = vst.msk [vmem:[%s6050_s28 + $0x60] sm:$0xff] %vm3541_vm1, %v3521_v54  ;;  %v3522_v36 = vmul.f32 %v5012_v19, %v6074_v22  ;;  %5033 = vpow2.f32 %v3435_v17 }
 0x337   : > { %v5016_v39 = vpop.eup %5015  ;;  %3557 = vst.msk [vmem:[%s6050_s28 + $0x78] sm:$0xff] %vm3541_vm1, %v3524_v43  ;;  %v3527_v18 = vmul.f32 %v5014_v27, %v6080_v30  ;;  %5035 = vpow2.f32 %v3431_v21 }
 0x338   : > { %v5018_v0 = vpop.eup %5017  ;;  %3555 = vst.msk [vmem:[%s6050_s28 + $0x68] sm:$0xff] %vm3541_vm1, %v3522_v36  ;;  %v3471_v33 = vadd.f32 1.0, %v5016_v39  ;;  %5037 = vpow2.f32 %v3441_v6 }
 0x339   : > { %v5020_v58 = vpop.eup %5019  ;;  %3560 = vst.msk [vmem:[%s6050_s28 + $0x90] sm:$0xff] %vm3541_vm1, %v3527_v18  ;;  %v3525_v22 = vmul.f32 %v5018_v0, %v6084_v1  ;;  %5039 = vpow2.f32 %v3437_v20 }
 0x33a   : > { %v5022_v7 = vpop.eup %5021  ;;  %v3528_v30 = vmul.f32 %v5020_v58, %v6088_v34  ;;  %5041 = vrcp.f32 %v3471_v33 }
 0x33b   : > { %v5024_v9 = vpop.eup %5023  ;;  %3558 = vst.msk [vmem:[%s6050_s28 + $0x80] sm:$0xff] %vm3541_vm1, %v3525_v22  ;;  %v3526_v37 = vmul.f32 %v5022_v7, %v6091_v42  ;;  %5043 = vpow2.f32 %v3443_v46 }
 0x33c   : > { %v5026_v38 = vpop.eup %5025  ;;  %3561 = vst.msk [vmem:[%s6050_s28 + $0x98] sm:$0xff] %vm3541_vm1, %v3528_v30  ;;  %v3531_v1 = vmul.f32 %v5024_v9, %v6097_v16  ;;  %5045 = vpow2.f32 %v3439_v25 }
 0x33d   : > { %v5028_v57 = vpop.eup %5027  ;;  %3559 = vst.msk [vmem:[%s6050_s28 + $0x88] sm:$0xff] %vm3541_vm1, %v3526_v37  ;;  %v3529_v34 = vmul.f32 %v5026_v38, %v6100_v8 }
 0x33e   : > { %v5030_v59 = vpop.eup %5029  ;;  %3564 = vst.msk [vmem:[%s6050_s28 + $0xb0] sm:$0xff] %vm3541_vm1, %v3531_v1  ;;  %v3532_v14 = vmul.f32 %v5028_v57, %v6105_v3 }
 0x33f   : > { %v5032_v42 = vpop.eup %5031  ;;  %3562 = vst.msk [vmem:[%s6050_s28 + $0xa0] sm:$0xff] %vm3541_vm1, %v3529_v34  ;;  %v3530_v55 = vmul.f32 %v5030_v59, %v6110_v15 }
 0x340   : > { %v5034_v61 = vpop.eup %5033  ;;  %3565 = vst.msk [vmem:[%s6050_s28 + $0xb8] sm:$0xff] %vm3541_vm1, %v3532_v14  ;;  %v3469_v16 = vadd.f32 1.0, %v5032_v42 }
 0x341   : > { %v5036_v10 = vpop.eup %5035  ;;  %3563 = vst.msk [vmem:[%s6050_s28 + $0xa8] sm:$0xff] %vm3541_vm1, %v3530_v55  ;;  %v3472_v51 = vadd.f32 1.0, %v5034_v61 }
 0x342   : > { %v5038_v8 = vpop.eup %5037  ;;  %5047 = vrcp.f32 %v3469_v16  ;;  %v3470_v12 = vadd.f32 1.0, %v5036_v10 }
 0x343   : > { %v5040_v56 = vpop.eup %5039  ;;  %5049 = vrcp.f32 %v3472_v51  ;;  %v3475_v3 = vadd.f32 1.0, %v5038_v8 }
 0x344   : > { %v5042_v63 = vpop.eup %5041  ;;  %5051 = vrcp.f32 %v3470_v12  ;;  %v3473_v23 = vadd.f32 1.0, %v5040_v56 }
 0x345   : > { %v5044_v62 = vpop.eup %5043  ;;  %v3535_v15 = vmul.f32 %v5042_v63, %v6130_v60  ;;  %5053 = vrcp.f32 %v3475_v3 }
 0x346   : > { %v5046_v47 = vpop.eup %5045  ;;  %5055 = vrcp.f32 %v3473_v23  ;;  %v3476_v32 = vadd.f32 1.0, %v5044_v62 }
 0x347   : > { %3568 = vst.msk [vmem:[%s6050_s28 + $0xd0] sm:$0xff] %vm3541_vm1, %v3535_v15  ;;  %v3474_v28 = vadd.f32 1.0, %v5046_v47 }
 0x348   : > { %5057 = vrcp.f32 %v3476_v32 }
 0x349   : > { %5059 = vrcp.f32 %v3474_v28 }
 0x34c   : > { %v5048_v49 = vpop.eup %5047 }
 0x34d   : > { %v5050_v26 = vpop.eup %5049  ;;  %v3533_v41 = vmul.f32 %v5048_v49, %v6147_v45 }
 0x34e   : > { %v5052_v13 = vpop.eup %5051  ;;  %v3536_v60 = vmul.f32 %v5050_v26, %v6139_v11 }
 0x34f   : > { %v5054_v29 = vpop.eup %5053  ;;  %3566 = vst.msk [vmem:[%s6050_s28 + $0xc0] sm:$0xff] %vm3541_vm1, %v3533_v41  ;;  %v3534_v35 = vmul.f32 %v5052_v13, %v6144_v48 }
 0x350   : > { %v5056_v40 = vpop.eup %5055  ;;  %3569 = vst.msk [vmem:[%s6050_s28 + $0xd8] sm:$0xff] %vm3541_vm1, %v3536_v60  ;;  %v3539_v2 = vmul.f32 %v5054_v29, %v6154_v50 }
 0x351   : > { %3567 = vst.msk [vmem:[%s6050_s28 + $0xc8] sm:$0xff] %vm3541_vm1, %v3534_v35  ;;  %v3537_v17 = vmul.f32 %v5056_v40, %v6158_v31 }
 0x352   : > { %v5058_v45 = vpop.eup %5057  ;;  %3572 = vst.msk [vmem:[%s6050_s28 + $0xf0] sm:$0xff] %vm3541_vm1, %v3539_v2 }
 0x353   : > { %v5060_v5 = vpop.eup %5059  ;;  %3570 = vst.msk [vmem:[%s6050_s28 + $0xe0] sm:$0xff] %vm3541_vm1, %v3537_v17  ;;  %v3540_v11 = vmul.f32 %v5058_v45, %v6162_v24 }
 0x354   : > { %v3538_v21 = vmul.f32 %v5060_v5, %v6166_v52 }
 0x355   : > { %3573 = vst.msk [vmem:[%s6050_s28 + $0xf8] sm:$0xff] %vm3541_vm1, %v3540_v11 }
 0x356   : > { %3571 = vst.msk [vmem:[%s6050_s28 + $0xe8] sm:$0xff] %vm3541_vm1, %v3538_v21 }
 0x357 PF: > { %s15_s18 = sadd.s32 1, %s5097_s18  }
 0x358   : > { %p12_p4 = scmp.ge.s32.totalorder %s15_s18, 4  }
 0x35a   :  { %14 = sbr.rel (!%p12_p4) target bundleno = 1 (0x1), region = 80 }

// kernel: _forward.5
= control target key start
LH: loop header
LB: loop body
LE: loop exit
PB: predicated region body
PF: predicated region fallthrough
CT: control target
= control target key end

     0   :  { %s1906_s18 = smov 0   ;;  %s2284_s0 = inlined_call_operand.vmem [shape: f32[2,4,9,9,64], index: 0, kind: input, shape index: {}]   ;;  %s2285_s1 = inlined_call_operand.vmem [shape: f32[9,64], index: 1, kind: input, shape index: {}]   ;;  %s2286_s2 = inlined_call_operand.vmem [shape: f32[1,64], index: 2, kind: input, shape index: {}]   ;;  %s2287_s3 = inlined_call_operand.vmem [shape: bf16[64,8], index: 3, kind: input, shape index: {}]   ;;  %s2288_s4 = inlined_call_operand.vmem [shape: f32[1,8], index: 4, kind: input, shape index: {}]   ;;  %s2289_s5 = inlined_call_operand.vmem [shape: bf16[8,64], index: 5, kind: input, shape index: {}]   ;;  %s2290_s6 = inlined_call_operand.vmem [shape: f32[1,64], index: 6, kind: input, shape index: {}]   ;;  %s2291_s7 = inlined_call_operand.vmem [shape: bf16[64,24], index: 7, kind: input, shape index: {}]   ;;  %s2292_s8 = inlined_call_operand.vmem [shape: f32[1,24], index: 8, kind: input, shape index: {}]   ;;  %s2293_s9 = inlined_call_operand.vmem [shape: bf16[24,128], index: 9, kind: input, shape index: {}]   ;;  %s2294_s10 = inlined_call_operand.vmem [shape: f32[1,128], index: 10, kind: input, shape index: {}]   ;;  %s2295_s11 = inlined_call_operand.vmem [shape: bf16[128,32], index: 11, kind: input, shape index: {}]   ;;  %s2296_s12 = inlined_call_operand.vmem [shape: f32[1,32], index: 12, kind: input, shape index: {}]   ;;  %s2297_s13 = inlined_call_operand.vmem [shape: bf16[32,128], index: 13, kind: input, shape index: {}]   ;;  %s2298_s14 = inlined_call_operand.vmem [shape: f32[1,128], index: 14, kind: input, shape index: {}]   ;;  %s2299_s15 = inlined_call_operand.vmem [shape: f32[2,1,128], index: 15, kind: output, shape index: {}]  }
   0x1 LB: > { %s1498_s19 = sadd.s32 4294967295, %s1822_s18   ;;  %p1502_p0 = scmp.ge.s32.totalorder %s1822_s18, 1  ;;  %s1822_s18 = sphi %s1906_s18, %s25_s18  }
   0x2   : > { %p437_p1 = scmp.lt.s32.totalorder %s1822_s18, 3 }
   0x4   : > { %p438_p2 = pnand %p1502_p0, %p437_p1 }
   0x6   : > { %441 = sbr.rel (%p438_p2) target bundleno = 1544 (0x608), region = 80 }
   0xd   : > { %v1724_v0 = vld [vmem:[%s2287_s3] sm:$0xff]   ;;  %v2300_v1 = vmov 0.0   ;;  %v1725_v2 = vld [vmem:[%s2287_s3 + $0x8] sm:$0xff]   ;;  %vm1825_vm0 = vmmov 0   ;;  %p483_p3 = scmp.lt.s32.totalorder %s1498_s19, 1  ;;  %v1726_v3 = vld [vmem:[%s2287_s3 + $0x10] sm:$0xff]  }
   0xe   : > { %1638 = vmatprep.subr.bf16.mxu0 %v2300_v1  ;;  %1646 = vmatprep.mubr.msk.bf16.mxu0 %vm1825_vm0, %v2300_v1  ;;  %v1504_v4 = vld [vmem:[%s2285_s1] ss:$0 sm:$0xff]  ;;  %v1937_v5 = vld [vmem:[%s2285_s1 + $0x6] ss:$0 sm:$0xff]  ;;  %v1727_v6 = vld [vmem:[%s2287_s3 + $0x18] sm:$0xff]   ;;  %vm821_vm1 = vcmask 523264  }
   0xf   : > { %1639 = vmatpush3.bf16.msra.mxu0 %v1724_v0  ;;  %s2313_s19 = smov (!%p483_p3, %s1498_s19), 1  ;;  %v1513_v7 = vld [vmem:[%s2285_s1 + $0x1] ss:$0 sm:$0xff]  ;;  %v1514_v24 = vld [vmem:[%s2285_s1 + $0x2] ss:$0 sm:$0xff]  ;;  %vm935_vm2 = vcmask 1043456  }
  0x10   : > { %1640 = vmatprep.subr.bf16.mxu0 %v2300_v1  ;;  %s1713_s26 = smul.u32 576, %s2313_s19  ;;  %vm931_vm3 = vcmask 64512   ;;  %vm1139_vm4 = vcmask 195584   ;;  %vm1406_vm5 = vcmask 261120   ;;  %s490_s23 = scalar_lea.vmem %s2299_s15, %s2313_s19 }
  0x12   : > { %s1945_s22 = scalar_lea.vmem %s2284_s0, %s1713_s26 }
  0x13   : > { %1641 = vmatpush3.bf16.msra.mxu0 %v1725_v2  ;;  %v492_v8 = vld [vmem:[%s1945_s22] sm:$0xff]  ;;  %v493_v9 = vld [vmem:[%s1945_s22 + $0x10] sm:$0xff] }
  0x14   : > { %1642 = vmatprep.subr.bf16.mxu0 %v2300_v1  ;;  %v494_v10 = vld [vmem:[%s1945_s22 + $0x20] sm:$0xff]  ;;  %v495_v11 = vld [vmem:[%s1945_s22 + $0x30] sm:$0xff]  ;;  %v505_v14 = vmul.f32 %v1504_v4, %v492_v8  ;;  %v506_v15 = vmul.f32 %v1504_v4, %v493_v9  ;;  %v1959_v17 = vmul.f32 %v1937_v5, %v493_v9 }
  0x15   : > { %v496_v12 = vld [vmem:[%s1945_s22 + $0x40] sm:$0xff]  ;;  %v1956_v13 = vld [vmem:[%s1945_s22 + $0x50] sm:$0xff]  ;;  %v507_v16 = vmul.f32 %v1504_v4, %v494_v10  ;;  %v508_v20 = vmul.f32 %v1504_v4, %v495_v11  ;;  %v1974_v25 = vmul.f32 %v1937_v5, %v494_v10  ;;  %v1988_v32 = vmul.f32 %v1937_v5, %v495_v11 }
  0x16   : > { %v1963_v18 = vld [vmem:[%s1945_s22 + $0x60] sm:$0xff]  ;;  %v1966_v19 = vld [vmem:[%s1945_s22 + $0x70] sm:$0xff]  ;;  %v509_v21 = vmul.f32 %v1504_v4, %v496_v12  ;;  %v510_v22 = vmul.f32 %v1504_v4, %v1956_v13  ;;  %v2003_v39 = vmul.f32 %v1937_v5, %v496_v12 }
  0x17   : > { %1643 = vmatpush3.bf16.msra.mxu0 %v1726_v3  ;;  %v1505_v23 = vld [vmem:[%s1945_s22 + $0x90] sm:$0xff]  ;;  %v511_v26 = vmul.f32 %v1504_v4, %v1963_v18  ;;  %v512_v27 = vmul.f32 %v1504_v4, %v1966_v19  ;;  %v1979_v28 = vld [vmem:[%s1945_s22 + $0xa0] sm:$0xff] }
  0x18   : > { %1644 = vmatprep.subr.bf16.mxu0 %v2300_v1  ;;  %v1982_v29 = vld [vmem:[%s1945_s22 + $0xb0] sm:$0xff]  ;;  %v1985_v30 = vld [vmem:[%s1945_s22 + $0xc0] sm:$0xff]  ;;  %v535_v31 = vmul.f32 %v1513_v7, %v1505_v23  ;;  %v536_v36 = vmul.f32 %v1513_v7, %v1979_v28 }
  0x19   : > { %v1991_v33 = vld [vmem:[%s1945_s22 + $0xd0] sm:$0xff]  ;;  %v1994_v34 = vld [vmem:[%s1945_s22 + $0xe0] sm:$0xff]  ;;  %v537_v37 = vmul.f32 %v1513_v7, %v1982_v29  ;;  %v538_v38 = vmul.f32 %v1513_v7, %v1985_v30 }
  0x1a   : > { %v1997_v35 = vld [vmem:[%s1945_s22 + $0xf0] sm:$0xff]  ;;  %v2006_v40 = vld [vmem:[%s1945_s22 + $0x100] sm:$0xff]  ;;  %v539_v41 = vmul.f32 %v1513_v7, %v1991_v33  ;;  %v540_v42 = vmul.f32 %v1513_v7, %v1994_v34  ;;  %v543_v44 = vadd.f32 %v535_v31, %v505_v14  ;;  %v544_v48 = vadd.f32 %v536_v36, %v506_v15 }
  0x1b   : > { %1645 = vmatpush3.bf16.msra.mxu0 %v1727_v6  ;;  %v541_v43 = vmul.f32 %v1513_v7, %v1997_v35  ;;  %v551_v45 = vld [vmem:[%s1945_s22 + $0x1] sm:$0xff]  ;;  %v2013_v46 = vld [vmem:[%s1945_s22 + $0x11] sm:$0xff]  ;;  %v542_v47 = vmul.f32 %v1513_v7, %v2006_v40  ;;  %v545_v49 = vadd.f32 %v537_v37, %v507_v16  ;;  %v546_v50 = vadd.f32 %v538_v38, %v508_v20 }
  0x1c   : > { %v2017_v51 = vld [vmem:[%s1945_s22 + $0x21] sm:$0xff]  ;;  %v2020_v52 = vld [vmem:[%s1945_s22 + $0x31] sm:$0xff]  ;;  %1650 = vmatprep.subr.bf16.mxu0 %v2300_v1  ;;  %v547_v54 = vadd.f32 %v539_v41, %v509_v21  ;;  %v548_v55 = vadd.f32 %v540_v42, %v510_v22  ;;  %v564_v60 = vmul.f32 %v1514_v24, %v551_v45  ;;  %v565_v62 = vmul.f32 %v1514_v24, %v2013_v46 }
  0x1d   : > { %v2023_v53 = vld [vmem:[%s1945_s22 + $0x41] sm:$0xff]  ;;  %v549_v56 = vadd.f32 %v541_v43, %v511_v26  ;;  %v2027_v57 = vld [vmem:[%s1945_s22 + $0x51] sm:$0xff]  ;;  %v550_v61 = vadd.f32 %v542_v47, %v512_v27  ;;  %v566_v63 = vmul.f32 %v1514_v24, %v2017_v51  ;;  %v567_v0 = vmul.f32 %v1514_v24, %v2020_v52 }
  0x1e   : > { %2305 = vst [vmem:[#allocation2_spill] sm:$0xff] %v2027_v57  ;;  %v2030_v58 = vld [vmem:[%s1945_s22 + $0x61] sm:$0xff]  ;;  %v2033_v59 = vld [vmem:[%s1945_s22 + $0x71] sm:$0xff]  ;;  %v568_v6 = vmul.f32 %v1514_v24, %v2023_v53  ;;  %v569_v7 = vmul.f32 %v1514_v24, %v2027_v57  ;;  %v572_v14 = vadd.f32 %v564_v60, %v543_v44  ;;  %v573_v15 = vadd.f32 %v565_v62, %v544_v48 }
  0x1f   : > { %2306 = vst [vmem:[#allocation3_spill] sm:$0xff] %v2030_v58  ;;  %2307 = vst [vmem:[#allocation4_spill] sm:$0xff] %v2033_v59  ;;  %v1515_v2 = vld [vmem:[%s1945_s22 + $0x120] sm:$0xff]  ;;  %v1516_v3 = vld [vmem:[%s1945_s22 + $0x130] sm:$0xff]  ;;  %v570_v8 = vmul.f32 %v1514_v24, %v2030_v58  ;;  %v571_v9 = vmul.f32 %v1514_v24, %v2033_v59  ;;  %v574_v16 = vadd.f32 %v566_v63, %v545_v49 }
  0x20   : > { %v1523_v4 = vld [vmem:[%s2285_s1 + $0x3] ss:$0 sm:$0xff]  ;;  %v1518_v11 = vld [vmem:[%s1945_s22 + $0x150] sm:$0xff]  ;;  %v575_v20 = vadd.f32 %v567_v0, %v546_v50  ;;  %v576_v26 = vadd.f32 %v568_v6, %v547_v54  ;;  %v577_v27 = vadd.f32 %v569_v7, %v548_v55  ;;  %v1532_v44 = vld [vmem:[%s2285_s1 + $0x4] ss:$0 sm:$0xff] }
  0x21   : > { %v1517_v10 = vld [vmem:[%s1945_s22 + $0x140] sm:$0xff]  ;;  %v1520_v21 = vld [vmem:[%s1945_s22 + $0x170] sm:$0xff]  ;;  %v578_v31 = vadd.f32 %v570_v8, %v549_v56  ;;  %v579_v36 = vadd.f32 %v571_v9, %v550_v61  ;;  %v594_v24 = vmul.f32 %v1523_v4, %v1515_v2  ;;  %v595_v37 = vmul.f32 %v1523_v4, %v1516_v3 }
  0x22   : > { %v1519_v12 = vld [vmem:[%s1945_s22 + $0x160] sm:$0xff]  ;;  %v1522_v23 = vld [vmem:[%s1945_s22 + $0x190] sm:$0xff]  ;;  %v596_v38 = vmul.f32 %v1523_v4, %v1517_v10  ;;  %v597_v41 = vmul.f32 %v1523_v4, %v1518_v11  ;;  %v599_v47 = vmul.f32 %v1523_v4, %v1520_v21 }
  0x23   : > { %v1521_v22 = vld [vmem:[%s1945_s22 + $0x180] sm:$0xff]  ;;  %v1524_v42 = vld [vmem:[%s1945_s22 + $0x1b0] sm:$0xff]  ;;  %v598_v45 = vmul.f32 %v1523_v4, %v1519_v12  ;;  %v601_v49 = vmul.f32 %v1523_v4, %v1522_v23  ;;  %v602_v56 = vadd.f32 %v594_v24, %v572_v14  ;;  %v603_v60 = vadd.f32 %v595_v37, %v573_v15 }
  0x24   : > { %v1525_v43 = vld [vmem:[%s1945_s22 + $0x1c0] sm:$0xff]  ;;  %v600_v48 = vmul.f32 %v1523_v4, %v1521_v22  ;;  %v1526_v50 = vld [vmem:[%s1945_s22 + $0x1d0] sm:$0xff]  ;;  %v604_v61 = vadd.f32 %v596_v38, %v574_v16  ;;  %v605_v62 = vadd.f32 %v597_v41, %v575_v20  ;;  %v607_v6 = vadd.f32 %v599_v47, %v577_v27 }
  0x25   : > { %v1527_v54 = vld [vmem:[%s1945_s22 + $0x1e0] sm:$0xff]  ;;  %v1528_v55 = vld [vmem:[%s1945_s22 + $0x1f0] sm:$0xff]  ;;  %v606_v3 = vadd.f32 %v598_v45, %v576_v26  ;;  %v609_v7 = vadd.f32 %v601_v49, %v579_v36  ;;  %v624_v14 = vmul.f32 %v1532_v44, %v1524_v42  ;;  %v625_v15 = vmul.f32 %v1532_v44, %v1525_v43 }
  0x26   : > { %v1529_v63 = vld [vmem:[%s1945_s22 + $0x200] sm:$0xff]  ;;  %v1530_v0 = vld [vmem:[%s1945_s22 + $0x210] sm:$0xff]  ;;  %v608_v4 = vadd.f32 %v600_v48, %v578_v31  ;;  %v626_v16 = vmul.f32 %v1532_v44, %v1526_v50  ;;  %v627_v20 = vmul.f32 %v1532_v44, %v1527_v54  ;;  %v628_v27 = vmul.f32 %v1532_v44, %v1528_v55 }
  0x27   : > { %v1531_v2 = vld [vmem:[%s1945_s22 + $0x220] sm:$0xff]  ;;  %v1534_v9 = vld [vmem:[%s1945_s22 + $0x131] sm:$0xff]  ;;  %v629_v31 = vmul.f32 %v1532_v44, %v1529_v63  ;;  %v630_v36 = vmul.f32 %v1532_v44, %v1530_v0  ;;  %v632_v37 = vadd.f32 %v624_v14, %v602_v56  ;;  %v633_v38 = vadd.f32 %v625_v15, %v603_v60 }
  0x28   : > { %v1533_v8 = vld [vmem:[%s1945_s22 + $0x121] sm:$0xff]  ;;  %v1536_v11 = vld [vmem:[%s1945_s22 + $0x151] sm:$0xff]  ;;  %v631_v24 = vmul.f32 %v1532_v44, %v1531_v2  ;;  %v634_v41 = vadd.f32 %v626_v16, %v604_v61  ;;  %v635_v45 = vadd.f32 %v627_v20, %v605_v62  ;;  %v636_v47 = vadd.f32 %v628_v27, %v606_v3 }
  0x29   : > { %v1535_v10 = vld [vmem:[%s1945_s22 + $0x141] sm:$0xff]  ;;  %v1538_v22 = vld [vmem:[%s1945_s22 + $0x171] sm:$0xff]  ;;  %v637_v48 = vadd.f32 %v629_v31, %v607_v6  ;;  %v638_v49 = vadd.f32 %v630_v36, %v608_v4 }
  0x2a   : > { %v1541_v12 = vld [vmem:[%s2285_s1 + $0x5] ss:$0 sm:$0xff]  ;;  %v1540_v26 = vld [vmem:[%s1945_s22 + $0x191] sm:$0xff]  ;;  %v639_v42 = vadd.f32 %v631_v24, %v609_v7  ;;  %v1559_v61 = vld [vmem:[%s2285_s1 + $0x7] ss:$0 sm:$0xff]  ;;  %v687_v7 = vmul.f32 %v1937_v5, %v1956_v13 }
  0x2b   : > { %v1537_v21 = vld [vmem:[%s1945_s22 + $0x161] sm:$0xff]  ;;  %v653_v50 = vmul.f32 %v1541_v12, %v1533_v8  ;;  %v654_v54 = vmul.f32 %v1541_v12, %v1534_v9  ;;  %v655_v1 = vmul.f32 %v1541_v12, %v1535_v10  ;;  %v656_v59 = vmul.f32 %v1541_v12, %v1536_v11  ;;  %v1558_v4 = vld [vmem:[%s1945_s22 + $0x110] sm:$0xff] }
  0x2c   : > { %v1539_v23 = vld [vmem:[%s1945_s22 + $0x181] sm:$0xff]  ;;  %v657_v58 = vmul.f32 %v1541_v12, %v1537_v21  ;;  %v658_v57 = vmul.f32 %v1541_v12, %v1538_v22  ;;  %v660_v63 = vmul.f32 %v1541_v12, %v1540_v26  ;;  %v688_v8 = vmul.f32 %v1937_v5, %v1963_v18 }
  0x2d   : > { %v1549_v43 = vld [vmem:[%s1945_s22 + $0x80] sm:$0xff]  ;;  %v659_v55 = vmul.f32 %v1541_v12, %v1539_v23  ;;  %v661_v0 = vadd.f32 %v653_v50, %v632_v37  ;;  %v662_v44 = vadd.f32 %v654_v54, %v633_v38  ;;  %v663_v56 = vadd.f32 %v655_v1, %v634_v41  ;;  %v1568_v16 = vld [vmem:[%s2285_s1 + $0x8] ss:$0 sm:$0xff]  ;;  %v2310_v38 = vld [vmem:[#allocation4_spill] sm:$0xff] }
  0x2e   : > { %v664_v60 = vadd.f32 %v656_v59, %v635_v45  ;;  %v665_v62 = vadd.f32 %v657_v58, %v636_v47  ;;  %v666_v2 = vadd.f32 %v658_v57, %v637_v48  ;;  %v668_v6 = vadd.f32 %v660_v63, %v639_v42  ;;  %v2308_v31 = vld [vmem:[#allocation2_spill] sm:$0xff]  ;;  %v2309_v24 = vld [vmem:[#allocation3_spill] sm:$0xff] }
  0x2f   : > { %v667_v3 = vadd.f32 %v659_v55, %v638_v49  ;;  %v689_v9 = vmul.f32 %v1937_v5, %v1966_v19  ;;  %v690_v1 = vmul.f32 %v1937_v5, %v1549_v43  ;;  %v691_v59 = vadd.f32 %v1959_v17, %v661_v0  ;;  %v1569_v47 = vld [vmem:[%s2286_s2] ss:$0 sm:$0xff] }
  0x30   : > { %v692_v10 = vadd.f32 %v1974_v25, %v662_v44  ;;  %v693_v57 = vadd.f32 %v1988_v32, %v663_v56  ;;  %v694_v58 = vadd.f32 %v2003_v39, %v664_v60  ;;  %v695_v11 = vadd.f32 %v687_v7, %v665_v62 }
  0x31   : > { %v696_v12 = vadd.f32 %v688_v8, %v666_v2  ;;  %v697_v13 = vadd.f32 %v689_v9, %v667_v3  ;;  %v698_v14 = vadd.f32 %v690_v1, %v668_v6  ;;  %v713_v18 = vmul.f32 %v1559_v61, %v1979_v28 }
  0x32   : > { %v714_v15 = vmul.f32 %v1559_v61, %v1982_v29  ;;  %v715_v19 = vmul.f32 %v1559_v61, %v1985_v30  ;;  %v716_v5 = vmul.f32 %v1559_v61, %v1991_v33  ;;  %v717_v17 = vmul.f32 %v1559_v61, %v1994_v34  ;;  %v1567_v29 = vld [vmem:[%s1945_s22 + $0x81] sm:$0xff] }
  0x33   : > { %v718_v25 = vmul.f32 %v1559_v61, %v1997_v35  ;;  %v719_v32 = vmul.f32 %v1559_v61, %v2006_v40  ;;  %v720_v39 = vmul.f32 %v1559_v61, %v1558_v4  ;;  %v721_v20 = vadd.f32 %v713_v18, %v691_v59 }
  0x34   : > { %v722_v21 = vadd.f32 %v714_v15, %v692_v10  ;;  %v723_v28 = vadd.f32 %v715_v19, %v693_v57  ;;  %v724_v22 = vadd.f32 %v716_v5, %v694_v58  ;;  %v725_v23 = vadd.f32 %v717_v17, %v695_v11 }
  0x35   : > { %v726_v30 = vadd.f32 %v718_v25, %v696_v12  ;;  %v727_v26 = vadd.f32 %v719_v32, %v697_v13  ;;  %v728_v33 = vadd.f32 %v720_v39, %v698_v14  ;;  %v742_v34 = vmul.f32 %v1568_v16, %v2013_v46 }
  0x36   : > { %v743_v35 = vmul.f32 %v1568_v16, %v2017_v51  ;;  %v744_v40 = vmul.f32 %v1568_v16, %v2020_v52  ;;  %v745_v27 = vmul.f32 %v1568_v16, %v2023_v53  ;;  %v746_v36 = vmul.f32 %v1568_v16, %v2308_v31 }
  0x37   : > { %v747_v37 = vmul.f32 %v1568_v16, %v2309_v24  ;;  %v748_v41 = vmul.f32 %v1568_v16, %v2310_v38  ;;  %v749_v45 = vmul.f32 %v1568_v16, %v1567_v29  ;;  %v750_v48 = vadd.f32 %v742_v34, %v721_v20 }
  0x38   : > { %v751_v49 = vadd.f32 %v743_v35, %v722_v21  ;;  %v752_v46 = vadd.f32 %v744_v40, %v723_v28  ;;  %v753_v42 = vadd.f32 %v745_v27, %v724_v22  ;;  %v754_v51 = vadd.f32 %v746_v36, %v725_v23 }
  0x39   : > { %v755_v43 = vadd.f32 %v747_v37, %v726_v30  ;;  %v756_v52 = vadd.f32 %v748_v41, %v727_v26  ;;  %v757_v50 = vadd.f32 %v749_v45, %v728_v33  ;;  %v765_v53 = vadd.f32 %v1569_v47, %v750_v48 }
  0x3a   : > { %v766_v54 = vadd.f32 %v1569_v47, %v751_v49  ;;  %v767_v55 = vadd.f32 %v1569_v47, %v752_v46  ;;  %v2112_v63 = vadd.f32 %v1569_v47, %v753_v42  ;;  %v2114_v0 = vadd.f32 %v1569_v47, %v754_v51 }
  0x3b   : > { %v2116_v44 = vadd.f32 %v1569_v47, %v755_v43  ;;  %v2118_v56 = vadd.f32 %v1569_v47, %v756_v52  ;;  %v2120_v60 = vadd.f32 %v1569_v47, %v757_v50  ;;  %v773_v61 = vsub.f32 0.0, %v765_v53 }
  0x3c   : > { %v774_v62 = vsub.f32 0.0, %v766_v54  ;;  %v775_v2 = vsub.f32 0.0, %v767_v55  ;;  %v776_v3 = vsub.f32 0.0, %v2112_v63  ;;  %v777_v6 = vsub.f32 0.0, %v2114_v0 }
  0x3d   : > { %v778_v4 = vsub.f32 0.0, %v2116_v44  ;;  %v779_v7 = vsub.f32 0.0, %v2118_v56  ;;  %v781_v8 = vmul.f32 1.442695, %v773_v61  ;;  %v780_v59 = vsub.f32 0.0, %v2120_v60 }
  0x3e   : > { %v783_v9 = vmul.f32 1.442695, %v774_v62  ;;  %v785_v1 = vmul.f32 1.442695, %v775_v2  ;;  %v787_v10 = vmul.f32 1.442695, %v776_v3 }
  0x3f   : > { %1744 = vpow2.f32 %v781_v8  ;;  %v789_v57 = vmul.f32 1.442695, %v777_v6  ;;  %v791_v58 = vmul.f32 1.442695, %v778_v4  ;;  %v793_v11 = vmul.f32 1.442695, %v779_v7 }
  0x40   : > { %1746 = vpow2.f32 %v783_v9  ;;  %v795_v12 = vmul.f32 1.442695, %v780_v59  ;;  %v2311_v8 = vmov 0.0   ;;  %v929_v9 = vld [vmem:[%s2289_s5] sm:$0xf] }
  0x41   : > { %1748 = vpow2.f32 %v785_v1  ;;  %v937_v1 = vsel %vm935_vm2, %v929_v9, 0  ;;  %v854_v59 = vld [vmem:[%s2288_s4] sm:$0x1] }
  0x42   : > { %1750 = vpow2.f32 %v787_v10 }
  0x43   : > { %1752 = vpow2.f32 %v789_v57 }
  0x44   : > { %1754 = vpow2.f32 %v791_v58 }
  0x45   : > { %1756 = vpow2.f32 %v793_v11 }
  0x46   : > { %1758 = vpow2.f32 %v795_v12 }
  0x49   : > { %v1745_v13 = vpop.eup %1744 }
  0x4a   : > { %v1747_v14 = vpop.eup %1746  ;;  %v797_v18 = vadd.f32 1.0, %v1745_v13 }
  0x4b   : > { %v1749_v15 = vpop.eup %1748  ;;  %v798_v19 = vadd.f32 1.0, %v1747_v14 }
  0x4c   : > { %v1751_v5 = vpop.eup %1750  ;;  %v799_v17 = vadd.f32 1.0, %v1749_v15  ;;  %1760 = vrcp.f32 %v797_v18 }
  0x4d   : > { %v1753_v25 = vpop.eup %1752  ;;  %v800_v32 = vadd.f32 1.0, %v1751_v5  ;;  %1762 = vrcp.f32 %v798_v19 }
  0x4e   : > { %v1755_v39 = vpop.eup %1754  ;;  %v801_v16 = vadd.f32 1.0, %v1753_v25  ;;  %1764 = vrcp.f32 %v799_v17  ;;  %v1728_v25 = vld [vmem:[%s2291_s7] sm:$0xff]  }
  0x4f   : > { %v1757_v20 = vpop.eup %1756  ;;  %v802_v21 = vadd.f32 1.0, %v1755_v39  ;;  %1766 = vrcp.f32 %v800_v32  ;;  %1656 = vmatprep.subr.bf16.mxu1 %v1728_v25  ;;  %v1729_v32 = vld [vmem:[%s2291_s7 + $0x8] sm:$0xff]   ;;  %v1730_v39 = vld [vmem:[%s2291_s7 + $0x10] sm:$0xff]  }
  0x50   : > { %v1759_v28 = vpop.eup %1758  ;;  %v803_v22 = vadd.f32 1.0, %v1757_v20  ;;  %1768 = vrcp.f32 %v801_v16  ;;  %1657 = vmatpush3.bf16.msra.mxu1 %v1728_v25  ;;  %v1731_v16 = vld [vmem:[%s2291_s7 + $0x18] sm:$0xff]   ;;  %v930_v20 = vld [vmem:[%s2290_s6] sm:$0x1] }
  0x51   : > { %v804_v29 = vadd.f32 1.0, %v1759_v28  ;;  %1770 = vrcp.f32 %v802_v21  ;;  %1658 = vmatprep.subr.bf16.mxu1 %v1729_v32  ;;  %v1742_v25 = vld [vmem:[%s2297_s13] sm:$0xff]  }
  0x52   : > { %1772 = vrcp.f32 %v803_v22 }
  0x53   : > { %1774 = vrcp.f32 %v804_v29 }
  0x54   : > { %1659 = vmatpush3.bf16.msra.mxu1 %v1729_v32  ;;  %v1743_v32 = vld [vmem:[%s2297_s13 + $0x8] sm:$0xff]  }
  0x55   : > { %1660 = vmatprep.subr.bf16.mxu1 %v1730_v39 }
  0x56   : > { %v1761_v23 = vpop.eup %1760 }
  0x57   : > { %v1763_v30 = vpop.eup %1762  ;;  %v2127_v26 = vmul.f32 %v1761_v23, %v765_v53 }
  0x58   : > { %v1765_v33 = vpop.eup %1764  ;;  %v2129_v34 = vmul.f32 %v1763_v30, %v766_v54  ;;  %1661 = vmatpush3.bf16.msra.mxu1 %v1730_v39  ;;  %v1585_v39 = vld [vmem:[%s2294_s10] ss:$0 sm:$0xff] }
  0x59   : > { %v1767_v35 = vpop.eup %1766  ;;  %v2131_v40 = vmul.f32 %v1765_v33, %v767_v55  ;;  %v822_v27 = vsel %vm821_vm1, %v2127_v26, 0.0  ;;  %1662 = vmatprep.subr.bf16.mxu1 %v1731_v16 }
  0x5a   : > { %v1769_v31 = vpop.eup %1768  ;;  %v2136_v36 = vmul.f32 %v1767_v35, %v2112_v63  ;;  %v823_v24 = vsel %vm821_vm1, %v2129_v34, 0.0 }
  0x5b   : > { %v1771_v37 = vpop.eup %1770  ;;  %v2141_v38 = vmul.f32 %v1769_v31, %v2114_v0  ;;  %v824_v41 = vadd.f32 %v823_v24, %v822_v27  ;;  %v825_v45 = vsel %vm821_vm1, %v2131_v40, 0.0  ;;  %v984_v31 = vlaneseq }
  0x5c   : > { %v1773_v47 = vpop.eup %1772  ;;  %v2146_v48 = vmul.f32 %v1771_v37, %v2116_v44  ;;  %v827_v49 = vsel %vm821_vm1, %v2136_v36, 0.0  ;;  %1663 = vmatpush3.bf16.msra.mxu1 %v1731_v16 }
  0x5d   : > { %v1775_v46 = vpop.eup %1774  ;;  %v826_v42 = vadd.f32 %v825_v45, %v824_v41  ;;  %v2151_v51 = vmul.f32 %v1773_v47, %v2118_v56  ;;  %v829_v43 = vsel %vm821_vm1, %v2141_v38, 0.0  ;;  %1684 = vmatprep.subr.bf16.mxu1 %v2311_v8  ;;  %v985_v24 = vshrl.u32 %v984_v31, 7 }
  0x5e   : > { %v2156_v50 = vmul.f32 %v1775_v46, %v2120_v60  ;;  %v831_v53 = vsel %vm821_vm1, %v2146_v48, 0.0 }
  0x5f   : > { %v828_v52 = vadd.f32 %v827_v49, %v826_v42  ;;  %v833_v55 = vsel %vm821_vm1, %v2151_v51, 0.0  ;;  %v986_v37 = vsub.s32 0, %v985_v24 }
  0x60   : > { %v835_v0 = vsel %vm821_vm1, %v2156_v50, 0.0 }
  0x61   : > { %v830_v54 = vadd.f32 %v829_v43, %v828_v52 }
  0x63   : > { %v832_v63 = vadd.f32 %v831_v53, %v830_v54 }
  0x65   : > { %v834_v44 = vadd.f32 %v833_v55, %v832_v63 }
  0x67   : > { %v836_v56 = vadd.f32 %v835_v0, %v834_v44 }
  0x69   : > { %v837_v61 = vrot.slane %v836_v56, 4 }
  0x6b   : > { %v838_v62 = vadd.f32 %v837_v61, %v836_v56 }
  0x6d   : > { %v839_v2 = vrot.slane %v838_v62, 2 }
  0x6f   : > { %v840_v3 = vadd.f32 %v839_v2, %v838_v62 }
  0x71   : > { %v841_v6 = vrot.slane %v840_v3, 1 }
  0x73   : > { %v842_v60 = vadd.f32 %v841_v6, %v840_v3 }
  0x75   : > { %v844_v4 = vmul.f32 0.015625, %v842_v60 }
  0x77   : > { %v845_v7 = vpack.c.bf16 %v844_v4, %v844_v4 }
  0x79   : > { %1647 = vmatmul.mubr.msk.bf16.vlgmr.msra.gmra.mrb[0].mxu0 %vm821_vm1, %v845_v7 }
  0x7a   : > { %1652 = vmatprep.mubr.msk.bf16.mxu0 %vm1825_vm0, %v2311_v8  ;;  %1651 = vmatpush3.bf16.msra.mxu0 %v937_v1 }
 0x14c   : > { %v916_v10 = vpop.f32.mrb[0].mxu0 }
 0x14d   : > { %v917_v57 = vadd.f32 %v916_v10, %v854_v59  ;;  %v1648_v58 = vpop.f32.mrb[1].mxu0 }
 0x14e   : > { %v919_v11 = vpop.f32.mrb[2].mxu0 }
 0x14f   : > { %v922_v12 = vsub.f32 0.0, %v917_v57  ;;  %v1649_v13 = vpop.f32.mrb[3].mxu0 }
 0x150   : > { %v1735_v13 = vld [vmem:[%s2295_s11 + $0x8] sm:$0xff]  }
 0x151   : > { %v923_v14 = vmul.f32 1.442695, %v922_v12  ;;  %v1734_v12 = vld [vmem:[%s2295_s11] sm:$0xff]  }
 0x153   : > { %1776 = vpow2.f32 %v923_v14  ;;  %v1736_v14 = vld [vmem:[%s2295_s11 + $0x10] sm:$0xff]  }
 0x15d   : > { %v1777_v18 = vpop.eup %1776 }
 0x15e   : > { %v925_v15 = vadd.f32 1.0, %v1777_v18  ;;  %v1737_v18 = vld [vmem:[%s2295_s11 + $0x18] sm:$0xff]  }
 0x160   : > { %1778 = vrcp.f32 %v925_v15  ;;  %v1738_v15 = vld [vmem:[%s2295_s11 + $0x20] sm:$0xff]  }
 0x16a   : > { %v1779_v19 = vpop.eup %1778 }
 0x16b   : > { %v927_v5 = vmul.f32 %v1779_v19, %v917_v57  ;;  %v1739_v19 = vld [vmem:[%s2295_s11 + $0x28] sm:$0xff]  }
 0x16d   : > { %v928_v17 = vpack.c.bf16 %v927_v5, %v927_v5  ;;  %v1740_v5 = vld [vmem:[%s2295_s11 + $0x30] sm:$0xff]  }
 0x16f   : > { %1653 = vmatmul.mubr.msk.bf16.vlgmr.msra.gmra.mrb[4].mxu0 %vm931_vm3, %v928_v17  ;;  %v1741_v17 = vld [vmem:[%s2295_s11 + $0x38] sm:$0xff]  }
 0x242   : > { %v973_v21 = vpop.f32.mrb[4].mxu0 }
 0x243   : > { %v974_v28 = vadd.f32 %v973_v21, %v930_v20  ;;  %v1654_v22 = vpop.f32.mrb[5].mxu0 }
 0x244   : > { %v976_v29 = vpop.f32.mrb[6].mxu0 }
 0x245   : > { %v979_v23 = vsub.f32 0.0, %v974_v28  ;;  %v1655_v30 = vpop.f32.mrb[7].mxu0 }
 0x247   : > { %v980_v33 = vmul.f32 1.442695, %v979_v23 }
 0x249   : > { %1780 = vpow2.f32 %v980_v33 }
 0x253   : > { %v1781_v35 = vpop.eup %1780 }
 0x254   : > { %v982_v27 = vadd.f32 1.0, %v1781_v35 }
 0x256   : > { %1782 = vrcp.f32 %v982_v27 }
 0x260   : > { %v1783_v41 = vpop.eup %1782 }
 0x261   : > { %v987_v45 = vrot.slane %v1783_v41, %v986_v37 }
 0x263   : > { %v988_v47 = vmul.f32 %v987_v45, %v2127_v26  ;;  %v989_v49 = vmul.f32 %v987_v45, %v2129_v34  ;;  %v990_v46 = vmul.f32 %v987_v45, %v2131_v40  ;;  %v991_v42 = vmul.f32 %v987_v45, %v2136_v36  ;;  %v1732_v36 = vld [vmem:[%s2293_s9] sm:$0xff]  }
 0x264   : > { %v992_v43 = vmul.f32 %v987_v45, %v2141_v38  ;;  %v993_v52 = vmul.f32 %v987_v45, %v2146_v48  ;;  %v994_v26 = vmul.f32 %v987_v45, %v2151_v51  ;;  %v995_v34 = vmul.f32 %v987_v45, %v2156_v50  ;;  %1672 = vmatprep.subr.bf16.mxu0 %v1732_v36  ;;  %v1733_v38 = vld [vmem:[%s2293_s9 + $0x8] ss:$0 sps:$4 sm:$0xff]   ;;  %v1576_v50 = vld [vmem:[%s2292_s8] ss:$0 sm:$0xff] }
 0x265   : > { %v996_v53 = vpack.c.bf16 %v989_v49, %v988_v47  ;;  %v997_v54 = vpack.c.bf16 %v991_v42, %v990_v46  ;;  %1673 = vmatpush3.bf16.msra.mxu0 %v1732_v36  ;;  %v1153_v48 = vsel %vm935_vm2, %v1733_v38, 0 }
 0x266   : > { %v998_v55 = vpack.c.bf16 %v993_v52, %v992_v43  ;;  %v999_v40 = vpack.c.bf16 %v995_v34, %v994_v26  ;;  %1712 = vmatprep.subr.msk.bf16.mxu0 %vm935_vm2, %v1733_v38 }
 0x267   : > { %1664 = vmatprep.mubr.msk.bf16.mxu1 %vm821_vm1, %v996_v53 }
 0x268   : > { %1665 = vmatmul.mubr.msk.bf16.vlgmr.msra.gmra.mrb[0].mxu1 %vm821_vm1, %v997_v54 }
 0x269   : > { %1668 = vmatprep.mubr.msk.bf16.mxu1 %vm821_vm1, %v998_v55  ;;  %1675 = vmatpush3.bf16.msra.mxu0 %v1153_v48 }
 0x26a   : > { %1704 = vmatprep.subr.bf16.mxu0 %v2311_v8  ;;  %1685 = vmatpush3.bf16.msra.mxu1 %v1734_v12 }
 0x26b   : > { %1686 = vmatprep.subr.bf16.mxu1 %v2311_v8 }
 0x26e   : > { %1687 = vmatpush3.bf16.msra.mxu1 %v1735_v13 }
 0x26f   : > { %1688 = vmatprep.subr.bf16.mxu1 %v2311_v8 }
 0x270   : > { %1669 = vmatmul.mubr.msk.bf16.gmra.mrb[4].mxu1 %vm821_vm1, %v999_v40 }
 0x271   : > { %1700 = vmatprep.mubr.msk.bf16.mxu1 %vm1825_vm0, %v2311_v8 }
 0x272   : > { %1689 = vmatpush3.bf16.msra.mxu1 %v1736_v14 }
 0x273   : > { %1690 = vmatprep.subr.bf16.mxu1 %v2311_v8 }
 0x276   : > { %1691 = vmatpush3.bf16.msra.mxu1 %v1737_v18 }
 0x277   : > { %1692 = vmatprep.subr.bf16.mxu1 %v2311_v8 }
 0x27a   : > { %1693 = vmatpush3.bf16.msra.mxu1 %v1738_v15 }
 0x27b   : > { %1694 = vmatprep.subr.bf16.mxu1 %v2311_v8 }
 0x27e   : > { %1695 = vmatpush3.bf16.msra.mxu1 %v1739_v19 }
 0x27f   : > { %1696 = vmatprep.subr.bf16.mxu1 %v2311_v8 }
 0x282   : > { %1697 = vmatpush3.bf16.msra.mxu1 %v1740_v5 }
 0x283   : > { %1698 = vmatprep.subr.bf16.mxu1 %v2311_v8 }
 0x286   : > { %1699 = vmatpush3.bf16.msra.mxu1 %v1741_v17 }
 0x33b   : > { %v1666_v51 = vpop.f32.mrb[0].mxu1 }
 0x33c   : > { %v1085_v63 = vpop.f32.mrb[1].mxu1  ;;  %v1094_v44 = vadd.f32 %v1666_v51, %v1576_v50 }
 0x33d   : > { %v1667_v0 = vpop.f32.mrb[2].mxu1  ;;  %v1086_v62 = vadd.f32 %v1576_v50, %v1085_v63 }
 0x33e   : > { %v1097_v56 = vadd.f32 %v1667_v0, %v1576_v50  ;;  %v1088_v61 = vpop.f32.mrb[3].mxu1 }
 0x33f   : > { %v1089_v2 = vadd.f32 %v1576_v50, %v1088_v61 }
 0x340   : > { %v1117_v3 = vpack.c.bf16 %v1097_v56, %v1094_v44 }
 0x341   : > { %v1116_v6 = vpack.c.bf16 %v1089_v2, %v1086_v62 }
 0x343   : > { %v1670_v60 = vpop.f32.mrb[4].mxu1  ;;  %1676 = vmatprep.mubr.msk.bf16.mxu0 %vm1139_vm4, %v1116_v6 }
 0x344   : > { %v1101_v4 = vpop.f32.mrb[5].mxu1  ;;  %1677 = vmatmul.mubr.msk.bf16.vlgmr.msra.gmra.mrb[8].mxu0 %vm1139_vm4, %v1117_v3  ;;  %v1110_v9 = vadd.f32 %v1670_v60, %v1576_v50 }
 0x345   : > { %v1671_v7 = vpop.f32.mrb[6].mxu1  ;;  %v1102_v10 = vadd.f32 %v1576_v50, %v1101_v4  ;;  %1705 = vmatpush3.bf16.msra.mxu0 %v1742_v25 }
 0x346   : > { %v1113_v1 = vadd.f32 %v1671_v7, %v1576_v50  ;;  %v1104_v59 = vpop.f32.mrb[7].mxu1  ;;  %1706 = vmatprep.subr.bf16.mxu0 %v2311_v8 }
 0x347   : > { %v1105_v57 = vadd.f32 %v1576_v50, %v1104_v59 }
 0x348   : > { %v1119_v58 = vpack.c.bf16 %v1113_v1, %v1110_v9 }
 0x349   : > { %v1118_v11 = vpack.c.bf16 %v1105_v57, %v1102_v10  ;;  %1707 = vmatpush3.bf16.msra.mxu0 %v1743_v32 }
 0x34b   : > { %1680 = vmatprep.mubr.msk.bf16.mxu0 %vm1139_vm4, %v1118_v11 }
 0x34c   : > { %1681 = vmatmul.mubr.msk.bf16.gmra.mrb[12].mxu0 %vm1139_vm4, %v1119_v58 }
 0x34d   : > { %1708 = vmatprep.mubr.msk.bf16.mxu0 %vm1825_vm0, %v2311_v8 }
 0x417   : > { %v1678_v16 = vpop.f32.mrb[8].mxu0 }
 0x418   : > { %v2259_v20 = vadd.f32 %v1678_v16, %v1585_v39  ;;  %v1189_v21 = vpop.f32.mrb[9].mxu0 }
 0x419   : > { %v2261_v28 = vadd.f32 %v1585_v39, %v1189_v21  ;;  %v1679_v22 = vpop.f32.mrb[10].mxu0 }
 0x41a   : > { %v1222_v29 = vsub.f32 0.0, %v2259_v20  ;;  %v2264_v23 = vadd.f32 %v1679_v22, %v1585_v39  ;;  %v1192_v30 = vpop.f32.mrb[11].mxu0 }
 0x41b   : > { %v1220_v33 = vsub.f32 0.0, %v2261_v28  ;;  %v1193_v8 = vadd.f32 %v1585_v39, %v1192_v30 }
 0x41c   : > { %v1232_v35 = vmul.f32 1.442695, %v1222_v29  ;;  %v1223_v27 = vsub.f32 0.0, %v2264_v23 }
 0x41d   : > { %v1228_v31 = vmul.f32 1.442695, %v1220_v33  ;;  %v1221_v24 = vsub.f32 0.0, %v1193_v8 }
 0x41e   : > { %1784 = vpow2.f32 %v1232_v35  ;;  %v1234_v37 = vmul.f32 1.442695, %v1223_v27 }
 0x41f   : > { %1786 = vpow2.f32 %v1228_v31  ;;  %v1230_v41 = vmul.f32 1.442695, %v1221_v24  ;;  %v1682_v45 = vpop.f32.mrb[12].mxu0 }
 0x420   : > { %1788 = vpow2.f32 %v1234_v37  ;;  %v1214_v47 = vadd.f32 %v1682_v45, %v1585_v39  ;;  %v1205_v49 = vpop.f32.mrb[13].mxu0 }
 0x421   : > { %1790 = vpow2.f32 %v1230_v41  ;;  %v1206_v46 = vadd.f32 %v1585_v39, %v1205_v49  ;;  %v1683_v42 = vpop.f32.mrb[14].mxu0  ;;  %v1299_v41 = vld [vmem:[%s2296_s12] sm:$0x1] }
 0x422   : > { %v1226_v43 = vsub.f32 0.0, %v1214_v47  ;;  %v1217_v52 = vadd.f32 %v1683_v42, %v1585_v39  ;;  %v1208_v53 = vpop.f32.mrb[15].mxu0 }
 0x423   : > { %v1224_v54 = vsub.f32 0.0, %v1206_v46  ;;  %v1209_v55 = vadd.f32 %v1585_v39, %v1208_v53 }
 0x424   : > { %v1240_v26 = vmul.f32 1.442695, %v1226_v43  ;;  %v1227_v34 = vsub.f32 0.0, %v1217_v52 }
 0x425   : > { %v1236_v40 = vmul.f32 1.442695, %v1224_v54  ;;  %v1225_v36 = vsub.f32 0.0, %v1209_v55 }
 0x426   : > { %1792 = vpow2.f32 %v1240_v26  ;;  %v1242_v38 = vmul.f32 1.442695, %v1227_v34 }
 0x427   : > { %1794 = vpow2.f32 %v1236_v40  ;;  %v1238_v48 = vmul.f32 1.442695, %v1225_v36 }
 0x428   : > { %v1785_v51 = vpop.eup %1784  ;;  %1796 = vpow2.f32 %v1242_v38 }
 0x429   : > { %v1787_v50 = vpop.eup %1786  ;;  %v1246_v63 = vadd.f32 1.0, %v1785_v51  ;;  %1798 = vpow2.f32 %v1238_v48 }
 0x42a   : > { %v1789_v0 = vpop.eup %1788  ;;  %v1244_v44 = vadd.f32 1.0, %v1787_v50 }
 0x42b   : > { %v1791_v56 = vpop.eup %1790  ;;  %v1247_v61 = vadd.f32 1.0, %v1789_v0 }
 0x42c   : > { %1800 = vrcp.f32 %v1244_v44  ;;  %v1245_v62 = vadd.f32 1.0, %v1791_v56 }
 0x42d   : > { %1802 = vrcp.f32 %v1246_v63 }
 0x42e   : > { %1804 = vrcp.f32 %v1245_v62 }
 0x42f   : > { %1806 = vrcp.f32 %v1247_v61 }
 0x430   : > { %v1793_v2 = vpop.eup %1792 }
 0x431   : > { %v1795_v3 = vpop.eup %1794  ;;  %v1250_v6 = vadd.f32 1.0, %v1793_v2 }
 0x432   : > { %v1797_v60 = vpop.eup %1796  ;;  %v1248_v4 = vadd.f32 1.0, %v1795_v3 }
 0x433   : > { %v1799_v7 = vpop.eup %1798  ;;  %v1251_v9 = vadd.f32 1.0, %v1797_v60 }
 0x434   : > { %1808 = vrcp.f32 %v1248_v4  ;;  %v1249_v1 = vadd.f32 1.0, %v1799_v7 }
 0x435   : > { %1810 = vrcp.f32 %v1250_v6 }
 0x436   : > { %v1801_v59 = vpop.eup %1800  ;;  %1812 = vrcp.f32 %v1249_v1 }
 0x437   : > { %v1803_v10 = vpop.eup %1802  ;;  %1814 = vrcp.f32 %v1251_v9  ;;  %v1260_v58 = vmul.f32 %v1801_v59, %v2261_v28 }
 0x438   : > { %v1805_v57 = vpop.eup %1804  ;;  %v1262_v13 = vmul.f32 %v1803_v10, %v2259_v20 }
 0x439   : > { %v1261_v11 = vmul.f32 %v1805_v57, %v1193_v8  ;;  %v1807_v12 = vpop.eup %1806 }
 0x43a   : > { %v1263_v18 = vmul.f32 %v1807_v12, %v2264_v23 }
 0x43b   : > { %v1268_v14 = vadd.f32 %v1261_v11, %v1260_v58 }
 0x43d   : > { %v1269_v15 = vadd.f32 %v1268_v14, %v1262_v13 }
 0x43e   : > { %v1809_v19 = vpop.eup %1808 }
 0x43f   : > { %v1811_v5 = vpop.eup %1810  ;;  %v1264_v17 = vmul.f32 %v1809_v19, %v1206_v46  ;;  %v1270_v25 = vadd.f32 %v1269_v15, %v1263_v18 }
 0x440   : > { %v1813_v32 = vpop.eup %1812  ;;  %v1266_v22 = vmul.f32 %v1811_v5, %v1214_v47 }
 0x441   : > { %v1271_v39 = vadd.f32 %v1270_v25, %v1264_v17  ;;  %v1265_v16 = vmul.f32 %v1813_v32, %v1209_v55  ;;  %v1815_v21 = vpop.eup %1814 }
 0x442   : > { %v1267_v30 = vmul.f32 %v1815_v21, %v1217_v52  ;;  %v1393_v52 = vld [vmem:[%s2298_s14] sm:$0x1] }
 0x443   : > { %v1272_v29 = vadd.f32 %v1271_v39, %v1265_v16 }
 0x445   : > { %v1273_v28 = vadd.f32 %v1272_v29, %v1266_v22 }
 0x447   : > { %v1274_v33 = vadd.f32 %v1273_v28, %v1267_v30 }
 0x449   : > { %v1275_v8 = vrot.slane %v1274_v33, 4 }
 0x44b   : > { %v1276_v35 = vadd.f32 %v1275_v8, %v1274_v33 }
 0x44d   : > { %v1277_v20 = vrot.slane %v1276_v35, 2 }
 0x44f   : > { %v1278_v27 = vadd.f32 %v1277_v20, %v1276_v35 }
 0x451   : > { %v1279_v23 = vrot.slane %v1278_v27, 1 }
 0x453   : > { %v1280_v31 = vadd.f32 %v1279_v23, %v1278_v27 }
 0x455   : > { %v1281_v24 = vmul.f32 0.015625, %v1280_v31 }
 0x457   : > { %v1282_v37 = vpack.c.bf16 %v1281_v24, %v1281_v24 }
 0x459   : > { %1701 = vmatmul.mubr.bf16.vlgmr.msra.gmra.mrb[8].mxu1 %v1282_v37 }
 0x52c   : > { %v1382_v45 = vpop.f32.mrb[8].mxu1 }
 0x52d   : > { %v1383_v47 = vadd.f32 %v1382_v45, %v1299_v41  ;;  %v1702_v49 = vpop.f32.mrb[9].mxu1 }
 0x52e   : > { %v1385_v46 = vpop.f32.mrb[10].mxu1 }
 0x52f   : > { %v1388_v42 = vpack.c.bf16 %v1383_v47, %v1383_v47  ;;  %v1703_v43 = vpop.f32.mrb[11].mxu1 }
 0x531   : > { %1709 = vmatmul.mubr.msk.bf16.vlgmr.msra.gmra.mrb[16].mxu0 %vm1406_vm5, %v1388_v42 }
 0x604   : > { %v1444_v53 = vpop.f32.mrb[16].mxu0 }
 0x605   : > { %v1445_v54 = vadd.f32 %v1444_v53, %v1393_v52  ;;  %v1710_v55 = vpop.f32.mrb[17].mxu0 }
 0x606   : > { %v1447_v26 = vpop.f32.mrb[18].mxu0 }
 0x607   : > { %1450 = vst [vmem:[%s490_s23] sm:$0x1] %v1445_v54  ;;  %v1711_v34 = vpop.f32.mrb[19].mxu0 }
 0x608 PF: > { %s25_s18 = sadd.s32 1, %s1822_s18  }
 0x609   : > { %p22_p4 = scmp.ge.s32.totalorder %s25_s18, 4  }
 0x60b   :  { %24 = sbr.rel (!%p22_p4) target bundleno = 1 (0x1), region = 115 }

</bundles_post_ra>
